<compile_context>
chip_gen: v5e
topology: v5e:2x2
jax: 0.10.0
libtpu: 0.0.40
codegen_flags: <defaults>
</compile_context>

<pallas_src>
import jax
import jax.numpy as jnp
import numpy as np
from jax.experimental import pallas as pl
from jax.experimental.pallas import tpu as pltpu

IN_FEATURES = 141
H1, H2, H3 = 1024, 512, 256
BN_EPS = 1e-5


def _round_up(x, m):
    return (x + m - 1) // m * m


K_PAD = _round_up(IN_FEATURES, 8)  # 144: sublane-aligned, no need to pad K to 128


# --------------------------------------------------------------------------- #
# Kernel
# --------------------------------------------------------------------------- #
def _mlp_kernel(x_ref,
                w1_ref, b1_ref,
                w2_ref, b2_ref,
                w3_ref, b3_ref,
                w4_ref, b4_ref,
                o_ref):
    # fc1 + folded BN1 + ReLU (dropout = identity in eval mode)
    h = jnp.dot(x_ref[...].astype(jnp.bfloat16), w1_ref[...],
                preferred_element_type=jnp.float32) + b1_ref[...]
    h = jnp.maximum(h, 0.0)
    # fc2 + folded BN2 + ReLU
    h = jnp.dot(h.astype(jnp.bfloat16), w2_ref[...],
                preferred_element_type=jnp.float32) + b2_ref[...]
    h = jnp.maximum(h, 0.0)
    # fc3 + folded BN3 + ReLU
    h = jnp.dot(h.astype(jnp.bfloat16), w3_ref[...],
                preferred_element_type=jnp.float32) + b3_ref[...]
    h = jnp.maximum(h, 0.0)
    # fc4 (logits)
    o_ref[...] = jnp.dot(h.astype(jnp.bfloat16), w4_ref[...],
                         preferred_element_type=jnp.float32) + b4_ref[...]


# --------------------------------------------------------------------------- #
# Parameter construction / preparation
# --------------------------------------------------------------------------- #
def init_params(key, num_classes):
    """Deterministic f32 params, matching PyTorch default init shapes/ranges."""
    def linear(key, fan_in, fan_out):
        kw, kb = jax.random.split(key)
        bound = 1.0 / np.sqrt(fan_in)
        w = jax.random.uniform(kw, (fan_in, fan_out), jnp.float32, -bound, bound)
        b = jax.random.uniform(kb, (fan_out,), jnp.float32, -bound, bound)
        return w, b

    k1, k2, k3, k4, kbn = jax.random.split(key, 5)
    w1, b1 = linear(k1, IN_FEATURES, H1)
    w2, b2 = linear(k2, H1, H2)
    w3, b3 = linear(k3, H2, H3)
    w4, b4 = linear(k4, H3, num_classes)

    def bn(key, n):
        kg, kb, km, kv = jax.random.split(key, 4)
        gamma = 1.0 + 0.1 * jax.random.normal(kg, (n,), jnp.float32)
        beta = 0.1 * jax.random.normal(kb, (n,), jnp.float32)
        mean = 0.1 * jax.random.normal(km, (n,), jnp.float32)
        var = jax.random.uniform(kv, (n,), jnp.float32, 0.5, 1.5)
        return gamma, beta, mean, var

    kb1, kb2, kb3 = jax.random.split(kbn, 3)
    return dict(
        w1=w1, b1=b1, w2=w2, b2=b2, w3=w3, b3=b3, w4=w4, b4=b4,
        bn1=bn(kb1, H1), bn2=bn(kb2, H2), bn3=bn(kb3, H3),
    )


def prepare_params(params):
    """One-time prep: fold BN into W/b, pad to TPU shapes, cast W to bf16."""
    num_classes = params["w4"].shape[1]

    def fold(w, b, bn):
        gamma, beta, mean, var = bn
        s = gamma * jax.lax.rsqrt(var + BN_EPS)      # per-feature scale
        w_f = w * s[None, :]                         # fold scale into columns
        b_f = (b - mean) * s + beta                  # fold shift into bias
        return w_f, b_f

    w1f, b1f = fold(params["w1"], params["b1"], params["bn1"])
    w2f, b2f = fold(params["w2"], params["b2"], params["bn2"])
    w3f, b3f = fold(params["w3"], params["b3"], params["bn3"])

    nc_pad = _round_up(max(num_classes, 128), 128)

    w1p = (jnp.zeros((K_PAD, H1), jnp.float32)
           .at[:IN_FEATURES, :].set(w1f)).astype(jnp.bfloat16)
    w4p = (jnp.zeros((H3, nc_pad), jnp.float32)
           .at[:, :num_classes].set(params["w4"])).astype(jnp.bfloat16)
    b4p = jnp.zeros((1, nc_pad), jnp.float32).at[0, :num_classes].set(params["b4"])

    return dict(
        w1=w1p, b1=b1f.reshape(1, -1),
        w2=w2f.astype(jnp.bfloat16), b2=b2f.reshape(1, -1),
        w3=w3f.astype(jnp.bfloat16), b3=b3f.reshape(1, -1),
        w4=w4p, b4=b4p,
        num_classes=num_classes, nc_pad=nc_pad,
    )


# --------------------------------------------------------------------------- #
# Forward
# --------------------------------------------------------------------------- #
def bird_classifier_forward(x, prepared):
    """x: (B, 141) float32 -> logits (B, num_classes)."""
    B = x.shape[0]
    num_classes = prepared["num_classes"]
    nc_pad = prepared["nc_pad"]

    # Batch tile: up to 256 rows per grid step (MXU M-dim on v6e/v7x); small
    # batches collapse to a single sublane-aligned tile.
    TB = 256 if B >= 256 else _round_up(max(B, 8), 8)
    B_pad = _round_up(max(B, 8), TB)

    x_p = jnp.zeros((B_pad, K_PAD), jnp.float32).at[:B, :IN_FEATURES].set(x)

    def wspec(shape):
        # Constant block index -> weights/biases stay resident across batch tiles.
        return pl.BlockSpec(shape, lambda i: (0, 0))

    out_p = pl.pallas_call(
        _mlp_kernel,
        out_shape=jax.ShapeDtypeStruct((B_pad, nc_pad), jnp.float32),
        grid=(B_pad // TB,),
        in_specs=[
            pl.BlockSpec((TB, K_PAD), lambda i: (i, 0)),   # x (batch-tiled)
            wspec((K_PAD, H1)), wspec((1, H1)),
            wspec((H1, H2)), wspec((1, H2)),
            wspec((H2, H3)), wspec((1, H3)),
            wspec((H3, nc_pad)), wspec((1, nc_pad)),
        ],
        out_specs=pl.BlockSpec((TB, nc_pad), lambda i: (i, 0)),
        compiler_params=pltpu.CompilerParams(
            dimension_semantics=("parallel",),
            vmem_limit_bytes=32 * 1024 * 1024,
        ),
    )(x_p,
      prepared["w1"], prepared["b1"],
      prepared["w2"], prepared["b2"],
      prepared["w3"], prepared["b3"],
      prepared["w4"], prepared["b4"])

    return out_p[:B, :num_classes]


# --------------------------------------------------------------------------- #
# References
# --------------------------------------------------------------------------- #
def _reference_forward_f32(x, params):
    """Pure-JAX f32 reference of the eval-mode PyTorch forward."""
    def bn(h, bnp):
        gamma, beta, mean, var = bnp
        return (h - mean) * jax.lax.rsqrt(var + BN_EPS) * gamma + beta

    h = jnp.maximum(bn(x @ params["w1"] + params["b1"], params["bn1"]), 0.0)
    h = jnp.maximum(bn(h @ params["w2"] + params["b2"], params["bn2"]), 0.0)
    h = jnp.maximum(bn(h @ params["w3"] + params["b3"], params["bn3"]), 0.0)
    return h @ params["w4"] + params["b4"]


def _reference_forward_bf16(x, prepared):
    """Emulates the kernel arithmetic (bf16 matmuls, f32 accum, folded BN)."""
    B = x.shape[0]
    xp = jnp.zeros((B, K_PAD), jnp.float32).at[:, :IN_FEATURES].set(x)

    def dot(a, w):
        return jnp.dot(a.astype(jnp.bfloat16), w,
                       preferred_element_type=jnp.float32)

    h = jnp.maximum(dot(xp, prepared["w1"]) + prepared["b1"], 0.0)
    h = jnp.maximum(dot(h, prepared["w2"]) + prepared["b2"], 0.0)
    h = jnp.maximum(dot(h, prepared["w3"]) + prepared["b3"], 0.0)
    out = dot(h, prepared["w4"]) + prepared["b4"]
    return out[:, :prepared["num_classes"]]


# --------------------------------------------------------------------------- #
if __name__ == "__main__":
    key = jax.random.PRNGKey(0)
    kx, kp = jax.random.split(key)

    batch = 4
    num_classes = 10
    x = jax.random.normal(kx, (batch, IN_FEATURES), jnp.float32)

    params = init_params(kp, num_classes)
    prepared = prepare_params(params)          # one-time: fold BN, pad, bf16

    out = bird_classifier_forward(x, prepared)
    out = jax.block_until_ready(out)
    assert out.shape == (batch, num_classes), out.shape

    # Tight check: kernel matches an emulation of its own bf16/f32 arithmetic.
    ref_bf16 = jax.block_until_ready(_reference_forward_bf16(x, prepared))
    np.testing.assert_allclose(np.asarray(out), np.asarray(ref_bf16),
                               rtol=1e-3, atol=1e-3)

    # Loose check: kernel tracks the full-f32 eval-mode PyTorch semantics
    # (tolerance widened because weights are bf16-quantized in the kernel).
    ref_f32 = jax.block_until_ready(_reference_forward_f32(x, params))
    np.testing.assert_allclose(np.asarray(out), np.asarray(ref_f32),
                               rtol=5e-2, atol=5e-2)

    print("KERNEL_OK")
</pallas_src>

<mosaic_0001>
module attributes {stable_mosaic.version = 11 : i64} {
  func.func @_mlp_kernel(%arg0: i32, %arg1: memref<8x144xf32, #tpu.memory_space<vmem>>, %arg2: memref<144x1024xbf16, #tpu.memory_space<vmem>>, %arg3: memref<1x1024xf32, #tpu.memory_space<vmem>>, %arg4: memref<1024x512xbf16, #tpu.memory_space<vmem>>, %arg5: memref<1x512xf32, #tpu.memory_space<vmem>>, %arg6: memref<512x256xbf16, #tpu.memory_space<vmem>>, %arg7: memref<1x256xf32, #tpu.memory_space<vmem>>, %arg8: memref<256x128xbf16, #tpu.memory_space<vmem>>, %arg9: memref<1x128xf32, #tpu.memory_space<vmem>>, %arg10: memref<8x128xf32, #tpu.memory_space<vmem>>) attributes {dimension_semantics = [#tpu.dimension_semantics<parallel>], iteration_bounds = array<i64: 1>, scalar_prefetch = 0 : i64, scratch_operands = 0 : i64, tpu.core_type = #tpu.core_type<tc>, window_params = [{transform_indices = @transform_0, window_bounds = array<i64: 8, 144>}, {pipeline_mode = #tpu.pipeline_mode<synchronous>, transform_indices = @transform_1, window_bounds = array<i64: 144, 1024>}, {pipeline_mode = #tpu.pipeline_mode<synchronous>, transform_indices = @transform_2, window_bounds = array<i64: 1, 1024>}, {pipeline_mode = #tpu.pipeline_mode<synchronous>, transform_indices = @transform_3, window_bounds = array<i64: 1024, 512>}, {pipeline_mode = #tpu.pipeline_mode<synchronous>, transform_indices = @transform_4, window_bounds = array<i64: 1, 512>}, {pipeline_mode = #tpu.pipeline_mode<synchronous>, transform_indices = @transform_5, window_bounds = array<i64: 512, 256>}, {pipeline_mode = #tpu.pipeline_mode<synchronous>, transform_indices = @transform_6, window_bounds = array<i64: 1, 256>}, {pipeline_mode = #tpu.pipeline_mode<synchronous>, transform_indices = @transform_7, window_bounds = array<i64: 256, 128>}, {pipeline_mode = #tpu.pipeline_mode<synchronous>, transform_indices = @transform_8, window_bounds = array<i64: 1, 128>}, {transform_indices = @transform_9, window_bounds = array<i64: 8, 128>}]} {
    %c0 = arith.constant 0 : index
    %c0_0 = arith.constant 0 : index
    %0 = vector.load %arg1[%c0, %c0_0] : memref<8x144xf32, #tpu.memory_space<vmem>>, vector<8x144xf32>
    %1 = arith.truncf %0 : vector<8x144xf32> to vector<8x144xbf16>
    %c0_1 = arith.constant 0 : index
    %c0_2 = arith.constant 0 : index
    %2 = vector.load %arg2[%c0_1, %c0_2] : memref<144x1024xbf16, #tpu.memory_space<vmem>>, vector<144x1024xbf16>
    %cst = arith.constant dense<0.000000e+00> : vector<8x1024xf32>
    %3 = tpu.matmul %1, %2, %cst {dimension_numbers = #tpu.dot_dimension_numbers<[1], [0], [0], [1], [0, 0, 1, 1], [], []>} : vector<8x144xbf16>, vector<144x1024xbf16>, vector<8x1024xf32> -> vector<8x1024xf32>
    %c0_3 = arith.constant 0 : index
    %c0_4 = arith.constant 0 : index
    %4 = vector.load %arg3[%c0_3, %c0_4] : memref<1x1024xf32, #tpu.memory_space<vmem>>, vector<1x1024xf32>
    %5 = vector.broadcast %4 : vector<1x1024xf32> to vector<8x1024xf32>
    %6 = arith.addf %3, %5 : vector<8x1024xf32>
    %cst_5 = arith.constant 0.000000e+00 : f32
    %7 = vector.broadcast %cst_5 : f32 to vector<8x1024xf32>
    %8 = arith.maximumf %6, %7 : vector<8x1024xf32>
    %9 = arith.truncf %8 : vector<8x1024xf32> to vector<8x1024xbf16>
    %c0_6 = arith.constant 0 : index
    %c0_7 = arith.constant 0 : index
    %10 = vector.load %arg4[%c0_6, %c0_7] : memref<1024x512xbf16, #tpu.memory_space<vmem>>, vector<1024x512xbf16>
    %cst_8 = arith.constant dense<0.000000e+00> : vector<8x512xf32>
    %11 = tpu.matmul %9, %10, %cst_8 {dimension_numbers = #tpu.dot_dimension_numbers<[1], [0], [0], [1], [0, 0, 1, 1], [], []>} : vector<8x1024xbf16>, vector<1024x512xbf16>, vector<8x512xf32> -> vector<8x512xf32>
    %c0_9 = arith.constant 0 : index
    %c0_10 = arith.constant 0 : index
    %12 = vector.load %arg5[%c0_9, %c0_10] : memref<1x512xf32, #tpu.memory_space<vmem>>, vector<1x512xf32>
    %13 = vector.broadcast %12 : vector<1x512xf32> to vector<8x512xf32>
    %14 = arith.addf %11, %13 : vector<8x512xf32>
    %cst_11 = arith.constant 0.000000e+00 : f32
    %15 = vector.broadcast %cst_11 : f32 to vector<8x512xf32>
    %16 = arith.maximumf %14, %15 : vector<8x512xf32>
    %17 = arith.truncf %16 : vector<8x512xf32> to vector<8x512xbf16>
    %c0_12 = arith.constant 0 : index
    %c0_13 = arith.constant 0 : index
    %18 = vector.load %arg6[%c0_12, %c0_13] : memref<512x256xbf16, #tpu.memory_space<vmem>>, vector<512x256xbf16>
    %cst_14 = arith.constant dense<0.000000e+00> : vector<8x256xf32>
    %19 = tpu.matmul %17, %18, %cst_14 {dimension_numbers = #tpu.dot_dimension_numbers<[1], [0], [0], [1], [0, 0, 1, 1], [], []>} : vector<8x512xbf16>, vector<512x256xbf16>, vector<8x256xf32> -> vector<8x256xf32>
    %c0_15 = arith.constant 0 : index
    %c0_16 = arith.constant 0 : index
    %20 = vector.load %arg7[%c0_15, %c0_16] : memref<1x256xf32, #tpu.memory_space<vmem>>, vector<1x256xf32>
    %21 = vector.broadcast %20 : vector<1x256xf32> to vector<8x256xf32>
    %22 = arith.addf %19, %21 : vector<8x256xf32>
    %cst_17 = arith.constant 0.000000e+00 : f32
    %23 = vector.broadcast %cst_17 : f32 to vector<8x256xf32>
    %24 = arith.maximumf %22, %23 : vector<8x256xf32>
    %25 = arith.truncf %24 : vector<8x256xf32> to vector<8x256xbf16>
    %c0_18 = arith.constant 0 : index
    %c0_19 = arith.constant 0 : index
    %26 = vector.load %arg8[%c0_18, %c0_19] : memref<256x128xbf16, #tpu.memory_space<vmem>>, vector<256x128xbf16>
    %cst_20 = arith.constant dense<0.000000e+00> : vector<8x128xf32>
    %27 = tpu.matmul %25, %26, %cst_20 {dimension_numbers = #tpu.dot_dimension_numbers<[1], [0], [0], [1], [0, 0, 1, 1], [], []>} : vector<8x256xbf16>, vector<256x128xbf16>, vector<8x128xf32> -> vector<8x128xf32>
    %c0_21 = arith.constant 0 : index
    %c0_22 = arith.constant 0 : index
    %28 = vector.load %arg9[%c0_21, %c0_22] : memref<1x128xf32, #tpu.memory_space<vmem>>, vector<1x128xf32>
    %29 = vector.broadcast %28 : vector<1x128xf32> to vector<8x128xf32>
    %30 = arith.addf %27, %29 : vector<8x128xf32>
    %c0_23 = arith.constant 0 : index
    %c0_24 = arith.constant 0 : index
    %31 = vector.load %arg10[%c0_23, %c0_24] : memref<8x128xf32, #tpu.memory_space<vmem>>, vector<8x128xf32>
    tpu.vector_store %arg10[%c0_23, %c0_24], %30 {strides = array<i32>} : memref<8x128xf32, #tpu.memory_space<vmem>>, vector<8x128xf32>,
    return
  }
  func.func @transform_0(%arg0: i32) -> (i32, i32) {
    %c0_i32 = arith.constant 0 : i32
    %c0_i32_0 = arith.constant 0 : i32
    return %arg0, %c0_i32 : i32, i32
  }
  func.func @transform_1(%arg0: i32) -> (i32, i32) {
    %c0_i32 = arith.constant 0 : i32
    %c0_i32_0 = arith.constant 0 : i32
    %c0_i32_1 = arith.constant 0 : i32
    return %c0_i32, %c0_i32_0 : i32, i32
  }
  func.func @transform_2(%arg0: i32) -> (i32, i32) {
    %c0_i32 = arith.constant 0 : i32
    %c0_i32_0 = arith.constant 0 : i32
    %c0_i32_1 = arith.constant 0 : i32
    return %c0_i32, %c0_i32_0 : i32, i32
  }
  func.func @transform_3(%arg0: i32) -> (i32, i32) {
    %c0_i32 = arith.constant 0 : i32
    %c0_i32_0 = arith.constant 0 : i32
    %c0_i32_1 = arith.constant 0 : i32
    return %c0_i32, %c0_i32_0 : i32, i32
  }
  func.func @transform_4(%arg0: i32) -> (i32, i32) {
    %c0_i32 = arith.constant 0 : i32
    %c0_i32_0 = arith.constant 0 : i32
    %c0_i32_1 = arith.constant 0 : i32
    return %c0_i32, %c0_i32_0 : i32, i32
  }
  func.func @transform_5(%arg0: i32) -> (i32, i32) {
    %c0_i32 = arith.constant 0 : i32
    %c0_i32_0 = arith.constant 0 : i32
    %c0_i32_1 = arith.constant 0 : i32
    return %c0_i32, %c0_i32_0 : i32, i32
  }
  func.func @transform_6(%arg0: i32) -> (i32, i32) {
    %c0_i32 = arith.constant 0 : i32
    %c0_i32_0 = arith.constant 0 : i32
    %c0_i32_1 = arith.constant 0 : i32
    return %c0_i32, %c0_i32_0 : i32, i32
  }
  func.func @transform_7(%arg0: i32) -> (i32, i32) {
    %c0_i32 = arith.constant 0 : i32
    %c0_i32_0 = arith.constant 0 : i32
    %c0_i32_1 = arith.constant 0 : i32
    return %c0_i32, %c0_i32_0 : i32, i32
  }
  func.func @transform_8(%arg0: i32) -> (i32, i32) {
    %c0_i32 = arith.constant 0 : i32
    %c0_i32_0 = arith.constant 0 : i32
    %c0_i32_1 = arith.constant 0 : i32
    return %c0_i32, %c0_i32_0 : i32, i32
  }
  func.func @transform_9(%arg0: i32) -> (i32, i32) {
    %c0_i32 = arith.constant 0 : i32
    %c0_i32_0 = arith.constant 0 : i32
    return %arg0, %c0_i32 : i32, i32
  }
}

</mosaic_0001>

<bundles_post_ra>
// kernel: tpu_custom_call.1
= control target key start
LH: loop header
LB: loop body
LE: loop exit
PB: predicated region body
PF: predicated region fallthrough
CT: control target
= control target key end

     0   :  { %14 = vsyncpa [#allocation3], 0  ;;  %s5971_s0 = inlined_call_operand.hbm [shape: f32[8,144], index: 0, kind: input, shape index: {}]   ;;  %s5972_s1 = inlined_call_operand.hbm [shape: bf16[144,1024], index: 1, kind: input, shape index: {}]   ;;  %s5973_s2 = inlined_call_operand.hbm [shape: f32[1,1024], index: 2, kind: input, shape index: {}]   ;;  %s5974_s3 = inlined_call_operand.hbm [shape: bf16[1024,512], index: 3, kind: input, shape index: {}]   ;;  %s5975_s4 = inlined_call_operand.hbm [shape: f32[1,512], index: 4, kind: input, shape index: {}]   ;;  %s5976_s5 = inlined_call_operand.hbm [shape: bf16[512,256], index: 5, kind: input, shape index: {}]   ;;  %s5977_s6 = inlined_call_operand.vmem [shape: f32[1,256], index: 6, kind: input, shape index: {}]   ;;  %s5978_s7 = inlined_call_operand.hbm [shape: bf16[256,128], index: 7, kind: input, shape index: {}]   ;;  %s5979_s8 = inlined_call_operand.vmem [shape: f32[1,128], index: 8, kind: input, shape index: {}]   ;;  %s5980_s9 = inlined_call_operand.hbm [shape: f32[8,128], index: 9, kind: output, shape index: {}]  }
   0x1   :  { %15 = vsyncpa [#allocation6], 0 }
   0x2   :  { %16 = vsyncpa [#allocation9], 0 }
   0x3   :  { %17 = vsyncpa [#allocation12], 0  ;;  %s34_s11 = sshll.u32 %s5972_s1, 4  ;;  %s35_s11 = int_to_ptr.hbm [resolvable:$true] %s34_s11 }
   0x4   :  { %18 = vsyncpa [#allocation4], 0  ;;  %s5733_s12 = smov [#allocation5]   ;;  %s58_s16 = sshll.u32 %s5974_s3, 4  ;;  %s59_s16 = int_to_ptr.hbm [resolvable:$true] %s58_s16 }
   0x5   :  { %s36_s13 = sshll.u32 %s5733_s12, 4  ;;  %s5734_s17 = smov 512   ;;  %s37_s13 = int_to_ptr.vmem [resolvable:$true] %s36_s13 }
   0x6   :  { %s5735_s18 = smov 32   ;;  %s5736_s19 = smov [#allocation8]  }
   0x7   :  { %42 = dma.hbm_to_vmem [thread:$0]  %s35_s11, 9216, %s37_s13, [#allocation6], %s5734_s17, %s5734_s17, %s5735_s18  }
   0x8   :  { %s60_s20 = sshll.u32 %s5736_s19, 4  ;;  %s5737_s21 = smov 256   ;;  %s61_s20 = int_to_ptr.vmem [resolvable:$true] %s60_s20 }
   0x9   :  { %s5738_s22 = smov 16   ;;  %s82_s24 = sshll.u32 %s5976_s5, 4  ;;  %s83_s24 = int_to_ptr.hbm [resolvable:$true] %s82_s24 }
   0xa   :  { %66 = dma.hbm_to_vmem [thread:$0]  %s59_s16, 32768, %s61_s20, [#allocation9], %s5737_s21, %s5737_s21, %s5738_s22  }
   0xb   :  { %s5739_s25 = smov [#allocation11]   ;;  %s24_s28 = sshll.u32 %s5971_s0, 4  ;;  %s25_s28 = int_to_ptr.hbm [resolvable:$true] %s24_s28 }
   0xc   :  { %s84_s26 = sshll.u32 %s5739_s25, 4  ;;  %s5740_s29 = smov 128   ;;  %s85_s26 = int_to_ptr.vmem [resolvable:$true] %s84_s26 }
   0xd   :  { %s5741_s30 = smov 8   ;;  %s5742_s10 = smov [#allocation2]  }
   0xe   :  { %90 = dma.hbm_to_vmem [thread:$0]  %s83_s24, 8192, %s85_s26, [#allocation12], %s5740_s29, %s5740_s29, %s5741_s30  }
   0xf   :  { %s26_s11 = sshll.u32 %s5742_s10, 4  ;;  %s48_s14 = sshll.u32 %s5973_s2, 4  ;;  %s27_s11 = int_to_ptr.vmem [resolvable:$true] %s26_s11  ;;  %s49_s14 = int_to_ptr.hbm [resolvable:$true] %s48_s14 }
  0x10   :  { %29 = dma.hbm_to_vmem [thread:$0]  %s25_s28, 256, %s27_s11, [#allocation3]  }
  0x11   :  { %s72_s16 = sshll.u32 %s5975_s4, 4  ;;  %s5743_s17 = smov [#allocation7]   ;;  %s73_s16 = int_to_ptr.hbm [resolvable:$true] %s72_s16 }
  0x12   :  { %s50_s18 = sshll.u32 %s5743_s17, 4  ;;  %s5744_s0 = smov [#allocation10]   ;;  %s51_s18 = int_to_ptr.vmem [resolvable:$true] %s50_s18 }
  0x13   :  { %53 = dma.hbm_to_vmem [thread:$0]  %s49_s14, 128, %s51_s18, [#allocation6]  }
  0x14   :  { %s74_s19 = sshll.u32 %s5744_s0, 4  ;;  %s97_s22 = sshll.u32 %s5978_s7, 4  ;;  %s75_s19 = int_to_ptr.vmem [resolvable:$true] %s74_s19  ;;  %s98_s22 = int_to_ptr.hbm [resolvable:$true] %s97_s22 }
  0x15   :  { %77 = dma.hbm_to_vmem [thread:$0]  %s73_s16, 64, %s75_s19, [#allocation9]  }
  0x16   :  { %s5745_s2 = smov [#allocation13]   ;;  %s5746_s23 = smov 64  }
  0x17   :  { %s99_s1 = sshll.u32 %s5745_s2, 4  ;;  %s5747_s24 = smov 4   ;;  %s100_s1 = int_to_ptr.vmem [resolvable:$true] %s99_s1 }
  0x18   :  { %105 = dma.hbm_to_vmem [thread:$0]  %s98_s22, 2048, %s100_s1, [#allocation12], %s5746_s23, %s5746_s23, %s5747_s24  }
  0x19   :  { %5723 = dma.done.wait [#allocation3], 256  }
  0x1a   :  { %5724 = vsyncadd [#allocation3], 4294967040 }
  0x1b   :  { %5725 = dma.done.wait [#allocation6], 9344  }
  0x1c   :  { %5726 = vsyncadd [#allocation6], 4294957952 }
  0x1d   :  { %5727 = dma.done.wait [#allocation9], 32832  }
  0x1e   :  { %5728 = vsyncadd [#allocation9], 4294934464 }
  0x1f   :  { %5729 = dma.done.wait [#allocation12], 10240  }
  0x20   :  { %5730 = vsyncadd [#allocation12], 4294957056  ;;  %v3692_v0 = vld [vmem:[#allocation5 + $0x1c0] sm:$0xf]  ;;  %v5162_v2 = vld [vmem:[#allocation5 + $0x1c4] sm:$0xf] }
  0x21   :  { %v5166_v1 = vld [vmem:[#allocation5 + $0x1dc] sm:$0xf0]  ;;  %v3694_v4 = vld [vmem:[#allocation5 + $0x1e0] sm:$0xf0]  ;;  %v3700_v13 = vld [vmem:[#allocation5 + $0x1c8] sm:$0xf] }
  0x22   :  { %v3693_v3 = vor.u32 %v5166_v1, %v3692_v0  ;;  %v3660_v5 = vld [vmem:[#allocation5 + $0x180] sm:$0xf]  ;;  %v3697_v7 = vor.u32 %v5162_v2, %v3694_v4  ;;  %v5154_v8 = vld [vmem:[#allocation5 + $0x184] sm:$0xf]  ;;  %v5167_v14 = vld [vmem:[#allocation5 + $0x1e4] sm:$0xf0] }
  0x23   :  { %v5158_v6 = vld [vmem:[#allocation5 + $0x19c] sm:$0xf0]  ;;  %v3662_v9 = vld [vmem:[#allocation5 + $0x1a0] sm:$0xf0]  ;;  %v3701_v17 = vor.u32 %v5167_v14, %v3700_v13  ;;  %v3668_v22 = vld [vmem:[#allocation5 + $0x188] sm:$0xf] }
  0x24   :  { %v3724_v10 = vld [vmem:[#allocation5 + $0x200] sm:$0xf]  ;;  %595 = vmatpush.bf16.msra.mxu0 %v3693_v3  ;;  %v3661_v11 = vor.u32 %v5158_v6, %v3660_v5  ;;  %621 = vmatpush.bf16.msra.mxu2 %v3697_v7  ;;  %v3665_v15 = vor.u32 %v5154_v8, %v3662_v9  ;;  %v5146_v20 = vld [vmem:[#allocation5 + $0x144] sm:$0xf]  ;;  %v5159_v23 = vld [vmem:[#allocation5 + $0x1a4] sm:$0xf0] }
  0x25   :  { %v5174_v12 = vld [vmem:[#allocation5 + $0x21c] sm:$0xf0]  ;;  %v3630_v21 = vld [vmem:[#allocation5 + $0x160] sm:$0xf0]  ;;  %v3669_v26 = vor.u32 %v5159_v23, %v3668_v22  ;;  %v3732_v28 = vld [vmem:[#allocation5 + $0x208] sm:$0xf] }
  0x26   :  { %v3725_v16 = vor.u32 %v5174_v12, %v3724_v10  ;;  %v3628_v18 = vld [vmem:[#allocation5 + $0x140] sm:$0xf]  ;;  %v5175_v29 = vld [vmem:[#allocation5 + $0x224] sm:$0xf0]  ;;  %v3633_v30 = vor.u32 %v5146_v20, %v3630_v21  ;;  %v5163_v34 = vld [vmem:[#allocation5 + $0x1cc] sm:$0xf] }
  0x27   :  { %v5150_v19 = vld [vmem:[#allocation5 + $0x15c] sm:$0xf0]  ;;  %v3733_v31 = vor.u32 %v5175_v29, %v3732_v28  ;;  %v3636_v32 = vld [vmem:[#allocation5 + $0x148] sm:$0xf]  ;;  %v5138_v35 = vld [vmem:[#allocation5 + $0x104] sm:$0xf] }
  0x28   :  { %615 = vmatpush.bf16.msra.mxu1 %v3725_v16  ;;  %v3596_v24 = vld [vmem:[#allocation5 + $0x100] sm:$0xf]  ;;  %596 = vmatpush.bf16.msra.mxu0 %v3661_v11  ;;  %v3629_v25 = vor.u32 %v5150_v19, %v3628_v18  ;;  %v5151_v33 = vld [vmem:[#allocation5 + $0x164] sm:$0xf0]  ;;  %v3598_v36 = vld [vmem:[#allocation5 + $0x120] sm:$0xf0] }
  0x29   :  { %v5142_v27 = vld [vmem:[#allocation5 + $0x11c] sm:$0xf0]  ;;  %622 = vmatpush.bf16.msra.mxu2 %v3665_v15  ;;  %v3702_v37 = vld [vmem:[#allocation5 + $0x1e8] sm:$0xf0]  ;;  %667 = vmatpush.bf16.msra.mxu3 %v3733_v31  ;;  %v3637_v40 = vor.u32 %v5151_v33, %v3636_v32  ;;  %v3601_v44 = vor.u32 %v5138_v35, %v3598_v36  ;;  %v3604_v46 = vld [vmem:[#allocation5 + $0x108] sm:$0xf] }
  0x2a   :  { %v3705_v38 = vor.u32 %v5163_v34, %v3702_v37  ;;  %v3597_v39 = vor.u32 %v5142_v27, %v3596_v24  ;;  %v3564_v41 = vld [vmem:[#allocation5 + $0xc0] sm:$0xf]  ;;  %v5155_v42 = vld [vmem:[#allocation5 + $0x18c] sm:$0xf]  ;;  %v5143_v47 = vld [vmem:[#allocation5 + $0x124] sm:$0xf0] }
  0x2b   :  { %v3670_v43 = vld [vmem:[#allocation5 + $0x1a8] sm:$0xf0]  ;;  %v5134_v45 = vld [vmem:[#allocation5 + $0xdc] sm:$0xf0]  ;;  %v5130_v49 = vld [vmem:[#allocation5 + $0xc4] sm:$0xf]  ;;  %v3605_v56 = vor.u32 %v5143_v47, %v3604_v46 }
  0x2c   :  { %647 = vmatpush.bf16.msrb.mxu1 %v3701_v17  ;;  %597 = vmatpush.bf16.msra.mxu0 %v3629_v25  ;;  %v3673_v48 = vor.u32 %v5155_v42, %v3670_v43  ;;  %v3566_v50 = vld [vmem:[#allocation5 + $0xe0] sm:$0xf0]  ;;  %v138_v51 = vld [vmem:[#allocation2 + $0x8] sm:$0xff]  ;;  %vm591_vm0 = vcmask 130048   ;;  %v5147_v53 = vld [vmem:[#allocation5 + $0x14c] sm:$0xf]  ;;  %v3565_v55 = vor.u32 %v5134_v45, %v3564_v41 }
  0x2d   :  { %623 = vmatpush.bf16.msra.mxu2 %v3633_v30  ;;  %673 = vmatpush.bf16.msrb.mxu3 %v3705_v38  ;;  %v5820_v52 = vpack.c.bf16 %v138_v51, %v138_v51  ;;  %v3638_v54 = vld [vmem:[#allocation5 + $0x168] sm:$0xf0]  ;;  %v3532_v57 = vld [vmem:[#allocation5 + $0x80] sm:$0xf]  ;;  %v3569_v59 = vor.u32 %v5130_v49, %v3566_v50  ;;  %v5122_v60 = vld [vmem:[#allocation5 + $0x84] sm:$0xf] }
  0x2e   :  { %v5126_v58 = vld [vmem:[#allocation5 + $0x9c] sm:$0xf0]  ;;  %v3572_v61 = vld [vmem:[#allocation5 + $0xc8] sm:$0xf]  ;;  %v3641_v63 = vor.u32 %v5147_v53, %v3638_v54  ;;  %v3534_v0 = vld [vmem:[#allocation5 + $0xa0] sm:$0xf0] }
  0x2f   :  { %v5135_v62 = vld [vmem:[#allocation5 + $0xe4] sm:$0xf0]  ;;  %3754 = vmatmul.msk.bf16.vlgmr.msra.gmra.mxu1 %vm591_vm0, %v5820_v52  ;;  %v5139_v1 = vld [vmem:[#allocation5 + $0x10c] sm:$0xf]  ;;  %3756 = vmatmul.msk.bf16.vlgmr.msra.gmra.mxu3 %vm591_vm0, %v5820_v52  ;;  %v3533_v3 = vor.u32 %v5126_v58, %v3532_v57  ;;  %v3500_v5 = vld [vmem:[#allocation5 + $0x40] sm:$0xf]  ;;  %v3537_v7 = vor.u32 %v5122_v60, %v3534_v0 }
  0x30   :  { %648 = vmatpush.bf16.msrb.mxu1 %v3669_v26  ;;  %598 = vmatpush.bf16.msra.mxu0 %v3597_v39  ;;  %v3606_v2 = vld [vmem:[#allocation5 + $0x128] sm:$0xf0]  ;;  %v3573_v4 = vor.u32 %v5135_v62, %v3572_v61  ;;  %v5118_v6 = vld [vmem:[#allocation5 + $0x5c] sm:$0xf0]  ;;  %v5114_v8 = vld [vmem:[#allocation5 + $0x44] sm:$0xf] }
  0x31   :  { %624 = vmatpush.bf16.msra.mxu2 %v3601_v44  ;;  %674 = vmatpush.bf16.msrb.mxu3 %v3673_v48  ;;  %v3540_v9 = vld [vmem:[#allocation5 + $0x88] sm:$0xf]  ;;  %v3609_v11 = vor.u32 %v5139_v1, %v3606_v2  ;;  %v3502_v12 = vld [vmem:[#allocation5 + $0x60] sm:$0xf0]  ;;  %v5131_v13 = vld [vmem:[#allocation5 + $0xcc] sm:$0xf]  ;;  %v3501_v15 = vor.u32 %v5118_v6, %v3500_v5 }
  0x32   :  { %v5127_v10 = vld [vmem:[#allocation5 + $0xa4] sm:$0xf0]  ;;  %v3574_v14 = vld [vmem:[#allocation5 + $0xe8] sm:$0xf0]  ;;  %v3468_v17 = vld [vmem:[#allocation5] sm:$0xf]  ;;  %v3505_v19 = vor.u32 %v5114_v8, %v3502_v12 }
  0x33   :  { %v3541_v16 = vor.u32 %v5127_v10, %v3540_v9  ;;  %v5110_v18 = vld [vmem:[#allocation5 + $0x1c] sm:$0xf0]  ;;  %v5106_v20 = vld [vmem:[#allocation5 + $0x4] sm:$0xf]  ;;  %v3508_v21 = vld [vmem:[#allocation5 + $0x48] sm:$0xf]  ;;  %v3577_v23 = vor.u32 %v5131_v13, %v3574_v14 }
  0x34   :  { %649 = vmatpush.bf16.msrb.mxu1 %v3637_v40  ;;  %599 = vmatpush.bf16.msra.mxu0 %v3565_v55  ;;  %v5119_v22 = vld [vmem:[#allocation5 + $0x64] sm:$0xf0]  ;;  %v3470_v24 = vld [vmem:[#allocation5 + $0x20] sm:$0xf0]  ;;  %v5123_v25 = vld [vmem:[#allocation5 + $0x8c] sm:$0xf]  ;;  %v3469_v30 = vor.u32 %v5110_v18, %v3468_v17 }
  0x35   :  { %625 = vmatpush.bf16.msra.mxu2 %v3569_v59  ;;  %675 = vmatpush.bf16.msrb.mxu3 %v3641_v63  ;;  %v3542_v26 = vld [vmem:[#allocation5 + $0xa8] sm:$0xf0]  ;;  %v3708_v27 = vld [vmem:[#allocation5 + $0x1d0] sm:$0xf]  ;;  %v5170_v29 = vld [vmem:[#allocation5 + $0x204] sm:$0xf]  ;;  %v3509_v31 = vor.u32 %v5119_v22, %v3508_v21  ;;  %v3473_v34 = vor.u32 %v5106_v20, %v3470_v24 }
  0x36   :  { %v5168_v28 = vld [vmem:[#allocation5 + $0x1ec] sm:$0xf0]  ;;  %v3726_v33 = vld [vmem:[#allocation5 + $0x220] sm:$0xf0]  ;;  %v3476_v35 = vld [vmem:[#allocation5 + $0x8] sm:$0xf]  ;;  %v3545_v37 = vor.u32 %v5123_v25, %v3542_v26 }
  0x37   :  { %v137_v32 = vld [vmem:[#allocation2] sm:$0xff]  ;;  %v5111_v36 = vld [vmem:[#allocation5 + $0x24] sm:$0xf0]  ;;  %v5115_v38 = vld [vmem:[#allocation5 + $0x4c] sm:$0xf]  ;;  %v3709_v39 = vor.u32 %v5168_v28, %v3708_v27  ;;  %v3729_v41 = vor.u32 %v5170_v29, %v3726_v33  ;;  %s5748_s26 = smov [#allocation14]  }
  0x38   :  { %650 = vmatpush.bf16.msrb.mxu1 %v3605_v56  ;;  %600 = vmatpush.bf16.msra.mxu0 %v3533_v3  ;;  %v3510_v40 = vld [vmem:[#allocation5 + $0x68] sm:$0xf0]  ;;  %v5826_v44 = vpack.c.bf16 %v137_v32, %v137_v32  ;;  %v3676_v45 = vld [vmem:[#allocation5 + $0x190] sm:$0xf]  ;;  %v3477_v48 = vor.u32 %v5111_v36, %v3476_v35  ;;  %v5172_v58 = vld [vmem:[#allocation5 + $0x214] sm:$0xf] }
  0x39   :  { %626 = vmatpush.bf16.msra.mxu2 %v3537_v7  ;;  %676 = vmatpush.bf16.msrb.mxu3 %v3609_v11  ;;  %v5171_v42 = vld [vmem:[#allocation5 + $0x20c] sm:$0xf]  ;;  %v5160_v46 = vld [vmem:[#allocation5 + $0x1ac] sm:$0xf0]  ;;  %v3513_v51 = vor.u32 %v5115_v38, %v3510_v40  ;;  %v3742_v59 = vld [vmem:[#allocation5 + $0x230] sm:$0xf0] }
  0x3a   :  { %v3734_v43 = vld [vmem:[#allocation5 + $0x228] sm:$0xf0]  ;;  %v3740_v47 = vld [vmem:[#allocation5 + $0x210] sm:$0xf]  ;;  %v3677_v55 = vor.u32 %v5160_v46, %v3676_v45  ;;  %v3716_v61 = vld [vmem:[#allocation5 + $0x1d8] sm:$0xf]  ;;  %v3745_v63 = vor.u32 %v5172_v58, %v3742_v59 }
  0x3b   :  { %v5176_v49 = vld [vmem:[#allocation5 + $0x22c] sm:$0xf0]  ;;  %v5107_v53 = vld [vmem:[#allocation5 + $0xc] sm:$0xf]  ;;  %v3737_v54 = vor.u32 %v5171_v42, %v3734_v43  ;;  %v5169_v62 = vld [vmem:[#allocation5 + $0x1f4] sm:$0xf0] }
  0x3c   :  { %651 = vmatpush.bf16.msrb.mxu1 %v3573_v4  ;;  %601 = vmatpush.bf16.msra.mxu0 %v3501_v15  ;;  %v3644_v50 = vld [vmem:[#allocation5 + $0x150] sm:$0xf]  ;;  %v3478_v56 = vld [vmem:[#allocation5 + $0x28] sm:$0xf0]  ;;  %v3741_v57 = vor.u32 %v5176_v49, %v3740_v47  ;;  %v3717_v3 = vor.u32 %v5169_v62, %v3716_v61  ;;  %v3684_v5 = vld [vmem:[#allocation5 + $0x198] sm:$0xf] }
  0x3d   :  { %627 = vmatpush.bf16.msra.mxu2 %v3505_v19  ;;  %677 = vmatpush.bf16.msrb.mxu3 %v3577_v23  ;;  %v5152_v60 = vld [vmem:[#allocation5 + $0x16c] sm:$0xf0]  ;;  %v3481_v0 = vor.u32 %v5107_v53, %v3478_v56  ;;  %v5161_v6 = vld [vmem:[#allocation5 + $0x1b4] sm:$0xf0]  ;;  %v5164_v13 = vld [vmem:[#allocation5 + $0x1d4] sm:$0xf] }
  0x3e   :  { %v3645_v1 = vor.u32 %v5152_v60, %v3644_v50  ;;  %v3612_v2 = vld [vmem:[#allocation5 + $0x110] sm:$0xf]  ;;  %v3685_v9 = vor.u32 %v5161_v6, %v3684_v5  ;;  %v3652_v11 = vld [vmem:[#allocation5 + $0x158] sm:$0xf]  ;;  %v3710_v14 = vld [vmem:[#allocation5 + $0x1f0] sm:$0xf0] }
  0x3f   :  { %v5144_v4 = vld [vmem:[#allocation5 + $0x12c] sm:$0xf0]  ;;  %v5153_v12 = vld [vmem:[#allocation5 + $0x174] sm:$0xf0]  ;;  %v3713_v21 = vor.u32 %v5164_v13, %v3710_v14  ;;  %v5156_v22 = vld [vmem:[#allocation5 + $0x194] sm:$0xf] }
  0x40   :  { %652 = vmatpush.bf16.msrb.mxu1 %v3541_v16  ;;  %602 = vmatpush.bf16.msra.mxu0 %v3469_v30  ;;  %v3613_v7 = vor.u32 %v5144_v4, %v3612_v2  ;;  %v3580_v8 = vld [vmem:[#allocation5 + $0xd0] sm:$0xf]  ;;  %v3653_v18 = vor.u32 %v5153_v12, %v3652_v11  ;;  %v3620_v19 = vld [vmem:[#allocation5 + $0x118] sm:$0xf]  ;;  %v3678_v23 = vld [vmem:[#allocation5 + $0x1b0] sm:$0xf0] }
  0x41   :  { %628 = vmatpush.bf16.msra.mxu2 %v3473_v34  ;;  %678 = vmatpush.bf16.msrb.mxu3 %v3545_v37  ;;  %v5136_v10 = vld [vmem:[#allocation5 + $0xec] sm:$0xf0]  ;;  %v5145_v20 = vld [vmem:[#allocation5 + $0x134] sm:$0xf0]  ;;  %v5165_v24 = vld [vmem:[#allocation5 + $0x1dc] sm:$0xf]  ;;  %v3681_v32 = vor.u32 %v5156_v22, %v3678_v23 }
  0x42   :  { %v3581_v15 = vor.u32 %v5136_v10, %v3580_v8  ;;  %v3548_v16 = vld [vmem:[#allocation5 + $0x90] sm:$0xf]  ;;  %v3718_v25 = vld [vmem:[#allocation5 + $0x1f8] sm:$0xf0]  ;;  %v3621_v28 = vor.u32 %v5145_v20, %v3620_v19  ;;  %v3588_v30 = vld [vmem:[#allocation5 + $0xd8] sm:$0xf] }
  0x43   :  { %603 = vmatmul.bf16.vlgmr.msra.gmra.mxu0 %v5826_v44  ;;  %v5128_v17 = vld [vmem:[#allocation5 + $0xac] sm:$0xf0]  ;;  %v3721_v33 = vor.u32 %v5165_v24, %v3718_v25  ;;  %v5148_v34 = vld [vmem:[#allocation5 + $0x154] sm:$0xf]  ;;  %v5157_v36 = vld [vmem:[#allocation5 + $0x19c] sm:$0xf] }
  0x44   :  { %653 = vmatpush.bf16.msrb.mxu1 %v3509_v31  ;;  %641 = vmatpush.bf16.msrb.mxu0 %v3729_v41  ;;  %v3549_v26 = vor.u32 %v5128_v17, %v3548_v16  ;;  %v3516_v27 = vld [vmem:[#allocation5 + $0x50] sm:$0xf]  ;;  %v5137_v31 = vld [vmem:[#allocation5 + $0xf4] sm:$0xf0]  ;;  %v3646_v35 = vld [vmem:[#allocation5 + $0x170] sm:$0xf0] }
  0x45   :  { %699 = vmatpush.bf16.msrb.mxu2 %v3709_v39  ;;  %679 = vmatpush.bf16.msrb.mxu3 %v3513_v51  ;;  %v5120_v29 = vld [vmem:[#allocation5 + $0x6c] sm:$0xf0]  ;;  %v3686_v37 = vld [vmem:[#allocation5 + $0x1b8] sm:$0xf0]  ;;  %v3589_v40 = vor.u32 %v5137_v31, %v3588_v30  ;;  %v3556_v42 = vld [vmem:[#allocation5 + $0x98] sm:$0xf]  ;;  %v3649_v45 = vor.u32 %v5148_v34, %v3646_v35 }
  0x46   :  { %629 = vmatmul.bf16.vlgmr.msra.gmra.mxu2 %v5826_v44  ;;  %v3517_v38 = vor.u32 %v5120_v29, %v3516_v27  ;;  %v3484_v39 = vld [vmem:[#allocation5 + $0x10] sm:$0xf]  ;;  %v5129_v43 = vld [vmem:[#allocation5 + $0xb4] sm:$0xf0]  ;;  %v3689_v46 = vor.u32 %v5157_v36, %v3686_v37  ;;  %v5140_v47 = vld [vmem:[#allocation5 + $0x114] sm:$0xf] }
  0x47   :  { %v5112_v41 = vld [vmem:[#allocation5 + $0x2c] sm:$0xf0]  ;;  %v5177_v49 = vld [vmem:[#allocation5 + $0x234] sm:$0xf0]  ;;  %v3614_v50 = vld [vmem:[#allocation5 + $0x130] sm:$0xf0] }
  0x48   :  { %654 = vmatpush.bf16.msrb.mxu1 %v3477_v48  ;;  %693 = vmatpush.bf16.msra.mxu0 %v3737_v54  ;;  %v3748_v48 = vld [vmem:[#allocation5 + $0x218] sm:$0xf]  ;;  %v5149_v51 = vld [vmem:[#allocation5 + $0x15c] sm:$0xf]  ;;  %v3485_v54 = vor.u32 %v5112_v41, %v3484_v39  ;;  %v3617_v59 = vor.u32 %v5140_v47, %v3614_v50  ;;  %v5132_v61 = vld [vmem:[#allocation5 + $0xd4] sm:$0xf] }
  0x49   :  { %700 = vmatpush.bf16.msrb.mxu2 %v3677_v55  ;;  %680 = vmatpush.bf16.msrb.mxu3 %v3481_v0  ;;  %v3654_v53 = vld [vmem:[#allocation5 + $0x178] sm:$0xf0]  ;;  %v3557_v55 = vor.u32 %v5129_v43, %v3556_v42  ;;  %v3524_v56 = vld [vmem:[#allocation5 + $0x58] sm:$0xf]  ;;  %v3749_v58 = vor.u32 %v5177_v49, %v3748_v48  ;;  %v3582_v62 = vld [vmem:[#allocation5 + $0xf0] sm:$0xf0] }
  0x4a   :  { %v3657_v60 = vor.u32 %v5149_v51, %v3654_v53  ;;  %v3622_v0 = vld [vmem:[#allocation5 + $0x138] sm:$0xf0]  ;;  %v3492_v2 = vld [vmem:[#allocation5 + $0x18] sm:$0xf]  ;;  %v3585_v4 = vor.u32 %v5132_v61, %v3582_v62  ;;  %v5124_v6 = vld [vmem:[#allocation5 + $0x94] sm:$0xf] }
  0x4b   :  { %655 = vmatmul.bf16.vlgmr.msrb.gmra.mxu1 %v5826_v44  ;;  %v5133_v8 = vld [vmem:[#allocation5 + $0xdc] sm:$0xf]  ;;  %v3876_v11 = vld [vmem:[#allocation8 + $0xe0] sm:$0xf]  ;;  %v5208_v12 = vld [vmem:[#allocation8 + $0xec] sm:$0xf0] }
  0x4c   :  { %719 = vmatpush.bf16.msra.mxu1 %v3741_v57  ;;  %681 = vmatmul.bf16.vlgmr.msrb.gmra.mxu3 %v5826_v44  ;;  %v5121_v57 = vld [vmem:[#allocation5 + $0x74] sm:$0xf0]  ;;  %v3860_v13 = vld [vmem:[#allocation8 + $0xc0] sm:$0xf]  ;;  %v5116_v16 = vld [vmem:[#allocation5 + $0x54] sm:$0xf] }
  0x4d   :  { %701 = vmatpush.bf16.msrb.mxu2 %v3645_v1  ;;  %751 = vmatpush.bf16.msra.mxu3 %v3717_v3  ;;  %v3525_v1 = vor.u32 %v5121_v57, %v3524_v56  ;;  %v5113_v3 = vld [vmem:[#allocation5 + $0x34] sm:$0xf0]  ;;  %v3518_v17 = vld [vmem:[#allocation5 + $0x70] sm:$0xf0]  ;;  %v5125_v20 = vld [vmem:[#allocation5 + $0x9c] sm:$0xf] }
  0x4e   :  { %v3493_v10 = vor.u32 %v5113_v3, %v3492_v2  ;;  %v5204_v19 = vld [vmem:[#allocation8 + $0xcc] sm:$0xf0]  ;;  %v4004_v22 = vld [vmem:[#allocation8 + $0x1e0] sm:$0xf]  ;;  %v3521_v29 = vor.u32 %v5116_v16, %v3518_v17  ;;  %v5108_v31 = vld [vmem:[#allocation5 + $0x14] sm:$0xf] }
  0x4f   :  { %v3861_v23 = vor.u32 %v5204_v19, %v3860_v13  ;;  %v5240_v24 = vld [vmem:[#allocation8 + $0x1ec] sm:$0xf0]  ;;  %v3844_v25 = vld [vmem:[#allocation8 + $0xa0] sm:$0xf]  ;;  %v5117_v34 = vld [vmem:[#allocation5 + $0x5c] sm:$0xf] }
  0x50   :  { %745 = vmatpush.bf16.msrb.mxu1 %v3745_v63  ;;  %v5141_v63 = vld [vmem:[#allocation5 + $0x11c] sm:$0xf]  ;;  %v4005_v27 = vor.u32 %v5240_v24, %v4004_v22  ;;  %v3828_v39 = vld [vmem:[#allocation8 + $0x80] sm:$0xf]  ;;  %v5196_v41 = vld [vmem:[#allocation8 + $0x8c] sm:$0xf0] }
  0x51   :  { %702 = vmatpush.bf16.msrb.mxu2 %v3613_v7  ;;  %752 = vmatpush.bf16.msra.mxu3 %v3685_v9  ;;  %v3625_v5 = vor.u32 %v5141_v63, %v3622_v0  ;;  %v3550_v7 = vld [vmem:[#allocation5 + $0xb0] sm:$0xf0]  ;;  %v3590_v9 = vld [vmem:[#allocation5 + $0xf8] sm:$0xf0]  ;;  %v3972_v42 = vld [vmem:[#allocation8 + $0x1a0] sm:$0xf]  ;;  %v3829_v53 = vor.u32 %v5196_v41, %v3828_v39 }
  0x52   :  { %v3553_v14 = vor.u32 %v5124_v6, %v3550_v7  ;;  %v3526_v35 = vld [vmem:[#allocation5 + $0x78] sm:$0xf0]  ;;  %v5232_v43 = vld [vmem:[#allocation8 + $0x1ac] sm:$0xf0]  ;;  %v4132_v50 = vld [vmem:[#allocation8 + $0x2e0] sm:$0xf] }
  0x53   :  { %3755 = vmatmul.msk.bf16.vlgmr.msrb.gmra.mxu0 %vm591_vm0, %v5820_v52  ;;  %v5173_v36 = vld [vmem:[#allocation5 + $0x21c] sm:$0xf]  ;;  %v5272_v51 = vld [vmem:[#allocation8 + $0x2ec] sm:$0xf0]  ;;  %v4260_v56 = vld [vmem:[#allocation8 + $0x3e0] sm:$0xf] }
  0x54   :  { %725 = vmatpush.bf16.msrb.mxu0 %v3713_v21  ;;  %v3558_v21 = vld [vmem:[#allocation5 + $0xb8] sm:$0xf0]  ;;  %v5304_v57 = vld [vmem:[#allocation8 + $0x3ec] sm:$0xf0]  ;;  %v4133_v62 = vor.u32 %v5272_v51, %v4132_v50  ;;  %v4116_v63 = vld [vmem:[#allocation8 + $0x2c0] sm:$0xf] }
  0x55   :  { %703 = vmatpush.bf16.msrb.mxu2 %v3581_v15  ;;  %753 = vmatpush.bf16.msra.mxu3 %v3653_v18  ;;  %v3593_v15 = vor.u32 %v5133_v8, %v3590_v9  ;;  %v3877_v18 = vor.u32 %v5208_v12, %v3876_v11  ;;  %v3561_v30 = vor.u32 %v5125_v20, %v3558_v21  ;;  %v3750_v37 = vld [vmem:[#allocation5 + $0x238] sm:$0xf0]  ;;  %v5268_v0 = vld [vmem:[#allocation8 + $0x2cc] sm:$0xf0]  ;;  %v3796_v3 = vld [vmem:[#allocation8 + $0x40] sm:$0xf] }
  0x56   :  { %v5109_v47 = vld [vmem:[#allocation5 + $0x1c] sm:$0xf]  ;;  %v3753_v49 = vor.u32 %v5173_v36, %v3750_v37  ;;  %v5300_v6 = vld [vmem:[#allocation8 + $0x3cc] sm:$0xf0]  ;;  %v3940_v8 = vld [vmem:[#allocation8 + $0x160] sm:$0xf] }
  0x57   :  { %v3494_v48 = vld [vmem:[#allocation5 + $0x38] sm:$0xf0]  ;;  %v5188_v7 = vld [vmem:[#allocation8 + $0x4c] sm:$0xf0]  ;;  %v4100_v11 = vld [vmem:[#allocation8 + $0x2a0] sm:$0xf] }
  0x58   :  { %726 = vmatpush.bf16.msrb.mxu0 %v3681_v32  ;;  %v5236_v32 = vld [vmem:[#allocation8 + $0x1cc] sm:$0xf0]  ;;  %v3497_v61 = vor.u32 %v5109_v47, %v3494_v48  ;;  %v3780_v16 = vld [vmem:[#allocation8 + $0x20] sm:$0xf]  ;;  %s3451_s27 = sshll.u32 %s5748_s26, 4  ;;  %s3453_s29 = sshll.u32 %s5980_s9, 4  ;;  %s3452_s27 = int_to_ptr.vmem [resolvable:$true] %s3451_s27  ;;  %s3454_s29 = int_to_ptr.hbm [resolvable:$true] %s3453_s29 }
  0x59   :  { %704 = vmatpush.bf16.msrb.mxu2 %v3549_v26  ;;  %754 = vmatpush.bf16.msra.mxu3 %v3621_v28  ;;  %v5200_v26 = vld [vmem:[#allocation8 + $0xac] sm:$0xf0]  ;;  %v3988_v28 = vld [vmem:[#allocation8 + $0x1c0] sm:$0xf] }
  0x5a   :  { %v5224_v9 = vld [vmem:[#allocation8 + $0x16c] sm:$0xf0]  ;;  %v4084_v19 = vld [vmem:[#allocation8 + $0x280] sm:$0xf] }
  0x5b   :  { %3758 = vmatmul.msk.bf16.vlgmr.msra.gmra.mxu1 %vm591_vm0, %v5820_v52  ;;  %v5264_v12 = vld [vmem:[#allocation8 + $0x2ac] sm:$0xf0]  ;;  %v3764_v22 = vld [vmem:[#allocation8] sm:$0xf] }
  0x5c   :  { %777 = vmatpush.bf16.msra.mxu1 %v3721_v33  ;;  %727 = vmatpush.bf16.msrb.mxu0 %v3649_v45  ;;  %v3486_v33 = vld [vmem:[#allocation5 + $0x30] sm:$0xf0]  ;;  %v5184_v17 = vld [vmem:[#allocation8 + $0x2c] sm:$0xf0]  ;;  %v4052_v36 = vld [vmem:[#allocation8 + $0x240] sm:$0xf] }
  0x5d   :  { %705 = vmatpush.bf16.msrb.mxu2 %v3517_v38  ;;  %755 = vmatpush.bf16.msra.mxu3 %v3589_v40  ;;  %v3845_v38 = vor.u32 %v5200_v26, %v3844_v25  ;;  %v3989_v40 = vor.u32 %v5236_v32, %v3988_v28  ;;  %v3489_v45 = vor.u32 %v5108_v31, %v3486_v33  ;;  %v5260_v20 = vld [vmem:[#allocation8 + $0x28c] sm:$0xf0]  ;;  %v4388_v25 = vld [vmem:[#allocation8 + $0x4e0] sm:$0xf] }
  0x5e   :  { %v3781_v21 = vor.u32 %v5184_v17, %v3780_v16  ;;  %v4085_v24 = vor.u32 %v5260_v20, %v4084_v19  ;;  %v5336_v26 = vld [vmem:[#allocation8 + $0x4ec] sm:$0xf0]  ;;  %v3924_v31 = vld [vmem:[#allocation8 + $0x140] sm:$0xf] }
  0x5f   :  { %v5256_v28 = vld [vmem:[#allocation8 + $0x26c] sm:$0xf0]  ;;  %v4372_v33 = vld [vmem:[#allocation8 + $0x4c0] sm:$0xf] }
  0x60   :  { %778 = vmatpush.bf16.msra.mxu1 %v3689_v46  ;;  %728 = vmatpush.bf16.msrb.mxu0 %v3617_v59  ;;  %v3529_v46 = vor.u32 %v5117_v34, %v3526_v35  ;;  %v3956_v59 = vld [vmem:[#allocation8 + $0x180] sm:$0xf]  ;;  %v5220_v32 = vld [vmem:[#allocation8 + $0x14c] sm:$0xf0] }
  0x61   :  { %706 = vmatpush.bf16.msrb.mxu2 %v3485_v54  ;;  %756 = vmatpush.bf16.msra.mxu3 %v3557_v55  ;;  %v3812_v54 = vld [vmem:[#allocation8 + $0x60] sm:$0xf]  ;;  %v3973_v55 = vor.u32 %v5232_v43, %v3972_v42  ;;  %v3925_v34 = vor.u32 %v5220_v32, %v3924_v31  ;;  %v5332_v35 = vld [vmem:[#allocation8 + $0x4cc] sm:$0xf0] }
  0x62   :  { %v5252_v37 = vld [vmem:[#allocation8 + $0x24c] sm:$0xf0]  ;;  %v3908_v42 = vld [vmem:[#allocation8 + $0x120] sm:$0xf] }
  0x63   :  { %3757 = vmatmul.msk.bf16.vlgmr.msra.gmra.mxu0 %vm591_vm0, %v5820_v52  ;;  %v4053_v39 = vor.u32 %v5252_v37, %v4052_v36  ;;  %v5296_v41 = vld [vmem:[#allocation8 + $0x3ac] sm:$0xf0]  ;;  %v4212_v51 = vld [vmem:[#allocation8 + $0x380] sm:$0xf] }
  0x64   :  { %779 = vmatpush.bf16.msra.mxu1 %v3657_v60  ;;  %707 = vmatmul.bf16.vlgmr.msrb.gmra.mxu2 %v5826_v44  ;;  %v5228_v60 = vld [vmem:[#allocation8 + $0x18c] sm:$0xf0]  ;;  %v4180_v16 = vld [vmem:[#allocation8 + $0x340] sm:$0xf] }
  0x65   :  { %771 = vmatpush.bf16.msra.mxu2 %v3749_v58  ;;  %757 = vmatpush.bf16.msra.mxu3 %v3525_v1  ;;  %v5192_v58 = vld [vmem:[#allocation8 + $0x6c] sm:$0xf0]  ;;  %v4261_v1 = vor.u32 %v5304_v57, %v4260_v56  ;;  %v3892_v56 = vld [vmem:[#allocation8 + $0x100] sm:$0xf] }
  0x66   :  { %729 = vmatpush.bf16.msrb.mxu0 %v3585_v4  ;;  %v3813_v2 = vor.u32 %v5192_v58, %v3812_v54  ;;  %v3957_v4 = vor.u32 %v5228_v60, %v3956_v59  ;;  %v5328_v47 = vld [vmem:[#allocation8 + $0x4ac] sm:$0xf0]  ;;  %v4340_v58 = vld [vmem:[#allocation8 + $0x480] sm:$0xf] }
  0x67   :  { %v5248_v50 = vld [vmem:[#allocation8 + $0x22c] sm:$0xf0]  ;;  %v4468_v36 = vld [vmem:[#allocation8 + $0x580] sm:$0xf] }
  0x68   :  { %780 = vmatpush.bf16.msra.mxu1 %v3625_v5  ;;  %v4244_v5 = vld [vmem:[#allocation8 + $0x3c0] sm:$0xf]  ;;  %v5292_v54 = vld [vmem:[#allocation8 + $0x38c] sm:$0xf0] }
  0x69   :  { %758 = vmatpush.bf16.msra.mxu3 %v3493_v10  ;;  %2365 = vmatpush.bf16.msrb.mxu2 %v3877_v18  ;;  %v4117_v10 = vor.u32 %v5268_v0, %v4116_v63  ;;  %v4245_v13 = vor.u32 %v5300_v6, %v4244_v5  ;;  %v4101_v18 = vor.u32 %v5264_v12, %v4100_v11  ;;  %v5212_v57 = vld [vmem:[#allocation8 + $0x10c] sm:$0xf0]  ;;  %v4644_v6 = vld [vmem:[#allocation8 + $0x6e0] sm:$0xf] }
  0x6a   :  { %730 = vmatpush.bf16.msrb.mxu0 %v3553_v14  ;;  %v3797_v14 = vor.u32 %v5188_v7, %v3796_v3  ;;  %v3893_v59 = vor.u32 %v5212_v57, %v3892_v56  ;;  %v5324_v60 = vld [vmem:[#allocation8 + $0x48c] sm:$0xf0] }
  0x6b   :  { %3759 = vmatmul.msk.bf16.vlgmr.msrb.gmra.mxu1 %vm591_vm0, %v5820_v52  ;;  %v4341_v63 = vor.u32 %v5324_v60, %v4340_v58  ;;  %v5288_v5 = vld [vmem:[#allocation8 + $0x36c] sm:$0xf0] }
  0x6c   :  { %781 = vmatpush.bf16.msra.mxu1 %v3593_v15  ;;  %759 = vmatmul.bf16.vlgmr.msra.gmra.mxu3 %v5826_v44  ;;  %v3941_v15 = vor.u32 %v5224_v9, %v3940_v8  ;;  %v5400_v8 = vld [vmem:[#allocation8 + $0x6ec] sm:$0xf0] }
  0x6d   :  { %2366 = vmatpush.bf16.msrb.mxu2 %v3861_v23  ;;  %2378 = vmatpush.bf16.msrb.mxu3 %v4005_v27  ;;  %v5180_v23 = vld [vmem:[#allocation8 + $0xc] sm:$0xf0]  ;;  %v4068_v27 = vld [vmem:[#allocation8 + $0x260] sm:$0xf]  ;;  %v4645_v9 = vor.u32 %v5400_v8, %v4644_v6 }
  0x6e   :  { %731 = vmatpush.bf16.msrb.mxu0 %v3521_v29  ;;  %v4389_v29 = vor.u32 %v5336_v26, %v4388_v25  ;;  %v5320_v11 = vld [vmem:[#allocation8 + $0x46c] sm:$0xf0]  ;;  %v4484_v25 = vld [vmem:[#allocation8 + $0x5a0] sm:$0xf] }
  0x6f   :  { %v5284_v17 = vld [vmem:[#allocation8 + $0x34c] sm:$0xf0]  ;;  %v4420_v8 = vld [vmem:[#allocation8 + $0x520] sm:$0xf] }
  0x70   :  { %782 = vmatpush.bf16.msra.mxu1 %v3561_v30  ;;  %v4069_v30 = vor.u32 %v5256_v28, %v4068_v27  ;;  %v4181_v19 = vor.u32 %v5284_v17, %v4180_v16  ;;  %v5396_v20 = vld [vmem:[#allocation8 + $0x6cc] sm:$0xf0]  ;;  %v4164_v28 = vld [vmem:[#allocation8 + $0x320] sm:$0xf] }
  0x71   :  { %2367 = vmatpush.bf16.msrb.mxu2 %v3845_v38  ;;  %2379 = vmatpush.bf16.msrb.mxu3 %v3989_v40  ;;  %v4373_v38 = vor.u32 %v5332_v35, %v4372_v33  ;;  %v4228_v40 = vld [vmem:[#allocation8 + $0x3a0] sm:$0xf]  ;;  %v5360_v26 = vld [vmem:[#allocation8 + $0x5ac] sm:$0xf0] }
  0x72   :  { %732 = vmatpush.bf16.msrb.mxu0 %v3489_v45  ;;  %v4229_v43 = vor.u32 %v5296_v41, %v4228_v40  ;;  %v5216_v45 = vld [vmem:[#allocation8 + $0x12c] sm:$0xf0]  ;;  %v4485_v27 = vor.u32 %v5360_v26, %v4484_v25  ;;  %v4292_v33 = vld [vmem:[#allocation8 + $0x420] sm:$0xf] }
  0x73   :  { %v5392_v31 = vld [vmem:[#allocation8 + $0x6ac] sm:$0xf0]  ;;  %v4596_v41 = vld [vmem:[#allocation8 + $0x680] sm:$0xf] }
  0x74   :  { %783 = vmatpush.bf16.msra.mxu1 %v3529_v46  ;;  %3760 = vmatmul.msk.bf16.vlgmr.msra.gmra.mxu2 %vm591_vm0, %v5820_v52  ;;  %v4356_v46 = vld [vmem:[#allocation8 + $0x4a0] sm:$0xf]  ;;  %v5356_v37 = vld [vmem:[#allocation8 + $0x58c] sm:$0xf0] }
  0x75   :  { %2368 = vmatpush.bf16.msrb.mxu2 %v3829_v53  ;;  %2380 = vmatpush.bf16.msrb.mxu3 %v3973_v55  ;;  %v4357_v48 = vor.u32 %v5328_v47, %v4356_v46  ;;  %v4213_v55 = vor.u32 %v5292_v54, %v4212_v51  ;;  %v5276_v40 = vld [vmem:[#allocation8 + $0x30c] sm:$0xf0]  ;;  %v4452_v51 = vld [vmem:[#allocation8 + $0x560] sm:$0xf] }
  0x76   :  { %797 = vmatpush.bf16.msra.mxu0 %v3753_v49  ;;  %v4036_v49 = vld [vmem:[#allocation8 + $0x220] sm:$0xf]  ;;  %v5432_v46 = vld [vmem:[#allocation8 + $0x7ec] sm:$0xf0] }
  0x77   :  { %733 = vmatmul.bf16.vlgmr.msrb.gmra.mxu0 %v5826_v44  ;;  %v4037_v53 = vor.u32 %v5248_v50, %v4036_v49  ;;  %v5308_v49 = vld [vmem:[#allocation8 + $0x40c] sm:$0xf0]  ;;  %v4708_v25 = vld [vmem:[#allocation8 + $0x760] sm:$0xf] }
  0x78   :  { %784 = vmatpush.bf16.msra.mxu1 %v3497_v61  ;;  %v4020_v61 = vld [vmem:[#allocation8 + $0x200] sm:$0xf]  ;;  %v5384_v56 = vld [vmem:[#allocation8 + $0x66c] sm:$0xf0] }
  0x79   :  { %2369 = vmatpush.bf16.msrb.mxu2 %v3813_v2  ;;  %2381 = vmatpush.bf16.msrb.mxu3 %v3957_v4  ;;  %v5368_v2 = vld [vmem:[#allocation8 + $0x5ec] sm:$0xf0]  ;;  %v4196_v4 = vld [vmem:[#allocation8 + $0x360] sm:$0xf] }
  0x7a   :  { %2391 = vmatpush.bf16.msrb.mxu0 %v4133_v62  ;;  %v5244_v62 = vld [vmem:[#allocation8 + $0x20c] sm:$0xf0]  ;;  %v4197_v7 = vor.u32 %v5288_v5, %v4196_v4  ;;  %v4740_v4 = vld [vmem:[#allocation8 + $0x7a0] sm:$0xf] }
  0x7b   :  { %785 = vmatmul.bf16.vlgmr.msra.gmra.mxu1 %v5826_v44  ;;  %v3765_v44 = vor.u32 %v5180_v23, %v3764_v22  ;;  %v4021_v0 = vor.u32 %v5244_v62, %v4020_v61  ;;  %v4308_v22 = vld [vmem:[#allocation8 + $0x440] sm:$0xf]  ;;  %v5316_v23 = vld [vmem:[#allocation8 + $0x44c] sm:$0xf0] }
  0x7c   :  { %2404 = vmatpush.bf16.msrb.mxu1 %v4261_v1  ;;  %v4516_v1 = vld [vmem:[#allocation8 + $0x5e0] sm:$0xf]  ;;  %v5428_v60 = vld [vmem:[#allocation8 + $0x7cc] sm:$0xf0] }
  0x7d   :  { %2370 = vmatpush.bf16.msrb.mxu2 %v3797_v14  ;;  %2382 = vmatpush.bf16.msrb.mxu3 %v3941_v15  ;;  %v4517_v3 = vor.u32 %v5368_v2, %v4516_v1  ;;  %v5364_v14 = vld [vmem:[#allocation8 + $0x5cc] sm:$0xf0]  ;;  %v4436_v62 = vld [vmem:[#allocation8 + $0x540] sm:$0xf] }
  0x7e   :  { %2392 = vmatpush.bf16.msrb.mxu0 %v4117_v10  ;;  %v4324_v10 = vld [vmem:[#allocation8 + $0x460] sm:$0xf]  ;;  %v5380_v2 = vld [vmem:[#allocation8 + $0x64c] sm:$0xf0] }
  0x7f   :  { %v4325_v12 = vor.u32 %v5320_v11, %v4324_v10  ;;  %v4564_v1 = vld [vmem:[#allocation8 + $0x640] sm:$0xf]  ;;  %v5424_v5 = vld [vmem:[#allocation8 + $0x7ac] sm:$0xf0] }
  0x80   :  { %2405 = vmatpush.bf16.msrb.mxu1 %v4245_v13  ;;  %v4500_v13 = vld [vmem:[#allocation8 + $0x5c0] sm:$0xf]  ;;  %v4741_v6 = vor.u32 %v5424_v5, %v4740_v4  ;;  %v5420_v16 = vld [vmem:[#allocation8 + $0x78c] sm:$0xf0]  ;;  %v5194_v5 = vld [vmem:[#allocation8 + $0x84] sm:$0xf] }
  0x81   :  { %2371 = vmatpush.bf16.msrb.mxu2 %v3781_v21  ;;  %2383 = vmatpush.bf16.msrb.mxu3 %v3925_v34  ;;  %v4501_v15 = vor.u32 %v5364_v14, %v4500_v13  ;;  %v5312_v34 = vld [vmem:[#allocation8 + $0x42c] sm:$0xf0]  ;;  %v4548_v11 = vld [vmem:[#allocation8 + $0x620] sm:$0xf] }
  0x82   :  { %2393 = vmatpush.bf16.msrb.mxu0 %v4101_v18  ;;  %v4628_v18 = vld [vmem:[#allocation8 + $0x6c0] sm:$0xf]  ;;  %v4293_v35 = vor.u32 %v5312_v34, %v4292_v33  ;;  %v5416_v26 = vld [vmem:[#allocation8 + $0x76c] sm:$0xf0] }
  0x83   :  { %v4629_v21 = vor.u32 %v5396_v20, %v4628_v18  ;;  %v4404_v18 = vld [vmem:[#allocation8 + $0x500] sm:$0xf] }
  0x84   :  { %2406 = vmatpush.bf16.msrb.mxu1 %v4229_v43  ;;  %v5388_v43 = vld [vmem:[#allocation8 + $0x68c] sm:$0xf0] }
  0x85   :  { %2372 = vmatpush.bf16.msrb.mxu2 %v3765_v44  ;;  %v5280_v44 = vld [vmem:[#allocation8 + $0x32c] sm:$0xf0]  ;;  %v4597_v47 = vor.u32 %v5388_v43, %v4596_v41 }
  0x86   :  { %2394 = vmatpush.bf16.msrb.mxu0 %v4085_v24  ;;  %v4309_v24 = vor.u32 %v5316_v23, %v4308_v22  ;;  %v5848_v22 = vld [vmem:[#allocation7] sm:$0xff]  ;;  %v5372_v23 = vld [vmem:[#allocation8 + $0x60c] sm:$0xf0] }
  0x87   :  { %3761 = vmatmul.msk.bf16.vlgmr.msra.gmra.mxu0 %vm591_vm0, %v5820_v52  ;;  %v3909_v52 = vor.u32 %v5216_v45, %v3908_v42  ;;  %v4772_v45 = vld [vmem:[#allocation8 + $0x7e0] sm:$0xf]  ;;  %v217_v34 = vperm.slane %v5848_v22, 2 }
  0x88   :  { %2407 = vmatpush.bf16.msrb.mxu1 %v4213_v55  ;;  %v4580_v55 = vld [vmem:[#allocation8 + $0x660] sm:$0xf] }
  0x89   :  { %2417 = vmatpush.bf16.msra.mxu2 %v4389_v29  ;;  %2384 = vmatpush.bf16.msrb.mxu3 %v3909_v52  ;;  %v4165_v29 = vor.u32 %v5280_v44, %v4164_v28  ;;  %v4773_v52 = vor.u32 %v5432_v46, %v4772_v45  ;;  %v4581_v58 = vor.u32 %v5384_v56, %v4580_v55  ;;  %v215_v28 = vperm.slane %v5848_v22, 0  ;;  %v5202_v46 = vld [vmem:[#allocation8 + $0xc4] sm:$0xf] }
  0x8a   :  { %2395 = vmatpush.bf16.msrb.mxu0 %v4069_v30  ;;  %v4612_v30 = vld [vmem:[#allocation8 + $0x6a0] sm:$0xf] }
  0x8b   :  { %v4613_v32 = vor.u32 %v5392_v31, %v4612_v30  ;;  %v5412_v30 = vld [vmem:[#allocation8 + $0x74c] sm:$0xf0] }
  0x8c   :  { %2408 = vmatpush.bf16.msrb.mxu1 %v4197_v7 }
  0x8d   :  { %2418 = vmatpush.bf16.msra.mxu2 %v4373_v38  ;;  %2385 = vmatpush.bf16.msrb.mxu3 %v3893_v59  ;;  %v4469_v38 = vor.u32 %v5356_v37, %v4468_v36  ;;  %v4756_v59 = vld [vmem:[#allocation8 + $0x7c0] sm:$0xf]  ;;  %v3878_v37 = vld [vmem:[#allocation8 + $0xf0] sm:$0xf0] }
  0x8e   :  { %2396 = vmatpush.bf16.msrb.mxu0 %v4053_v39  ;;  %v4148_v39 = vld [vmem:[#allocation8 + $0x300] sm:$0xf]  ;;  %v4757_v61 = vor.u32 %v5428_v60, %v4756_v59  ;;  %v5198_v60 = vld [vmem:[#allocation8 + $0xa4] sm:$0xf] }
  0x8f   :  { %v4149_v42 = vor.u32 %v5276_v40, %v4148_v39  ;;  %v5408_v39 = vld [vmem:[#allocation8 + $0x72c] sm:$0xf0] }
  0x90   :  { %2409 = vmatpush.bf16.msrb.mxu1 %v4181_v19  ;;  %v5340_v19 = vld [vmem:[#allocation8 + $0x50c] sm:$0xf0] }
  0x91   :  { %2419 = vmatpush.bf16.msra.mxu2 %v4357_v48  ;;  %2430 = vmatpush.bf16.msra.mxu3 %v4517_v3  ;;  %v4276_v48 = vld [vmem:[#allocation8 + $0x400] sm:$0xf]  ;;  %v4565_v3 = vor.u32 %v5380_v2, %v4564_v1  ;;  %v4405_v20 = vor.u32 %v5340_v19, %v4404_v18  ;;  %v4118_v1 = vld [vmem:[#allocation8 + $0x2d0] sm:$0xf0] }
  0x92   :  { %2397 = vmatpush.bf16.msrb.mxu0 %v4037_v53  ;;  %v4277_v50 = vor.u32 %v5308_v49, %v4276_v48  ;;  %v5352_v53 = vld [vmem:[#allocation8 + $0x56c] sm:$0xf0]  ;;  %v3814_v18 = vld [vmem:[#allocation8 + $0x70] sm:$0xf0] }
  0x93   :  { %v4453_v54 = vor.u32 %v5352_v53, %v4452_v51  ;;  %v4134_v51 = vld [vmem:[#allocation8 + $0x2f0] sm:$0xf0]  ;;  %v4660_v53 = vld [vmem:[#allocation8 + $0x700] sm:$0xf] }
  0x94   :  { %2410 = vmatpush.bf16.msrb.mxu1 %v4165_v29  ;;  %v4692_v29 = vld [vmem:[#allocation8 + $0x740] sm:$0xf] }
  0x95   :  { %2420 = vmatpush.bf16.msra.mxu2 %v4341_v63  ;;  %2431 = vmatpush.bf16.msra.mxu3 %v4501_v15  ;;  %v5348_v63 = vld [vmem:[#allocation8 + $0x54c] sm:$0xf0]  ;;  %v4724_v15 = vld [vmem:[#allocation8 + $0x780] sm:$0xf] }
  0x96   :  { %2398 = vmatpush.bf16.msrb.mxu0 %v4021_v0  ;;  %v4437_v0 = vor.u32 %v5348_v63, %v4436_v62  ;;  %v4725_v17 = vor.u32 %v5420_v16, %v4724_v15  ;;  %v3846_v63 = vld [vmem:[#allocation8 + $0xb0] sm:$0xf0] }
  0x97   :  { %v3849_v4 = vor.u32 %v5198_v60, %v3846_v63  ;;  %v4006_v15 = vld [vmem:[#allocation8 + $0x1f0] sm:$0xf0]  ;;  %v219_v60 = vperm.slane %v5848_v22, 4  ;;  %v5302_v63 = vld [vmem:[#allocation8 + $0x3e4] sm:$0xf] }
  0x98   :  { %2411 = vmatpush.bf16.msrb.mxu1 %v4149_v42 }
  0x99   :  { %2421 = vmatpush.bf16.msra.mxu2 %v4325_v12  ;;  %2432 = vmatpush.bf16.msra.mxu3 %v4485_v27  ;;  %v5376_v12 = vld [vmem:[#allocation8 + $0x62c] sm:$0xf0]  ;;  %v4709_v27 = vor.u32 %v5416_v26, %v4708_v25 }
  0x9a   :  { %2443 = vmatpush.bf16.msra.mxu0 %v4645_v9  ;;  %v5344_v9 = vld [vmem:[#allocation8 + $0x52c] sm:$0xf0]  ;;  %v4549_v14 = vor.u32 %v5376_v12, %v4548_v11  ;;  %v4102_v11 = vld [vmem:[#allocation8 + $0x2b0] sm:$0xf0] }
  0x9b   :  { %v4421_v10 = vor.u32 %v5344_v9, %v4420_v8  ;;  %v3830_v9 = vld [vmem:[#allocation8 + $0x90] sm:$0xf0] }
  0x9c   :  { %2456 = vmatpush.bf16.msra.mxu1 %v4773_v52  ;;  %v5270_v52 = vld [vmem:[#allocation8 + $0x2e4] sm:$0xf]  ;;  %v3833_v16 = vor.u32 %v5194_v5, %v3830_v9 }
  0x9d   :  { %2422 = vmatpush.bf16.msra.mxu2 %v4309_v24  ;;  %2433 = vmatpush.bf16.msra.mxu3 %v4469_v38  ;;  %v4676_v38 = vld [vmem:[#allocation8 + $0x720] sm:$0xf] }
  0x9e   :  { %2444 = vmatpush.bf16.msra.mxu0 %v4629_v21  ;;  %v4532_v21 = vld [vmem:[#allocation8 + $0x600] sm:$0xf]  ;;  %v4677_v41 = vor.u32 %v5408_v39, %v4676_v38  ;;  %v5230_v38 = vld [vmem:[#allocation8 + $0x1a4] sm:$0xf]  ;;  %v3974_v39 = vld [vmem:[#allocation8 + $0x1b0] sm:$0xf0] }
  0x9f   :  { %v4533_v24 = vor.u32 %v5372_v23, %v4532_v21  ;;  %v5258_v21 = vld [vmem:[#allocation8 + $0x284] sm:$0xf]  ;;  %v4086_v23 = vld [vmem:[#allocation8 + $0x290] sm:$0xf0] }
  0xa0   :  { %2457 = vmatpush.bf16.msra.mxu1 %v4757_v61  ;;  %v4137_v61 = vor.u32 %v5270_v52, %v4134_v51  ;;  %v3977_v52 = vor.u32 %v5230_v38, %v3974_v39  ;;  %v3958_v51 = vld [vmem:[#allocation8 + $0x190] sm:$0xf0]  ;;  %v220_v38 = vperm.slane %v5848_v22, 5  ;;  %v221_v39 = vperm.slane %v5848_v22, 6 }
  0xa1   :  { %2423 = vmatpush.bf16.msra.mxu2 %v4293_v35  ;;  %2434 = vmatpush.bf16.msra.mxu3 %v4453_v54  ;;  %v5206_v35 = vld [vmem:[#allocation8 + $0xe4] sm:$0xf]  ;;  %v5404_v54 = vld [vmem:[#allocation8 + $0x70c] sm:$0xf0] }
  0xa2   :  { %2445 = vmatpush.bf16.msra.mxu0 %v4613_v32  ;;  %v4693_v32 = vor.u32 %v5412_v30, %v4692_v29  ;;  %v3881_v45 = vor.u32 %v5206_v35, %v3878_v37  ;;  %v4661_v56 = vor.u32 %v5404_v54, %v4660_v53  ;;  %v5186_v29 = vld [vmem:[#allocation8 + $0x44] sm:$0xf]  ;;  %v4089_v30 = vor.u32 %v5258_v21, %v4086_v23  ;;  %v4390_v23 = vld [vmem:[#allocation8 + $0x4f0] sm:$0xf0] }
  0xa3   :  { %v218_v37 = vperm.slane %v5848_v22, 3  ;;  %v5178_v54 = vld [vmem:[#allocation8 + $0x4] sm:$0xf] }
  0xa4   :  { %2458 = vmatpush.bf16.msra.mxu1 %v4741_v6  ;;  %v5334_v21 = vld [vmem:[#allocation8 + $0x4e4] sm:$0xf] }
  0xa5   :  { %2424 = vmatpush.bf16.msra.mxu2 %v4277_v50  ;;  %2435 = vmatpush.bf16.msra.mxu3 %v4437_v0  ;;  %v5266_v0 = vld [vmem:[#allocation8 + $0x2c4] sm:$0xf] }
  0xa6   :  { %2446 = vmatpush.bf16.msra.mxu0 %v4597_v47  ;;  %v3862_v47 = vld [vmem:[#allocation8 + $0xd0] sm:$0xf0]  ;;  %v4121_v6 = vor.u32 %v5266_v0, %v4118_v1 }
  0xa7   :  { %v3865_v59 = vor.u32 %v5202_v46, %v3862_v47  ;;  %v4054_v46 = vld [vmem:[#allocation8 + $0x250] sm:$0xf0] }
  0xa8   :  { %2459 = vmatpush.bf16.msra.mxu1 %v4725_v17  ;;  %v5190_v17 = vld [vmem:[#allocation8 + $0x64] sm:$0xf]  ;;  %v4262_v1 = vld [vmem:[#allocation8 + $0x3f0] sm:$0xf0] }
  0xa9   :  { %2436 = vmatpush.bf16.msra.mxu3 %v4421_v10  ;;  %v5262_v10 = vld [vmem:[#allocation8 + $0x2a4] sm:$0xf] }
  0xaa   :  { %2447 = vmatpush.bf16.msra.mxu0 %v4581_v58  ;;  %v216_v58 = vperm.slane %v5848_v22, 1  ;;  %v4105_v19 = vor.u32 %v5262_v10, %v4102_v11  ;;  %v4265_v11 = vor.u32 %v5302_v63, %v4262_v1  ;;  %v4342_v63 = vld [vmem:[#allocation8 + $0x490] sm:$0xf0] }
  0xab   :  { %v4518_v1 = vld [vmem:[#allocation8 + $0x5f0] sm:$0xf0] }
  0xac   :  { %v617_v57 = vpop.f32.mrf.mxu1  ;;  %2460 = vmatpush.bf16.msra.mxu1 %v4709_v27  ;;  %v5234_v27 = vld [vmem:[#allocation8 + $0x1c4] sm:$0xf] }
  0xad   :  { %2437 = vmatpush.bf16.msra.mxu3 %v4405_v20 }
  0xae   :  { %2448 = vmatpush.bf16.msra.mxu0 %v4565_v3 }
  0xb0   :  { %2461 = vmatpush.bf16.msra.mxu1 %v4693_v32  ;;  %v3798_v32 = vld [vmem:[#allocation8 + $0x50] sm:$0xf0] }
  0xb2   :  { %v669_v7 = vpop.f32.mrf.mxu3  ;;  %2449 = vmatpush.bf16.msra.mxu0 %v4549_v14  ;;  %v5238_v14 = vld [vmem:[#allocation8 + $0x1e4] sm:$0xf] }
  0xb3   :  { %v4009_v25 = vor.u32 %v5238_v14, %v4006_v15 }
  0xb4   :  { %v619_v13 = vpop.f32.mrf.mxu1  ;;  %2462 = vmatpush.bf16.msra.mxu1 %v4677_v41  ;;  %v5182_v41 = vld [vmem:[#allocation8 + $0x24] sm:$0xf] }
  0xb6   :  { %2450 = vmatpush.bf16.msra.mxu0 %v4533_v24 }
  0xb8   :  { %2463 = vmatpush.bf16.msra.mxu1 %v4661_v56  ;;  %v3766_v56 = vld [vmem:[#allocation8 + $0x10] sm:$0xf0] }
  0xba   :  { %v671_v44 = vpop.f32.mrf.mxu3 }
  0xbb   :  { %v3817_v44 = vor.u32 %v5190_v17, %v3814_v18  ;;  %v5218_v17 = vld [vmem:[#allocation8 + $0x144] sm:$0xf]  ;;  %v3926_v18 = vld [vmem:[#allocation8 + $0x150] sm:$0xf0] }
  0xc0   :  { %v604_v31 = vpop.f32.mrf.mxu0 }
  0xc1   :  { %v605_v33 = vadd.f32 %v604_v31, %v215_v28  ;;  %v3990_v28 = vld [vmem:[#allocation8 + $0x1d0] sm:$0xf0] }
  0xc3   :  { %v618_v36 = vadd.f32 %v617_v57, %v605_v33  ;;  %v5254_v33 = vld [vmem:[#allocation8 + $0x264] sm:$0xf] }
  0xc5   :  { %v803_v42 = vmax.f32 %v618_v36, 0.0  ;;  %v3993_v36 = vor.u32 %v5234_v27, %v3990_v28  ;;  %v3929_v28 = vor.u32 %v5218_v17, %v3926_v18 }
  0xc7   :  { %v5852_v48 = vpack.c.bf16 %v803_v42, %v803_v42 }
  0xc8   :  { %v656_v40 = vpop.f32.mrf.mxu1  ;;  %v606_v55 = vpop.f32.mrf.mxu0 }
  0xc9   :  { %v657_v43 = vadd.f32 %v656_v40, %v217_v34  ;;  %v630_v50 = vpop.f32.mrf.mxu2  ;;  %2373 = vmatmul.bf16.vlgmr.msrb.gmra.mxu2 %v5852_v48  ;;  %v4070_v34 = vld [vmem:[#allocation8 + $0x270] sm:$0xf0]  ;;  %v3801_v40 = vor.u32 %v5186_v29, %v3798_v32 }
  0xca   :  { %2469 = vmatpush.bf16.msrb.mxu2 %v3881_v45  ;;  %v631_v3 = vadd.f32 %v630_v50, %v216_v58  ;;  %v4073_v42 = vor.u32 %v5254_v33, %v4070_v34  ;;  %v5250_v45 = vld [vmem:[#allocation8 + $0x244] sm:$0xf]  ;;  %v4038_v58 = vld [vmem:[#allocation8 + $0x230] sm:$0xf0]  ;;  %v4393_v33 = vor.u32 %v5334_v21, %v4390_v23  ;;  %v222_v21 = vperm.slane %v5848_v22, 7 }
  0xcb   :  { %v670_v49 = vadd.f32 %v669_v7, %v657_v43  ;;  %v3782_v43 = vld [vmem:[#allocation8 + $0x30] sm:$0xf0]  ;;  %v5226_v50 = vld [vmem:[#allocation8 + $0x184] sm:$0xf]  ;;  %v4057_v55 = vor.u32 %v5250_v45, %v4054_v46 }
  0xcc   :  { %v3785_v53 = vor.u32 %v5182_v41, %v3782_v43  ;;  %v4230_v29 = vld [vmem:[#allocation8 + $0x3b0] sm:$0xf0]  ;;  %v5210_v46 = vld [vmem:[#allocation8 + $0x104] sm:$0xf] }
  0xcd   :  { %v805_v57 = vmax.f32 %v670_v49, 0.0  ;;  %v3910_v32 = vld [vmem:[#allocation8 + $0x130] sm:$0xf0] }
  0xce   :  { %2470 = vmatpush.bf16.msrb.mxu2 %v3865_v59  ;;  %v4214_v45 = vld [vmem:[#allocation8 + $0x390] sm:$0xf0] }
  0xcf   :  { %v5856_v62 = vpack.c.bf16 %v805_v57, %v805_v57  ;;  %v682_v8 = vpop.f32.mrf.mxu3  ;;  %v5246_v57 = vld [vmem:[#allocation8 + $0x224] sm:$0xf]  ;;  %v4310_v22 = vld [vmem:[#allocation8 + $0x450] sm:$0xf0] }
  0xd0   :  { %v658_v2 = vpop.f32.mrf.mxu1  ;;  %v643_v12 = vpop.f32.mrf.mxu0  ;;  %v683_v49 = vadd.f32 %v682_v8, %v218_v37  ;;  %v4041_v5 = vor.u32 %v5246_v57, %v4038_v58  ;;  %v4022_v8 = vld [vmem:[#allocation8 + $0x210] sm:$0xf0]  ;;  %v5286_v57 = vld [vmem:[#allocation8 + $0x364] sm:$0xf] }
  0xd1   :  { %2399 = vmatmul.bf16.vlgmr.msrb.gmra.mxu0 %v5856_v62  ;;  %v632_v7 = vpop.f32.mrf.mxu2  ;;  %v644_v13 = vadd.f32 %v643_v12, %v631_v3  ;;  %v5222_v2 = vld [vmem:[#allocation8 + $0x164] sm:$0xf]  ;;  %v3942_v3 = vld [vmem:[#allocation8 + $0x170] sm:$0xf0] }
  0xd2   :  { %2495 = vmatpush.bf16.msrb.mxu0 %v4137_v61  ;;  %2471 = vmatpush.bf16.msrb.mxu2 %v3849_v4  ;;  %v3961_v61 = vor.u32 %v5226_v50, %v3958_v51  ;;  %v3769_v4 = vor.u32 %v5178_v54, %v3766_v56  ;;  %v5242_v7 = vld [vmem:[#allocation8 + $0x204] sm:$0xf]  ;;  %v3945_v12 = vor.u32 %v5222_v2, %v3942_v3  ;;  %v4358_v50 = vld [vmem:[#allocation8 + $0x4b0] sm:$0xf0] }
  0xd3   :  { %v804_v20 = vmax.f32 %v644_v13, 0.0  ;;  %v5298_v13 = vld [vmem:[#allocation8 + $0x3c4] sm:$0xf]  ;;  %v4198_v58 = vld [vmem:[#allocation8 + $0x370] sm:$0xf0] }
  0xd5   :  { %v5861_v26 = vpack.c.bf16 %v804_v20, %v804_v20 }
  0xd6   :  { %2496 = vmatpush.bf16.msrb.mxu0 %v4121_v6  ;;  %2472 = vmatpush.bf16.msrb.mxu2 %v3833_v16  ;;  %v4246_v16 = vld [vmem:[#allocation8 + $0x3d0] sm:$0xf0] }
  0xd7   :  { %2386 = vmatmul.bf16.vlgmr.msrb.gmra.mxu3 %v5861_v26  ;;  %v684_v31 = vpop.f32.mrf.mxu3  ;;  %v4249_v27 = vor.u32 %v5298_v13, %v4246_v16  ;;  %v5318_v16 = vld [vmem:[#allocation8 + $0x464] sm:$0xf] }
  0xd8   :  { %v5859_v24 = vpop.f32.mrf.mxu1  ;;  %v645_v35 = vpop.f32.mrf.mxu0  ;;  %2482 = vmatpush.bf16.msrb.mxu3 %v4009_v25  ;;  %v5214_v31 = vld [vmem:[#allocation8 + $0x124] sm:$0xf] }
  0xd9   :  { %v5330_v35 = vld [vmem:[#allocation8 + $0x4c4] sm:$0xf]  ;;  %v3913_v41 = vor.u32 %v5214_v31, %v3910_v32  ;;  %v4166_v31 = vld [vmem:[#allocation8 + $0x330] sm:$0xf0] }
  0xda   :  { %2497 = vmatpush.bf16.msrb.mxu0 %v4105_v19  ;;  %2473 = vmatpush.bf16.msrb.mxu2 %v3817_v44  ;;  %v4025_v19 = vor.u32 %v5242_v7, %v4022_v8  ;;  %v5294_v44 = vld [vmem:[#allocation8 + $0x3a4] sm:$0xf] }
  0xdc   :  { %2483 = vmatpush.bf16.msrb.mxu3 %v3993_v36 }
  0xde   :  { %2498 = vmatpush.bf16.msrb.mxu0 %v4089_v30  ;;  %2474 = vmatpush.bf16.msrb.mxu2 %v3801_v40  ;;  %v4233_v40 = vor.u32 %v5294_v44, %v4230_v29  ;;  %v4630_v29 = vld [vmem:[#allocation8 + $0x6d0] sm:$0xf0] }
  0xe0   :  { %v723_v47 = vpop.f32.mrf.mxu1  ;;  %v695_v59 = vpop.f32.mrf.mxu0  ;;  %2484 = vmatpush.bf16.msrb.mxu3 %v3977_v52 }
  0xe1   :  { %v696_v0 = vadd.f32 %v695_v59, %v683_v49  ;;  %v3894_v47 = vld [vmem:[#allocation8 + $0x110] sm:$0xf0]  ;;  %v5326_v49 = vld [vmem:[#allocation8 + $0x4a4] sm:$0xf] }
  0xe2   :  { %2499 = vmatpush.bf16.msrb.mxu0 %v4073_v42  ;;  %2475 = vmatpush.bf16.msrb.mxu2 %v3785_v53  ;;  %v5290_v42 = vld [vmem:[#allocation8 + $0x384] sm:$0xf]  ;;  %v3897_v54 = vor.u32 %v5210_v46, %v3894_v47  ;;  %v4361_v59 = vor.u32 %v5326_v49, %v4358_v50  ;;  %v4150_v46 = vld [vmem:[#allocation8 + $0x310] sm:$0xf0] }
  0xe3   :  { %v806_v6 = vmax.f32 %v696_v0, 0.0  ;;  %v4217_v53 = vor.u32 %v5290_v42, %v4214_v45  ;;  %v5366_v0 = vld [vmem:[#allocation8 + $0x5e4] sm:$0xf]  ;;  %v4294_v50 = vld [vmem:[#allocation8 + $0x430] sm:$0xf0] }
  0xe4   :  { %2485 = vmatpush.bf16.msrb.mxu3 %v3961_v61  ;;  %v5274_v45 = vld [vmem:[#allocation8 + $0x304] sm:$0xf] }
  0xe5   :  { %v5866_v14 = vpack.c.bf16 %v806_v6, %v806_v6  ;;  %v4646_v6 = vld [vmem:[#allocation8 + $0x6f0] sm:$0xf0]  ;;  %v5310_v49 = vld [vmem:[#allocation8 + $0x424] sm:$0xf] }
  0xe6   :  { %2500 = vmatpush.bf16.msrb.mxu0 %v4057_v55  ;;  %2476 = vmatpush.bf16.msrb.mxu2 %v3769_v4  ;;  %v4201_v4 = vor.u32 %v5286_v57, %v4198_v58  ;;  %v5386_v57 = vld [vmem:[#allocation8 + $0x684] sm:$0xf] }
  0xe7   :  { %v708_v9 = vpop.f32.mrf.mxu2  ;;  %2412 = vmatmul.bf16.vlgmr.msrb.gmra.mxu1 %v5866_v14 }
  0xe8   :  { %v747_v10 = vpop.f32.mrf.mxu1  ;;  %v709_v15 = vadd.f32 %v708_v9, %v219_v60  ;;  %v697_v25 = vpop.f32.mrf.mxu0  ;;  %2508 = vmatpush.bf16.msrb.mxu1 %v4265_v11  ;;  %2486 = vmatpush.bf16.msrb.mxu3 %v3945_v12  ;;  %v5322_v60 = vld [vmem:[#allocation8 + $0x484] sm:$0xf]  ;;  %v4182_v12 = vld [vmem:[#allocation8 + $0x350] sm:$0xf0] }
  0xe9   :  { %v5282_v11 = vld [vmem:[#allocation8 + $0x344] sm:$0xf]  ;;  %v4345_v13 = vor.u32 %v5322_v60, %v4342_v63  ;;  %v4297_v63 = vor.u32 %v5310_v49, %v4294_v50  ;;  %v4406_v49 = vld [vmem:[#allocation8 + $0x510] sm:$0xf0]  ;;  %v3836_v50 = vld [vmem:[#allocation8 + $0x88] sm:$0xf] }
  0xea   :  { %2501 = vmatpush.bf16.msrb.mxu0 %v4041_v5  ;;  %v722_v20 = vadd.f32 %v5859_v24, %v709_v15  ;;  %v4374_v24 = vld [vmem:[#allocation8 + $0x4d0] sm:$0xf0]  ;;  %v5398_v5 = vld [vmem:[#allocation8 + $0x6e4] sm:$0xf]  ;;  %v4521_v15 = vor.u32 %v5366_v0, %v4518_v1 }
  0xeb   :  { %v4377_v52 = vor.u32 %v5330_v35, %v4374_v24  ;;  %v4649_v25 = vor.u32 %v5398_v5, %v4646_v6  ;;  %v5314_v35 = vld [vmem:[#allocation8 + $0x444] sm:$0xf]  ;;  %v4454_v5 = vld [vmem:[#allocation8 + $0x570] sm:$0xf0] }
  0xec   :  { %v807_v30 = vmax.f32 %v722_v20, 0.0  ;;  %2509 = vmatpush.bf16.msrb.mxu1 %v4249_v27  ;;  %2487 = vmatpush.bf16.msrb.mxu3 %v3929_v28  ;;  %v4502_v20 = vld [vmem:[#allocation8 + $0x5d0] sm:$0xf0]  ;;  %v4185_v27 = vor.u32 %v5282_v11, %v4182_v12  ;;  %v5394_v28 = vld [vmem:[#allocation8 + $0x6c4] sm:$0xf]  ;;  %v4313_v47 = vor.u32 %v5314_v35, %v4310_v22 }
  0xed   :  { %v5358_v24 = vld [vmem:[#allocation8 + $0x5a4] sm:$0xf] }
  0xee   :  { %2502 = vmatpush.bf16.msrb.mxu0 %v4025_v19  ;;  %v5870_v34 = vpack.c.bf16 %v807_v30, %v807_v30  ;;  %v5362_v19 = vld [vmem:[#allocation8 + $0x5c4] sm:$0xf] }
  0xef   :  { %v710_v36 = vpop.f32.mrf.mxu2  ;;  %v760_v43 = vpop.f32.mrf.mxu3  ;;  %v5278_v30 = vld [vmem:[#allocation8 + $0x324] sm:$0xf] }
  0xf0   :  { %v749_v37 = vpop.f32.mrf.mxu1  ;;  %2425 = vmatmul.bf16.vlgmr.msra.gmra.mxu2 %v5870_v34  ;;  %2510 = vmatpush.bf16.msrb.mxu1 %v4233_v40  ;;  %v761_v56 = vadd.f32 %v760_v43, %v221_v39  ;;  %v4486_v36 = vld [vmem:[#allocation8 + $0x5b0] sm:$0xf0]  ;;  %v4633_v39 = vor.u32 %v5394_v28, %v4630_v29  ;;  %v4169_v40 = vor.u32 %v5278_v30, %v4166_v31  ;;  %v5430_v60 = vld [vmem:[#allocation8 + $0x7e4] sm:$0xf]  ;;  %v3868_v28 = vld [vmem:[#allocation8 + $0xc8] sm:$0xf] }
  0xf1   :  { %2521 = vmatpush.bf16.msra.mxu2 %v4393_v33  ;;  %2488 = vmatpush.bf16.msrb.mxu3 %v3913_v41  ;;  %v4505_v33 = vor.u32 %v5362_v19, %v4502_v20  ;;  %v5390_v41 = vld [vmem:[#allocation8 + $0x6a4] sm:$0xf]  ;;  %v4614_v43 = vld [vmem:[#allocation8 + $0x6b0] sm:$0xf0]  ;;  %v5205_v29 = vld [vmem:[#allocation8 + $0xd4] sm:$0xf0] }
  0xf2   :  { %v5306_v1 = vld [vmem:[#allocation8 + $0x404] sm:$0xf]  ;;  %v4566_v31 = vld [vmem:[#allocation8 + $0x650] sm:$0xf0]  ;;  %v3869_v22 = vor.u32 %v5205_v29, %v3868_v28 }
  0xf3   :  { %v5382_v11 = vld [vmem:[#allocation8 + $0x664] sm:$0xf]  ;;  %v4678_v29 = vld [vmem:[#allocation8 + $0x730] sm:$0xf0] }
  0xf4   :  { %v734_v51 = vpop.f32.mrf.mxu0  ;;  %2511 = vmatpush.bf16.msrb.mxu1 %v4217_v53  ;;  %v4470_v53 = vld [vmem:[#allocation8 + $0x590] sm:$0xf0]  ;;  %v5346_v20 = vld [vmem:[#allocation8 + $0x544] sm:$0xf] }
  0xf5   :  { %v735_v55 = vadd.f32 %v734_v51, %v220_v38  ;;  %2522 = vmatpush.bf16.msra.mxu2 %v4377_v52  ;;  %2489 = vmatpush.bf16.msrb.mxu3 %v3897_v54  ;;  %v4489_v52 = vor.u32 %v5358_v24, %v4486_v36  ;;  %v5354_v51 = vld [vmem:[#allocation8 + $0x584] sm:$0xf]  ;;  %v4422_v36 = vld [vmem:[#allocation8 + $0x530] sm:$0xf0] }
  0xf6   :  { %v4473_v0 = vor.u32 %v5354_v51, %v4470_v53  ;;  %v5378_v30 = vld [vmem:[#allocation8 + $0x644] sm:$0xf] }
  0xf7   :  { %v748_v61 = vadd.f32 %v747_v10, %v735_v55  ;;  %v773_v2 = vpop.f32.mrf.mxu2  ;;  %v762_v9 = vpop.f32.mrf.mxu3  ;;  %v4326_v10 = vld [vmem:[#allocation8 + $0x470] sm:$0xf0]  ;;  %v4617_v55 = vor.u32 %v5390_v41, %v4614_v43  ;;  %v5342_v24 = vld [vmem:[#allocation8 + $0x524] sm:$0xf] }
  0xf8   :  { %v786_v3 = vpop.f32.mrf.mxu1  ;;  %v774_v8 = vadd.f32 %v773_v2, %v761_v56  ;;  %2512 = vmatpush.bf16.msrb.mxu1 %v4201_v4  ;;  %v4329_v32 = vor.u32 %v5318_v16, %v4326_v10  ;;  %v4153_v56 = vor.u32 %v5274_v45, %v4150_v46  ;;  %v4278_v2 = vld [vmem:[#allocation8 + $0x410] sm:$0xf0]  ;;  %v5350_v4 = vld [vmem:[#allocation8 + $0x564] sm:$0xf]  ;;  %v5209_v9 = vld [vmem:[#allocation8 + $0xf4] sm:$0xf0]  ;;  %v4425_v46 = vor.u32 %v5342_v24, %v4422_v36 }
  0xf9   :  { %v808_v7 = vmax.f32 %v748_v61, 0.0  ;;  %2523 = vmatpush.bf16.msra.mxu2 %v4361_v59  ;;  %v787_v42 = vadd.f32 %v786_v3, %v222_v21  ;;  %v4598_v59 = vld [vmem:[#allocation8 + $0x690] sm:$0xf0]  ;;  %v4281_v10 = vor.u32 %v5306_v1, %v4278_v2  ;;  %v5374_v41 = vld [vmem:[#allocation8 + $0x624] sm:$0xf] }
  0xfa   :  { %v809_v18 = vmax.f32 %v774_v8, 0.0  ;;  %v4774_v61 = vld [vmem:[#allocation8 + $0x7f0] sm:$0xf0]  ;;  %v4601_v6 = vor.u32 %v5386_v57, %v4598_v59  ;;  %v3884_v8 = vld [vmem:[#allocation8 + $0xe8] sm:$0xf] }
  0xfb   :  { %v5875_v17 = vpack.c.bf16 %v808_v7, %v808_v7  ;;  %v4777_v7 = vor.u32 %v5430_v60, %v4774_v61  ;;  %v4758_v16 = vld [vmem:[#allocation8 + $0x7d0] sm:$0xf0]  ;;  %v3885_v19 = vor.u32 %v5209_v9, %v3884_v8  ;;  %v5418_v43 = vld [vmem:[#allocation8 + $0x784] sm:$0xf]  ;;  %v3996_v8 = vld [vmem:[#allocation8 + $0x1c8] sm:$0xf] }
  0xfc   :  { %v736_v23 = vpop.f32.mrf.mxu0  ;;  %v5878_v44 = vpack.c.bf16 %v809_v18, %v809_v18  ;;  %2513 = vmatpush.bf16.msrb.mxu1 %v4185_v27  ;;  %v4457_v18 = vor.u32 %v5350_v4, %v4454_v5  ;;  %v4438_v21 = vld [vmem:[#allocation8 + $0x550] sm:$0xf0]  ;;  %v5370_v57 = vld [vmem:[#allocation8 + $0x604] sm:$0xf]  ;;  %v3820_v4 = vld [vmem:[#allocation8 + $0x68] sm:$0xf] }
  0xfd   :  { %2438 = vmatmul.bf16.vlgmr.msra.gmra.mxu3 %v5875_v17  ;;  %2524 = vmatpush.bf16.msra.mxu2 %v4345_v13  ;;  %v4582_v13 = vld [vmem:[#allocation8 + $0x670] sm:$0xf0]  ;;  %v4441_v35 = vor.u32 %v5346_v20, %v4438_v21  ;;  %v5414_v59 = vld [vmem:[#allocation8 + $0x764] sm:$0xf]  ;;  %v5193_v5 = vld [vmem:[#allocation8 + $0x74] sm:$0xf0] }
  0xfe   :  { %2534 = vmatpush.bf16.msra.mxu3 %v4521_v15  ;;  %2451 = vmatmul.bf16.vlgmr.msra.gmra.mxu0 %v5878_v44  ;;  %v5426_v15 = vld [vmem:[#allocation8 + $0x7c4] sm:$0xf]  ;;  %v4726_v45 = vld [vmem:[#allocation8 + $0x790] sm:$0xf0]  ;;  %v5237_v9 = vld [vmem:[#allocation8 + $0x1d4] sm:$0xf0] }
  0xff   :  { %2547 = vmatpush.bf16.msra.mxu0 %v4649_v25  ;;  %v775_v37 = vpop.f32.mrf.mxu2  ;;  %v4585_v25 = vor.u32 %v5382_v11, %v4582_v13  ;;  %v4761_v27 = vor.u32 %v5426_v15, %v4758_v16  ;;  %v4729_v53 = vor.u32 %v5418_v43, %v4726_v45  ;;  %v4710_v61 = vld [vmem:[#allocation8 + $0x770] sm:$0xf0]  ;;  %v5410_v11 = vld [vmem:[#allocation8 + $0x744] sm:$0xf]  ;;  %v4124_v15 = vld [vmem:[#allocation8 + $0x2c8] sm:$0xf] }
 0x100   :  { %v788_v38 = vpop.f32.mrf.mxu1  ;;  %2477 = vmatmul.bf16.vlgmr.msrb.gmra.mxu2 %v5852_v48  ;;  %2514 = vmatpush.bf16.msrb.mxu1 %v4169_v40  ;;  %v4569_v37 = vor.u32 %v5378_v30, %v4566_v31  ;;  %v5201_v40 = vld [vmem:[#allocation8 + $0xb4] sm:$0xf0]  ;;  %v4694_v13 = vld [vmem:[#allocation8 + $0x750] sm:$0xf0]  ;;  %v5406_v28 = vld [vmem:[#allocation8 + $0x724] sm:$0xf] }
 0x101   :  { %2525 = vmatpush.bf16.msra.mxu2 %v4329_v32  ;;  %v5422_v32 = vld [vmem:[#allocation8 + $0x7a4] sm:$0xf]  ;;  %v5269_v16 = vld [vmem:[#allocation8 + $0x2d4] sm:$0xf0]  ;;  %v4697_v21 = vor.u32 %v5410_v11, %v4694_v13  ;;  %v4108_v30 = vld [vmem:[#allocation8 + $0x2a8] sm:$0xf]  ;;  %v4681_v24 = vor.u32 %v5406_v28, %v4678_v29 }
 0x102   :  { %2535 = vmatpush.bf16.msra.mxu3 %v4505_v33  ;;  %v4742_v33 = vld [vmem:[#allocation8 + $0x7b0] sm:$0xf0]  ;;  %v5189_v20 = vld [vmem:[#allocation8 + $0x54] sm:$0xf0]  ;;  %v4268_v45 = vld [vmem:[#allocation8 + $0x3e8] sm:$0xf] }
 0x103   :  { %2548 = vmatpush.bf16.msra.mxu0 %v4633_v39  ;;  %v4745_v38 = vor.u32 %v5422_v32, %v4742_v33  ;;  %v3852_v39 = vld [vmem:[#allocation8 + $0xa8] sm:$0xf]  ;;  %v5265_v31 = vld [vmem:[#allocation8 + $0x2b4] sm:$0xf0] }
 0x104   :  { %v799_v54 = vpop.f32.mrf.mxu0  ;;  %2515 = vmatpush.bf16.msrb.mxu1 %v4153_v56  ;;  %v5241_v56 = vld [vmem:[#allocation8 + $0x1f4] sm:$0xf0]  ;;  %v4109_v36 = vor.u32 %v5265_v31, %v4108_v30  ;;  %v4236_v11 = vld [vmem:[#allocation8 + $0x3a8] sm:$0xf] }
 0x105   :  { %v800_v58 = vadd.f32 %v799_v54, %v787_v42  ;;  %2526 = vmatpush.bf16.msra.mxu2 %v4313_v47  ;;  %v4550_v42 = vld [vmem:[#allocation8 + $0x630] sm:$0xf0]  ;;  %v3853_v47 = vor.u32 %v5201_v40, %v3852_v39  ;;  %v5197_v54 = vld [vmem:[#allocation8 + $0x94] sm:$0xf0]  ;;  %v5402_v39 = vld [vmem:[#allocation8 + $0x704] sm:$0xf] }
 0x106   :  { %2536 = vmatpush.bf16.msra.mxu3 %v4489_v52  ;;  %v5338_v52 = vld [vmem:[#allocation8 + $0x504] sm:$0xf]  ;;  %v4553_v51 = vor.u32 %v5374_v41, %v4550_v42  ;;  %v3837_v1 = vor.u32 %v5197_v54, %v3836_v50  ;;  %v4662_v40 = vld [vmem:[#allocation8 + $0x710] sm:$0xf0]  ;;  %v4092_v41 = vld [vmem:[#allocation8 + $0x288] sm:$0xf] }
 0x107   :  { %v810_v3 = vmax.f32 %v800_v58, 0.0  ;;  %2549 = vmatpush.bf16.msra.mxu0 %v4617_v55  ;;  %v4012_v55 = vld [vmem:[#allocation8 + $0x1e8] sm:$0xf]  ;;  %v4534_v58 = vld [vmem:[#allocation8 + $0x610] sm:$0xf0]  ;;  %v4409_v60 = vor.u32 %v5338_v52, %v4406_v49 }
 0x108   :  { %v4013_v2 = vor.u32 %v5241_v56, %v4012_v55  ;;  %v5261_v42 = vld [vmem:[#allocation8 + $0x294] sm:$0xf0]  ;;  %v3772_v52 = vld [vmem:[#allocation8 + $0x8] sm:$0xf] }
 0x109   :  { %v5883_v12 = vpack.c.bf16 %v810_v3, %v810_v3  ;;  %2527 = vmatpush.bf16.msra.mxu2 %v4297_v63  ;;  %v4140_v63 = vld [vmem:[#allocation8 + $0x2e8] sm:$0xf]  ;;  %v4537_v3 = vor.u32 %v5370_v57, %v4534_v58  ;;  %v5181_v49 = vld [vmem:[#allocation8 + $0x14] sm:$0xf0] }
 0x10a   :  { %2537 = vmatpush.bf16.msra.mxu3 %v4473_v0  ;;  %v5273_v0 = vld [vmem:[#allocation8 + $0x2f4] sm:$0xf0]  ;;  %v3948_v50 = vld [vmem:[#allocation8 + $0x168] sm:$0xf] }
 0x10b   :  { %2464 = vmatmul.bf16.vlgmr.msra.gmra.mxu1 %v5883_v12  ;;  %2550 = vmatpush.bf16.msra.mxu0 %v4601_v6  ;;  %v4713_v6 = vor.u32 %v5414_v59, %v4710_v61  ;;  %v5225_v54 = vld [vmem:[#allocation8 + $0x174] sm:$0xf0]  ;;  %v4396_v55 = vld [vmem:[#allocation8 + $0x4e8] sm:$0xf] }
 0x10c   :  { %2560 = vmatpush.bf16.msra.mxu1 %v4777_v7  ;;  %v801_v23 = vpop.f32.mrf.mxu0  ;;  %v4141_v7 = vor.u32 %v5273_v0, %v4140_v63  ;;  %v5337_v56 = vld [vmem:[#allocation8 + $0x4f4] sm:$0xf0]  ;;  %v4076_v58 = vld [vmem:[#allocation8 + $0x268] sm:$0xf]  ;;  %v3949_v0 = vor.u32 %v5225_v54, %v3948_v50 }
 0x10d   :  { %2490 = vmatmul.bf16.vlgmr.msrb.gmra.mxu3 %v5861_v26  ;;  %2528 = vmatpush.bf16.msra.mxu2 %v4281_v10  ;;  %v3821_v10 = vor.u32 %v5193_v5, %v3820_v4  ;;  %v4125_v23 = vor.u32 %v5269_v16, %v4124_v15  ;;  %v5257_v59 = vld [vmem:[#allocation8 + $0x274] sm:$0xf0]  ;;  %v4252_v61 = vld [vmem:[#allocation8 + $0x3c8] sm:$0xf] }
 0x10e   :  { %2538 = vmatpush.bf16.msra.mxu3 %v4457_v18  ;;  %2503 = vmatmul.bf16.vlgmr.msrb.gmra.mxu0 %v5856_v62  ;;  %v3997_v18 = vor.u32 %v5237_v9, %v3996_v8  ;;  %v5301_v63 = vld [vmem:[#allocation8 + $0x3d4] sm:$0xf0]  ;;  %v4380_v5 = vld [vmem:[#allocation8 + $0x4c8] sm:$0xf] }
 0x10f   :  { %2551 = vmatpush.bf16.msra.mxu0 %v4585_v25  ;;  %v3980_v25 = vld [vmem:[#allocation8 + $0x1a8] sm:$0xf]  ;;  %v5221_v4 = vld [vmem:[#allocation8 + $0x154] sm:$0xf0] }
 0x110   :  { %2561 = vmatpush.bf16.msra.mxu1 %v4761_v27  ;;  %2529 = vmatmul.bf16.vlgmr.msra.gmra.mxu2 %v5870_v34  ;;  %v5233_v27 = vld [vmem:[#allocation8 + $0x1b4] sm:$0xf0]  ;;  %v4060_v8 = vld [vmem:[#allocation8 + $0x248] sm:$0xf] }
 0x111   :  { %2573 = vmatpush.bf16.msrb.mxu2 %v3885_v19  ;;  %v3804_v19 = vld [vmem:[#allocation8 + $0x48] sm:$0xf]  ;;  %v3981_v33 = vor.u32 %v5233_v27, %v3980_v25  ;;  %v5253_v9 = vld [vmem:[#allocation8 + $0x254] sm:$0xf0] }
 0x112   :  { %2539 = vmatpush.bf16.msra.mxu3 %v4441_v35  ;;  %v3805_v32 = vor.u32 %v5189_v20, %v3804_v19  ;;  %v3788_v35 = vld [vmem:[#allocation8 + $0x28] sm:$0xf]  ;;  %v5297_v13 = vld [vmem:[#allocation8 + $0x3b4] sm:$0xf0] }
 0x113   :  { %2552 = vmatpush.bf16.msra.mxu0 %v4569_v37  ;;  %v3964_v37 = vld [vmem:[#allocation8 + $0x188] sm:$0xf]  ;;  %v5217_v19 = vld [vmem:[#allocation8 + $0x134] sm:$0xf0] }
 0x114   :  { %2562 = vmatpush.bf16.msra.mxu1 %v4745_v38  ;;  %v5229_v38 = vld [vmem:[#allocation8 + $0x194] sm:$0xf0]  ;;  %v4364_v20 = vld [vmem:[#allocation8 + $0x4a8] sm:$0xf] }
 0x115   :  { %2574 = vmatpush.bf16.msrb.mxu2 %v3869_v22  ;;  %v5185_v22 = vld [vmem:[#allocation8 + $0x34] sm:$0xf0]  ;;  %v4044_v25 = vld [vmem:[#allocation8 + $0x228] sm:$0xf] }
 0x116   :  { %2540 = vmatpush.bf16.msra.mxu3 %v4425_v46  ;;  %v3789_v43 = vor.u32 %v5185_v22, %v3788_v35  ;;  %v5305_v46 = vld [vmem:[#allocation8 + $0x3f4] sm:$0xf0]  ;;  %v4220_v28 = vld [vmem:[#allocation8 + $0x388] sm:$0xf] }
 0x117   :  { %2553 = vmatpush.bf16.msra.mxu0 %v4553_v51  ;;  %v4665_v51 = vor.u32 %v5402_v39, %v4662_v40  ;;  %v4269_v57 = vor.u32 %v5305_v46, %v4268_v45  ;;  %v5249_v27 = vld [vmem:[#allocation8 + $0x234] sm:$0xf0]  ;;  %v4348_v35 = vld [vmem:[#allocation8 + $0x488] sm:$0xf] }
 0x118   :  { %2563 = vmatpush.bf16.msra.mxu1 %v4729_v53  ;;  %v4093_v53 = vor.u32 %v5261_v42, %v4092_v41  ;;  %v5293_v29 = vld [vmem:[#allocation8 + $0x394] sm:$0xf0]  ;;  %v4045_v22 = vor.u32 %v5249_v27, %v4044_v25  ;;  %v4524_v39 = vld [vmem:[#allocation8 + $0x5e8] sm:$0xf] }
 0x119   :  { %2575 = vmatpush.bf16.msrb.mxu2 %v3853_v47  ;;  %v3965_v47 = vor.u32 %v5229_v38, %v3964_v37  ;;  %v5245_v37 = vld [vmem:[#allocation8 + $0x214] sm:$0xf0]  ;;  %v4221_v38 = vor.u32 %v5293_v29, %v4220_v28  ;;  %v4204_v41 = vld [vmem:[#allocation8 + $0x368] sm:$0xf] }
 0x11a   :  { %2541 = vmatpush.bf16.msra.mxu3 %v4409_v60  ;;  %v3773_v60 = vor.u32 %v5181_v49, %v3772_v52  ;;  %v5369_v40 = vld [vmem:[#allocation8 + $0x5f4] sm:$0xf0]  ;;  %v4332_v50 = vld [vmem:[#allocation8 + $0x468] sm:$0xf] }
 0x11b   :  { %2554 = vmatpush.bf16.msra.mxu0 %v4537_v3  ;;  %2516 = vmatmul.bf16.vlgmr.msrb.gmra.mxu1 %v5866_v14  ;;  %v4077_v3 = vor.u32 %v5257_v59, %v4076_v58  ;;  %v5289_v42 = vld [vmem:[#allocation8 + $0x374] sm:$0xf0]  ;;  %v4525_v49 = vor.u32 %v5369_v40, %v4524_v39  ;;  %v4636_v59 = vld [vmem:[#allocation8 + $0x6c8] sm:$0xf]  ;;  %v3886_v39 = vld [vmem:[#allocation8 + $0xf8] sm:$0xf0] }
 0x11c   :  { %2564 = vmatpush.bf16.msra.mxu1 %v4713_v6  ;;  %v5333_v6 = vld [vmem:[#allocation8 + $0x4d4] sm:$0xf0]  ;;  %v4604_v25 = vld [vmem:[#allocation8 + $0x688] sm:$0xf] }
 0x11d   :  { %2576 = vmatpush.bf16.msrb.mxu2 %v3837_v1  ;;  %2542 = vmatmul.bf16.vlgmr.msra.gmra.mxu3 %v5875_v17  ;;  %v4397_v1 = vor.u32 %v5337_v56, %v4396_v55  ;;  %v4381_v16 = vor.u32 %v5333_v6, %v4380_v5  ;;  %v5401_v45 = vld [vmem:[#allocation8 + $0x6f4] sm:$0xf0]  ;;  %v4508_v55 = vld [vmem:[#allocation8 + $0x5c8] sm:$0xf] }
 0x11e   :  { %2586 = vmatpush.bf16.msrb.mxu3 %v4013_v2  ;;  %2555 = vmatmul.bf16.vlgmr.msra.gmra.mxu0 %v5878_v44  ;;  %v3932_v2 = vld [vmem:[#allocation8 + $0x148] sm:$0xf]  ;;  %v5365_v56 = vld [vmem:[#allocation8 + $0x5d4] sm:$0xf0] }
 0x11f   :  { %2599 = vmatpush.bf16.msrb.mxu0 %v4141_v7  ;;  %v4253_v7 = vor.u32 %v5301_v63, %v4252_v61  ;;  %v3933_v15 = vor.u32 %v5221_v4, %v3932_v2  ;;  %v5285_v58 = vld [vmem:[#allocation8 + $0x354] sm:$0xf0]  ;;  %v4509_v63 = vor.u32 %v5365_v56, %v4508_v55  ;;  %v4492_v4 = vld [vmem:[#allocation8 + $0x5a8] sm:$0xf] }
 0x120   :  { %2565 = vmatpush.bf16.msra.mxu1 %v4697_v21  ;;  %v5329_v21 = vld [vmem:[#allocation8 + $0x4b4] sm:$0xf0]  ;;  %v4172_v6 = vld [vmem:[#allocation8 + $0x328] sm:$0xf] }
 0x121   :  { %2577 = vmatpush.bf16.msrb.mxu2 %v3821_v10  ;;  %v3916_v10 = vld [vmem:[#allocation8 + $0x128] sm:$0xf]  ;;  %v4365_v31 = vor.u32 %v5329_v21, %v4364_v20  ;;  %v5361_v5 = vld [vmem:[#allocation8 + $0x5b4] sm:$0xf0] }
 0x122   :  { %2587 = vmatpush.bf16.msrb.mxu3 %v3997_v18  ;;  %v4061_v18 = vor.u32 %v5253_v9, %v4060_v8  ;;  %v3917_v30 = vor.u32 %v5217_v19, %v3916_v10  ;;  %v4620_v8 = vld [vmem:[#allocation8 + $0x6a8] sm:$0xf]  ;;  %v5393_v9 = vld [vmem:[#allocation8 + $0x6b4] sm:$0xf0] }
 0x123   :  { %2600 = vmatpush.bf16.msrb.mxu0 %v4125_v23  ;;  %v4237_v23 = vor.u32 %v5297_v13, %v4236_v11  ;;  %v4493_v13 = vor.u32 %v5361_v5, %v4492_v4  ;;  %v4476_v19 = vld [vmem:[#allocation8 + $0x588] sm:$0xf]  ;;  %v5357_v20 = vld [vmem:[#allocation8 + $0x594] sm:$0xf0] }
 0x124   :  { %2566 = vmatpush.bf16.msra.mxu1 %v4681_v24  ;;  %v5325_v24 = vld [vmem:[#allocation8 + $0x494] sm:$0xf0]  ;;  %v4156_v21 = vld [vmem:[#allocation8 + $0x308] sm:$0xf] }
 0x125   :  { %2578 = vmatpush.bf16.msrb.mxu2 %v3805_v32  ;;  %v3900_v32 = vld [vmem:[#allocation8 + $0x108] sm:$0xf]  ;;  %v5389_v27 = vld [vmem:[#allocation8 + $0x694] sm:$0xf0] }
 0x126   :  { %2588 = vmatpush.bf16.msrb.mxu3 %v3981_v33  ;;  %v5213_v33 = vld [vmem:[#allocation8 + $0x114] sm:$0xf0]  ;;  %v4780_v29 = vld [vmem:[#allocation8 + $0x7e8] sm:$0xf] }
 0x127   :  { %2601 = vmatpush.bf16.msrb.mxu0 %v4109_v36  ;;  %v4028_v36 = vld [vmem:[#allocation8 + $0x208] sm:$0xf]  ;;  %v3901_v46 = vor.u32 %v5213_v33, %v3900_v32  ;;  %v5309_v33 = vld [vmem:[#allocation8 + $0x414] sm:$0xf0] }
 0x128   :  { %2567 = vmatpush.bf16.msra.mxu1 %v4665_v51  ;;  %v4029_v52 = vor.u32 %v5245_v37, %v4028_v36  ;;  %v5321_v51 = vld [vmem:[#allocation8 + $0x474] sm:$0xf0]  ;;  %v4284_v32 = vld [vmem:[#allocation8 + $0x408] sm:$0xf]  ;;  %v5207_v37 = vld [vmem:[#allocation8 + $0xec] sm:$0xf] }
 0x129   :  { %2579 = vmatpush.bf16.msrb.mxu2 %v3789_v43  ;;  %v4652_v43 = vld [vmem:[#allocation8 + $0x6e8] sm:$0xf]  ;;  %v4333_v61 = vor.u32 %v5321_v51, %v4332_v50  ;;  %v5353_v36 = vld [vmem:[#allocation8 + $0x574] sm:$0xf0]  ;;  %v5203_v51 = vld [vmem:[#allocation8 + $0xcc] sm:$0xf] }
 0x12a   :  { %2589 = vmatpush.bf16.msrb.mxu3 %v3965_v47  ;;  %v4349_v47 = vor.u32 %v5325_v24, %v4348_v35  ;;  %v4653_v54 = vor.u32 %v5401_v45, %v4652_v43  ;;  %v4460_v24 = vld [vmem:[#allocation8 + $0x568] sm:$0xf]  ;;  %v5429_v45 = vld [vmem:[#allocation8 + $0x7d4] sm:$0xf0] }
 0x12b   :  { %2602 = vmatpush.bf16.msrb.mxu0 %v4093_v53  ;;  %2568 = vmatmul.bf16.vlgmr.msra.gmra.mxu1 %v5883_v12  ;;  %v4205_v53 = vor.u32 %v5289_v42, %v4204_v41  ;;  %v4588_v40 = vld [vmem:[#allocation8 + $0x668] sm:$0xf]  ;;  %v5385_v41 = vld [vmem:[#allocation8 + $0x674] sm:$0xf0]  ;;  %v4285_v42 = vor.u32 %v5309_v33, %v4284_v32  ;;  %v4142_v32 = vld [vmem:[#allocation8 + $0x2f8] sm:$0xf0] }
 0x12c   :  { %2612 = vmatpush.bf16.msrb.mxu1 %v4269_v57  ;;  %v4188_v57 = vld [vmem:[#allocation8 + $0x348] sm:$0xf]  ;;  %v5349_v50 = vld [vmem:[#allocation8 + $0x554] sm:$0xf0] }
 0x12d   :  { %2580 = vmatpush.bf16.msrb.mxu2 %v3773_v60  ;;  %v5397_v60 = vld [vmem:[#allocation8 + $0x6d4] sm:$0xf0]  ;;  %v4189_v2 = vor.u32 %v5285_v58, %v4188_v57  ;;  %v4764_v43 = vld [vmem:[#allocation8 + $0x7c8] sm:$0xf] }
 0x12e   :  { %2590 = vmatpush.bf16.msrb.mxu3 %v3949_v0  ;;  %v4316_v0 = vld [vmem:[#allocation8 + $0x448] sm:$0xf]  ;;  %v5381_v56 = vld [vmem:[#allocation8 + $0x654] sm:$0xf0] }
 0x12f   :  { %2603 = vmatpush.bf16.msrb.mxu0 %v4077_v3  ;;  %v4637_v3 = vor.u32 %v5397_v60, %v4636_v59  ;;  %v4572_v55 = vld [vmem:[#allocation8 + $0x648] sm:$0xf]  ;;  %v5425_v58 = vld [vmem:[#allocation8 + $0x7b4] sm:$0xf0] }
 0x130   :  { %2581 = vmatmul.bf16.vlgmr.msrb.gmra.mxu2 %v5852_v48  ;;  %2613 = vmatpush.bf16.msrb.mxu1 %v4253_v7  ;;  %v5281_v7 = vld [vmem:[#allocation8 + $0x334] sm:$0xf0]  ;;  %v4748_v57 = vld [vmem:[#allocation8 + $0x7a8] sm:$0xf] }
 0x131   :  { %2625 = vmatpush.bf16.msra.mxu2 %v4397_v1  ;;  %v5317_v1 = vld [vmem:[#allocation8 + $0x454] sm:$0xf0]  ;;  %v4173_v10 = vor.u32 %v5281_v7, %v4172_v6  ;;  %v4556_v4 = vld [vmem:[#allocation8 + $0x628] sm:$0xf] }
 0x132   :  { %2591 = vmatpush.bf16.msrb.mxu3 %v3933_v15  ;;  %v4317_v11 = vor.u32 %v5317_v1, %v4316_v0  ;;  %v4300_v15 = vld [vmem:[#allocation8 + $0x428] sm:$0xf]  ;;  %v5345_v0 = vld [vmem:[#allocation8 + $0x534] sm:$0xf0]  ;;  %v5199_v1 = vld [vmem:[#allocation8 + $0xac] sm:$0xf] }
 0x133   :  { %2604 = vmatpush.bf16.msrb.mxu0 %v4061_v18  ;;  %v4621_v18 = vor.u32 %v5393_v9, %v4620_v8  ;;  %v5377_v5 = vld [vmem:[#allocation8 + $0x634] sm:$0xf0]  ;;  %v4732_v6 = vld [vmem:[#allocation8 + $0x788] sm:$0xf] }
 0x134   :  { %2614 = vmatpush.bf16.msrb.mxu1 %v4237_v23  ;;  %v5277_v23 = vld [vmem:[#allocation8 + $0x314] sm:$0xf0]  ;;  %v4412_v9 = vld [vmem:[#allocation8 + $0x508] sm:$0xf] }
 0x135   :  { %2626 = vmatpush.bf16.msra.mxu2 %v4381_v16  ;;  %v5313_v16 = vld [vmem:[#allocation8 + $0x434] sm:$0xf0]  ;;  %v4157_v35 = vor.u32 %v5277_v23, %v4156_v21  ;;  %v5239_v23 = vld [vmem:[#allocation8 + $0x1ec] sm:$0xf] }
 0x136   :  { %2592 = vmatpush.bf16.msrb.mxu3 %v3917_v30  ;;  %v4301_v28 = vor.u32 %v5313_v16, %v4300_v15  ;;  %v5433_v30 = vld [vmem:[#allocation8 + $0x7f4] sm:$0xf0]  ;;  %v4557_v15 = vor.u32 %v5377_v5, %v4556_v4  ;;  %v3966_v4 = vld [vmem:[#allocation8 + $0x198] sm:$0xf0] }
 0x137   :  { %2605 = vmatpush.bf16.msrb.mxu0 %v4045_v22  ;;  %v4605_v22 = vor.u32 %v5389_v27, %v4604_v25  ;;  %v5421_v7 = vld [vmem:[#allocation8 + $0x794] sm:$0xf0]  ;;  %v4014_v27 = vld [vmem:[#allocation8 + $0x1f8] sm:$0xf0] }
 0x138   :  { %2615 = vmatpush.bf16.msrb.mxu1 %v4221_v38  ;;  %v4781_v38 = vor.u32 %v5433_v30, %v4780_v29  ;;  %v5341_v16 = vld [vmem:[#allocation8 + $0x514] sm:$0xf0] }
 0x139   :  { %2627 = vmatpush.bf16.msra.mxu2 %v4365_v31  ;;  %v4477_v31 = vor.u32 %v5357_v20, %v4476_v19  ;;  %v4733_v19 = vor.u32 %v5421_v7, %v4732_v6  ;;  %v4540_v20 = vld [vmem:[#allocation8 + $0x608] sm:$0xf]  ;;  %v5373_v21 = vld [vmem:[#allocation8 + $0x614] sm:$0xf0]  ;;  %v4413_v30 = vor.u32 %v5341_v16, %v4412_v9  ;;  %v4094_v9 = vld [vmem:[#allocation8 + $0x298] sm:$0xf0] }
 0x13a   :  { %2593 = vmatpush.bf16.msrb.mxu3 %v3901_v46  ;;  %v4461_v46 = vor.u32 %v5353_v36, %v4460_v24  ;;  %v5417_v29 = vld [vmem:[#allocation8 + $0x774] sm:$0xf0]  ;;  %v5191_v36 = vld [vmem:[#allocation8 + $0x6c] sm:$0xf]  ;;  %v4668_v6 = vld [vmem:[#allocation8 + $0x708] sm:$0xf] }
 0x13b   :  { %2606 = vmatpush.bf16.msrb.mxu0 %v4029_v52  ;;  %v4589_v52 = vor.u32 %v5385_v41, %v4588_v40  ;;  %v3998_v40 = vld [vmem:[#allocation8 + $0x1d8] sm:$0xf0]  ;;  %v4700_v41 = vld [vmem:[#allocation8 + $0x748] sm:$0xf]  ;;  %v5405_v7 = vld [vmem:[#allocation8 + $0x714] sm:$0xf0] }
 0x13c   :  { %2616 = vmatpush.bf16.msrb.mxu1 %v4205_v53  ;;  %v4765_v53 = vor.u32 %v5429_v45, %v4764_v43  ;;  %v5267_v43 = vld [vmem:[#allocation8 + $0x2cc] sm:$0xf]  ;;  %v4126_v45 = vld [vmem:[#allocation8 + $0x2d8] sm:$0xf0] }
 0x13d   :  { %2628 = vmatpush.bf16.msra.mxu2 %v4349_v47  ;;  %2594 = vmatmul.bf16.vlgmr.msrb.gmra.mxu3 %v5861_v26  ;;  %v3889_v47 = vor.u32 %v5207_v37, %v3886_v39  ;;  %v3822_v37 = vld [vmem:[#allocation8 + $0x78] sm:$0xf0] }
 0x13e   :  { %2638 = vmatpush.bf16.msra.mxu3 %v4525_v49  ;;  %2607 = vmatmul.bf16.vlgmr.msrb.gmra.mxu0 %v5856_v62  ;;  %v4444_v49 = vld [vmem:[#allocation8 + $0x548] sm:$0xf] }
 0x13f   :  { %2651 = vmatpush.bf16.msra.mxu0 %v4653_v54  ;;  %v3870_v54 = vld [vmem:[#allocation8 + $0xd8] sm:$0xf0]  ;;  %v4445_v59 = vor.u32 %v5349_v50, %v4444_v49  ;;  %v5187_v50 = vld [vmem:[#allocation8 + $0x4c] sm:$0xf] }
 0x140   :  { %2617 = vmatpush.bf16.msrb.mxu1 %v4189_v2  ;;  %v3873_v60 = vor.u32 %v5203_v51, %v3870_v54  ;;  %v4749_v2 = vor.u32 %v5425_v58, %v4748_v57  ;;  %v3806_v51 = vld [vmem:[#allocation8 + $0x58] sm:$0xf0]  ;;  %v4684_v57 = vld [vmem:[#allocation8 + $0x728] sm:$0xf]  ;;  %v5409_v58 = vld [vmem:[#allocation8 + $0x734] sm:$0xf0] }
 0x141   :  { %2629 = vmatpush.bf16.msra.mxu2 %v4333_v61  ;;  %v4573_v61 = vor.u32 %v5381_v56, %v4572_v55  ;;  %v4129_v55 = vor.u32 %v5267_v43, %v4126_v45  ;;  %v3982_v56 = vld [vmem:[#allocation8 + $0x1b8] sm:$0xf0]  ;;  %v5251_v45 = vld [vmem:[#allocation8 + $0x24c] sm:$0xf] }
 0x142   :  { %2639 = vmatpush.bf16.msra.mxu3 %v4509_v63  ;;  %v4428_v63 = vld [vmem:[#allocation8 + $0x528] sm:$0xf]  ;;  %v4382_v43 = vld [vmem:[#allocation8 + $0x4d8] sm:$0xf0] }
 0x143   :  { %2652 = vmatpush.bf16.msra.mxu0 %v4637_v3  ;;  %v3854_v3 = vld [vmem:[#allocation8 + $0xb8] sm:$0xf0]  ;;  %v4429_v8 = vor.u32 %v5345_v0, %v4428_v63  ;;  %v5183_v63 = vld [vmem:[#allocation8 + $0x2c] sm:$0xf] }
 0x144   :  { %2618 = vmatpush.bf16.msrb.mxu1 %v4173_v10  ;;  %v5195_v10 = vld [vmem:[#allocation8 + $0x8c] sm:$0xf] }
 0x145   :  { %2630 = vmatpush.bf16.msra.mxu2 %v4317_v11  ;;  %v3857_v11 = vor.u32 %v5199_v1, %v3854_v3  ;;  %v4685_v1 = vor.u32 %v5409_v58, %v4684_v57  ;;  %v5227_v3 = vld [vmem:[#allocation8 + $0x18c] sm:$0xf] }
 0x146   :  { %2640 = vmatpush.bf16.msra.mxu3 %v4493_v13  ;;  %v5327_v58 = vld [vmem:[#allocation8 + $0x4ac] sm:$0xf] }
 0x147   :  { %2653 = vmatpush.bf16.msra.mxu0 %v4621_v18  ;;  %v3838_v18 = vld [vmem:[#allocation8 + $0x98] sm:$0xf0] }
 0x148   :  { %2619 = vmatpush.bf16.msrb.mxu1 %v4157_v35  ;;  %v3841_v33 = vor.u32 %v5195_v10, %v3838_v18  ;;  %v4541_v35 = vor.u32 %v5373_v21, %v4540_v20  ;;  %v5179_v18 = vld [vmem:[#allocation8 + $0xc] sm:$0xf]  ;;  %v4669_v20 = vor.u32 %v5405_v7, %v4668_v6  ;;  %v3774_v21 = vld [vmem:[#allocation8 + $0x18] sm:$0xf0] }
 0x149   :  { %2631 = vmatpush.bf16.msra.mxu2 %v4301_v28  ;;  %v4716_v28 = vld [vmem:[#allocation8 + $0x768] sm:$0xf] }
 0x14a   :  { %2641 = vmatpush.bf16.msra.mxu3 %v4477_v31  ;;  %v5271_v31 = vld [vmem:[#allocation8 + $0x2ec] sm:$0xf]  ;;  %v4717_v24 = vor.u32 %v5417_v29, %v4716_v28 }
 0x14b   :  { %2654 = vmatpush.bf16.msra.mxu0 %v4605_v22  ;;  %2620 = vmatmul.bf16.vlgmr.msrb.gmra.mxu1 %v5866_v14  ;;  %v4017_v22 = vor.u32 %v5239_v23, %v4014_v27  ;;  %v4145_v39 = vor.u32 %v5271_v31, %v4142_v32  ;;  %v5223_v23 = vld [vmem:[#allocation8 + $0x16c] sm:$0xf]  ;;  %v3950_v27 = vld [vmem:[#allocation8 + $0x178] sm:$0xf0] }
 0x14c   :  { %2664 = vmatpush.bf16.msra.mxu1 %v4781_v38  ;;  %v5900_v25 = vpop.f32.mrf.mxu2  ;;  %v5235_v38 = vld [vmem:[#allocation8 + $0x1cc] sm:$0xf]  ;;  %v4398_v31 = vld [vmem:[#allocation8 + $0x4f8] sm:$0xf0] }
 0x14d   :  { %2632 = vmatpush.bf16.msra.mxu2 %v4285_v42  ;;  %v5413_v42 = vld [vmem:[#allocation8 + $0x754] sm:$0xf0]  ;;  %v5255_v32 = vld [vmem:[#allocation8 + $0x26c] sm:$0xf] }
 0x14e   :  { %2642 = vmatpush.bf16.msra.mxu3 %v4461_v46  ;;  %v5898_v13 = vpop.f32.mrf.mxu0  ;;  %v3825_v46 = vor.u32 %v5191_v36, %v3822_v37  ;;  %v4701_v49 = vor.u32 %v5413_v42, %v4700_v41  ;;  %v3953_v36 = vor.u32 %v5223_v23, %v3950_v27  ;;  %v5331_v42 = vld [vmem:[#allocation8 + $0x4cc] sm:$0xf] }
 0x14f   :  { %2655 = vmatpush.bf16.msra.mxu0 %v4589_v52  ;;  %v4001_v52 = vor.u32 %v5235_v38, %v3998_v40  ;;  %v5219_v38 = vld [vmem:[#allocation8 + $0x14c] sm:$0xf] }
 0x150   :  { %2633 = vmatmul.bf16.vlgmr.msra.gmra.mxu2 %v5870_v34  ;;  %2665 = vmatpush.bf16.msra.mxu1 %v4765_v53  ;;  %v5231_v53 = vld [vmem:[#allocation8 + $0x1ac] sm:$0xf] }
 0x151   :  { %2677 = vmatpush.bf16.msrb.mxu2 %v3889_v47  ;;  %v3985_v0 = vor.u32 %v5231_v53, %v3982_v56  ;;  %v5215_v53 = vld [vmem:[#allocation8 + $0x12c] sm:$0xf] }
 0x152   :  { %2643 = vmatpush.bf16.msra.mxu3 %v4445_v59  ;;  %v5263_v59 = vld [vmem:[#allocation8 + $0x2ac] sm:$0xf] }
 0x153   :  { %2656 = vmatpush.bf16.msra.mxu0 %v4573_v61  ;;  %v3809_v61 = vor.u32 %v5187_v50, %v3806_v51  ;;  %v4385_v51 = vor.u32 %v5331_v42, %v4382_v43  ;;  %v5315_v42 = vld [vmem:[#allocation8 + $0x44c] sm:$0xf]  ;;  %v4318_v43 = vld [vmem:[#allocation8 + $0x458] sm:$0xf0] }
 0x154   :  { %2666 = vmatpush.bf16.msra.mxu1 %v4749_v2  ;;  %v2376_v54 = vpop.f32.mrf.mxu2  ;;  %v3790_v2 = vld [vmem:[#allocation8 + $0x38] sm:$0xf0] }
 0x155   :  { %2678 = vmatpush.bf16.msrb.mxu2 %v3873_v60  ;;  %v4110_v60 = vld [vmem:[#allocation8 + $0x2b8] sm:$0xf0]  ;;  %v3793_v10 = vor.u32 %v5183_v63, %v3790_v2  ;;  %v5291_v63 = vld [vmem:[#allocation8 + $0x38c] sm:$0xf] }
 0x156   :  { %2644 = vmatpush.bf16.msra.mxu3 %v4429_v8  ;;  %v2402_v47 = vpop.f32.mrf.mxu0  ;;  %v4113_v5 = vor.u32 %v5263_v59, %v4110_v60  ;;  %v5259_v8 = vld [vmem:[#allocation8 + $0x28c] sm:$0xf]  ;;  %v3918_v54 = vld [vmem:[#allocation8 + $0x138] sm:$0xf0] }
 0x157   :  { %2657 = vmatpush.bf16.msra.mxu0 %v4557_v15  ;;  %v4270_v15 = vld [vmem:[#allocation8 + $0x3f8] sm:$0xf0]  ;;  %v4097_v28 = vor.u32 %v5259_v8, %v4094_v9  ;;  %v5295_v47 = vld [vmem:[#allocation8 + $0x3ac] sm:$0xf] }
 0x158   :  { %2667 = vmatpush.bf16.msra.mxu1 %v4733_v19  ;;  %v3969_v19 = vor.u32 %v5227_v3, %v3966_v4  ;;  %v4366_v59 = vld [vmem:[#allocation8 + $0x4b8] sm:$0xf0]  ;;  %v5247_v60 = vld [vmem:[#allocation8 + $0x22c] sm:$0xf] }
 0x159   :  { %2679 = vmatpush.bf16.msrb.mxu2 %v3857_v11  ;;  %v5303_v11 = vld [vmem:[#allocation8 + $0x3ec] sm:$0xf]  ;;  %v4369_v2 = vor.u32 %v5327_v58, %v4366_v59  ;;  %v3902_v4 = vld [vmem:[#allocation8 + $0x118] sm:$0xf0] }
 0x15a   :  { %2645 = vmatpush.bf16.msra.mxu3 %v4413_v30  ;;  %v5904_v16 = vpop.f32.mrf.mxu3  ;;  %v4273_v29 = vor.u32 %v5303_v11, %v4270_v15  ;;  %v5335_v30 = vld [vmem:[#allocation8 + $0x4ec] sm:$0xf]  ;;  %v4350_v8 = vld [vmem:[#allocation8 + $0x498] sm:$0xf0] }
 0x15b   :  { %2658 = vmatpush.bf16.msra.mxu0 %v4541_v35  ;;  %v5299_v35 = vld [vmem:[#allocation8 + $0x3cc] sm:$0xf]  ;;  %v4401_v37 = vor.u32 %v5335_v30, %v4398_v31  ;;  %v4030_v11 = vld [vmem:[#allocation8 + $0x218] sm:$0xf0] }
 0x15c   :  { %2668 = vmatpush.bf16.msra.mxu1 %v4717_v24  ;;  %v3777_v24 = vor.u32 %v5179_v18, %v3774_v21  ;;  %v5211_v3 = vld [vmem:[#allocation8 + $0x10c] sm:$0xf]  ;;  %v4206_v18 = vld [vmem:[#allocation8 + $0x378] sm:$0xf0] }
 0x15d   :  { %2680 = vmatpush.bf16.msrb.mxu2 %v3841_v33  ;;  %2646 = vmatmul.bf16.vlgmr.msra.gmra.mxu3 %v5875_v17  ;;  %v4078_v33 = vld [vmem:[#allocation8 + $0x278] sm:$0xf0]  ;;  %v5243_v9 = vld [vmem:[#allocation8 + $0x20c] sm:$0xf]  ;;  %v3905_v21 = vor.u32 %v5211_v3, %v3902_v4 }
 0x15e   :  { %2690 = vmatpush.bf16.msrb.mxu3 %v4017_v22  ;;  %2659 = vmatmul.bf16.vlgmr.msra.gmra.mxu0 %v5878_v44  ;;  %v4254_v22 = vld [vmem:[#allocation8 + $0x3d8] sm:$0xf0]  ;;  %v4081_v40 = vor.u32 %v5255_v32, %v4078_v33  ;;  %v5367_v15 = vld [vmem:[#allocation8 + $0x5ec] sm:$0xf] }
 0x15f   :  { %2703 = vmatpush.bf16.msrb.mxu0 %v4145_v39  ;;  %v3934_v39 = vld [vmem:[#allocation8 + $0x158] sm:$0xf0]  ;;  %v4257_v41 = vor.u32 %v5299_v35, %v4254_v22  ;;  %v5319_v30 = vld [vmem:[#allocation8 + $0x46c] sm:$0xf] }
 0x160   :  { %2669 = vmatpush.bf16.msra.mxu1 %v4701_v49  ;;  %v3937_v50 = vor.u32 %v5219_v38, %v3934_v39  ;;  %v4334_v31 = vld [vmem:[#allocation8 + $0x478] sm:$0xf0]  ;;  %v5363_v35 = vld [vmem:[#allocation8 + $0x5cc] sm:$0xf] }
 0x161   :  { %2681 = vmatpush.bf16.msrb.mxu2 %v3825_v46  ;;  %v4062_v46 = vld [vmem:[#allocation8 + $0x258] sm:$0xf0]  ;;  %v4337_v39 = vor.u32 %v5319_v30, %v4334_v31  ;;  %v5431_v4 = vld [vmem:[#allocation8 + $0x7ec] sm:$0xf]  ;;  %v5916_v30 = vld [vmem:[#allocation10] sm:$0xf] }
 0x162   :  { %2691 = vmatpush.bf16.msrb.mxu3 %v4001_v52  ;;  %v4238_v52 = vld [vmem:[#allocation8 + $0x3b8] sm:$0xf0]  ;;  %v2389_v49 = vpop.f32.mrf.mxu3  ;;  %v4065_v56 = vor.u32 %v5251_v45, %v4062_v46 }
 0x163   :  { %2704 = vmatpush.bf16.msrb.mxu0 %v4129_v55  ;;  %v4241_v57 = vor.u32 %v5295_v47, %v4238_v52  ;;  %v4510_v22 = vld [vmem:[#allocation8 + $0x5d8] sm:$0xf0]  ;;  %v5359_v47 = vld [vmem:[#allocation8 + $0x5ac] sm:$0xf] }
 0x164   :  { %2670 = vmatpush.bf16.msra.mxu1 %v4685_v1  ;;  %v5907_v55 = vpop.f32.mrf.mxu1  ;;  %v3921_v1 = vor.u32 %v5215_v53, %v3918_v54  ;;  %v4638_v38 = vld [vmem:[#allocation8 + $0x6d8] sm:$0xf0]  ;;  %v5279_v49 = vld [vmem:[#allocation8 + $0x32c] sm:$0xf]  ;;  %v4321_v54 = vor.u32 %v5315_v42, %v4318_v43 }
 0x165   :  { %2682 = vmatpush.bf16.msrb.mxu2 %v3809_v61  ;;  %v4046_v61 = vld [vmem:[#allocation8 + $0x238] sm:$0xf0]  ;;  %v5423_v42 = vld [vmem:[#allocation8 + $0x7ac] sm:$0xf] }
 0x166   :  { %2692 = vmatpush.bf16.msrb.mxu3 %v3985_v0  ;;  %v4222_v0 = vld [vmem:[#allocation8 + $0x398] sm:$0xf0]  ;;  %v4049_v6 = vor.u32 %v5247_v60, %v4046_v61  ;;  %v5355_v61 = vld [vmem:[#allocation8 + $0x58c] sm:$0xf] }
 0x167   :  { %2705 = vmatpush.bf16.msrb.mxu0 %v4113_v5  ;;  %v5323_v5 = vld [vmem:[#allocation8 + $0x48c] sm:$0xf]  ;;  %v4225_v7 = vor.u32 %v5291_v63, %v4222_v0  ;;  %v4494_v52 = vld [vmem:[#allocation8 + $0x5b8] sm:$0xf0] }
 0x168   :  { %2671 = vmatpush.bf16.msra.mxu1 %v4669_v20  ;;  %v4654_v20 = vld [vmem:[#allocation8 + $0x6f8] sm:$0xf0]  ;;  %v4353_v23 = vor.u32 %v5323_v5, %v4350_v8  ;;  %v5275_v0 = vld [vmem:[#allocation8 + $0x30c] sm:$0xf] }
 0x169   :  { %2683 = vmatpush.bf16.msrb.mxu2 %v3793_v10  ;;  %v4526_v10 = vld [vmem:[#allocation8 + $0x5f8] sm:$0xf0]  ;;  %v5307_v8 = vld [vmem:[#allocation8 + $0x40c] sm:$0xf] }
 0x16a   :  { %2693 = vmatpush.bf16.msrb.mxu3 %v3969_v19  ;;  %v5399_v19 = vld [vmem:[#allocation8 + $0x6ec] sm:$0xf]  ;;  %v4622_v53 = vld [vmem:[#allocation8 + $0x6b8] sm:$0xf0] }
 0x16b   :  { %2706 = vmatpush.bf16.msrb.mxu0 %v4097_v28  ;;  %2672 = vmatmul.bf16.vlgmr.msra.gmra.mxu1 %v5883_v12  ;;  %v4033_v28 = vor.u32 %v5243_v9, %v4030_v11  ;;  %v4657_v33 = vor.u32 %v5399_v19, %v4654_v20  ;;  %v4302_v58 = vld [vmem:[#allocation8 + $0x438] sm:$0xf0] }
 0x16c   :  { %2716 = vmatpush.bf16.msrb.mxu1 %v4273_v29  ;;  %v2415_v27 = vpop.f32.mrf.mxu1  ;;  %v4529_v29 = vor.u32 %v5367_v15, %v4526_v10  ;;  %v4478_v63 = vld [vmem:[#allocation8 + $0x598] sm:$0xf0]  ;;  %v5351_v10 = vld [vmem:[#allocation8 + $0x56c] sm:$0xf] }
 0x16d   :  { %2684 = vmatpush.bf16.msrb.mxu2 %v3777_v24  ;;  %v5283_v24 = vld [vmem:[#allocation8 + $0x34c] sm:$0xf]  ;;  %v4286_v9 = vld [vmem:[#allocation8 + $0x418] sm:$0xf0] }
 0x16e   :  { %2694 = vmatpush.bf16.msrb.mxu3 %v3953_v36  ;;  %v4190_v36 = vld [vmem:[#allocation8 + $0x358] sm:$0xf0]  ;;  %v4289_v27 = vor.u32 %v5307_v8, %v4286_v9  ;;  %v5371_v8 = vld [vmem:[#allocation8 + $0x60c] sm:$0xf] }
 0x16f   :  { %2707 = vmatpush.bf16.msrb.mxu0 %v4081_v40  ;;  %v4193_v45 = vor.u32 %v5283_v24, %v4190_v36  ;;  %v5449_v20 = vld [vmem:[#allocation11 + $0x74] sm:$0xf0]  ;;  %v4836_v36 = vld [vmem:[#allocation11 + $0x60] sm:$0xf] }
 0x170   :  { %2717 = vmatpush.bf16.msrb.mxu1 %v4257_v41  ;;  %2685 = vmatmul.bf16.vlgmr.msrb.gmra.mxu2 %v5852_v48  ;;  %v5287_v48 = vld [vmem:[#allocation8 + $0x36c] sm:$0xf]  ;;  %v4513_v41 = vor.u32 %v5363_v35, %v4510_v22  ;;  %v4446_v24 = vld [vmem:[#allocation8 + $0x558] sm:$0xf0] }
 0x171   :  { %2729 = vmatpush.bf16.msra.mxu2 %v4401_v37  ;;  %v4209_v32 = vor.u32 %v5287_v48, %v4206_v18  ;;  %v5395_v37 = vld [vmem:[#allocation8 + $0x6cc] sm:$0xf]  ;;  %v4462_v48 = vld [vmem:[#allocation8 + $0x578] sm:$0xf0]  ;;  %v4844_v18 = vld [vmem:[#allocation11 + $0x70] sm:$0xf] }
 0x172   :  { %2695 = vmatpush.bf16.msrb.mxu3 %v3937_v50  ;;  %v4641_v46 = vor.u32 %v5395_v37, %v4638_v38  ;;  %v4174_v50 = vld [vmem:[#allocation8 + $0x338] sm:$0xf0]  ;;  %v5347_v22 = vld [vmem:[#allocation8 + $0x54c] sm:$0xf] }
 0x173   :  { %2708 = vmatpush.bf16.msrb.mxu0 %v4065_v56  ;;  %v5910_v40 = vpop.f32.mrf.mxu2  ;;  %v4497_v56 = vor.u32 %v5359_v47, %v4494_v52  ;;  %v4177_v59 = vor.u32 %v5279_v49, %v4174_v50  ;;  %v5447_v38 = vld [vmem:[#allocation11 + $0x64] sm:$0xf0]  ;;  %v4750_v43 = vld [vmem:[#allocation8 + $0x7b8] sm:$0xf0]  ;;  %v4449_v52 = vor.u32 %v5347_v22, %v4446_v24 }
 0x174   :  { %2718 = vmatpush.bf16.msrb.mxu1 %v4241_v57  ;;  %v5311_v57 = vld [vmem:[#allocation8 + $0x42c] sm:$0xf]  ;;  %v4837_v49 = vor.u32 %v5447_v38, %v4836_v36  ;;  %v4542_v9 = vld [vmem:[#allocation8 + $0x618] sm:$0xf0]  ;;  %v1078_v38 = vperm.slane %v5916_v30, 1 }
 0x175   :  { %2730 = vmatpush.bf16.msra.mxu2 %v4385_v51  ;;  %v5391_v51 = vld [vmem:[#allocation8 + $0x6ac] sm:$0xf]  ;;  %v4305_v3 = vor.u32 %v5311_v57, %v4302_v58  ;;  %v5445_v57 = vld [vmem:[#allocation11 + $0x54] sm:$0xf0] }
 0x176   :  { %2696 = vmatpush.bf16.msrb.mxu3 %v3921_v1  ;;  %v4625_v60 = vor.u32 %v5391_v51, %v4622_v53  ;;  %v4158_v1 = vld [vmem:[#allocation8 + $0x318] sm:$0xf0]  ;;  %v5343_v51 = vld [vmem:[#allocation8 + $0x52c] sm:$0xf] }
 0x177   :  { %2709 = vmatpush.bf16.msrb.mxu0 %v4049_v6  ;;  %v4161_v11 = vor.u32 %v5275_v0, %v4158_v1  ;;  %v4430_v53 = vld [vmem:[#allocation8 + $0x538] sm:$0xf0]  ;;  %v5375_v58 = vld [vmem:[#allocation8 + $0x62c] sm:$0xf] }
 0x178   :  { %2719 = vmatpush.bf16.msrb.mxu1 %v4225_v7  ;;  %v4481_v7 = vor.u32 %v5355_v61, %v4478_v63  ;;  %v4433_v1 = vor.u32 %v5343_v51, %v4430_v53  ;;  %v4702_v22 = vld [vmem:[#allocation8 + $0x758] sm:$0xf0] }
 0x179   :  { %2731 = vmatpush.bf16.msra.mxu2 %v4369_v2  ;;  %v4606_v2 = vld [vmem:[#allocation8 + $0x698] sm:$0xf0] }
 0x17a   :  { %2697 = vmatpush.bf16.msrb.mxu3 %v3905_v21  ;;  %v5383_v21 = vld [vmem:[#allocation8 + $0x66c] sm:$0xf] }
 0x17b   :  { %2710 = vmatpush.bf16.msrb.mxu0 %v4033_v28  ;;  %v2428_v5 = vpop.f32.mrf.mxu2  ;;  %v5914_v6 = vpop.f32.mrf.mxu0  ;;  %v5427_v28 = vld [vmem:[#allocation8 + $0x7cc] sm:$0xf] }
 0x17c   :  { %2720 = vmatpush.bf16.msrb.mxu1 %v4209_v32  ;;  %v4465_v32 = vor.u32 %v5351_v10, %v4462_v48  ;;  %v4718_v10 = vld [vmem:[#allocation8 + $0x778] sm:$0xf0] }
 0x17d   :  { %2732 = vmatpush.bf16.msra.mxu2 %v4353_v23  ;;  %2698 = vmatmul.bf16.vlgmr.msrb.gmra.mxu3 %v5861_v26  ;;  %v5387_v26 = vld [vmem:[#allocation8 + $0x68c] sm:$0xf]  ;;  %v4590_v23 = vld [vmem:[#allocation8 + $0x678] sm:$0xf0] }
 0x17e   :  { %2742 = vmatpush.bf16.msra.mxu3 %v4529_v29  ;;  %2711 = vmatmul.bf16.vlgmr.msrb.gmra.mxu0 %v5856_v62  ;;  %v4782_v62 = vld [vmem:[#allocation8 + $0x7f8] sm:$0xf0]  ;;  %v4609_v15 = vor.u32 %v5387_v26, %v4606_v2  ;;  %v4593_v35 = vor.u32 %v5383_v21, %v4590_v23  ;;  %v5339_v26 = vld [vmem:[#allocation8 + $0x50c] sm:$0xf]  ;;  %v4545_v21 = vor.u32 %v5371_v8, %v4542_v9  ;;  %v4846_v8 = vld [vmem:[#allocation11 + $0x78] sm:$0xf0] }
 0x17f   :  { %2755 = vmatpush.bf16.msra.mxu0 %v4657_v33  ;;  %v4785_v19 = vor.u32 %v5431_v4, %v4782_v62  ;;  %v4766_v29 = vld [vmem:[#allocation8 + $0x7d8] sm:$0xf0]  ;;  %v4845_v33 = vor.u32 %v5449_v20, %v4844_v18  ;;  %v4820_v4 = vld [vmem:[#allocation11 + $0x40] sm:$0xf]  ;;  %v5443_v62 = vld [vmem:[#allocation11 + $0x44] sm:$0xf0] }
 0x180   :  { %2721 = vmatpush.bf16.msrb.mxu1 %v4193_v45  ;;  %v5918_v31 = vpop.f32.mrf.mxu3  ;;  %v4769_v37 = vor.u32 %v5427_v28, %v4766_v29  ;;  %v1077_v45 = vperm.slane %v5916_v30, 0  ;;  %v4821_v20 = vor.u32 %v5443_v62, %v4820_v4  ;;  %v4812_v28 = vld [vmem:[#allocation11 + $0x30] sm:$0xf]  ;;  %v5441_v29 = vld [vmem:[#allocation11 + $0x34] sm:$0xf0] }
 0x181   :  { %2733 = vmatpush.bf16.msra.mxu2 %v4337_v39  ;;  %v5379_v39 = vld [vmem:[#allocation8 + $0x64c] sm:$0xf]  ;;  %v4788_v4 = vld [vmem:[#allocation11] sm:$0xf] }
 0x182   :  { %2743 = vmatpush.bf16.msra.mxu3 %v4513_v41  ;;  %v4574_v41 = vld [vmem:[#allocation8 + $0x658] sm:$0xf0]  ;;  %v2375_v61 = vadd.f32 %v5900_v25, %v1077_v45  ;;  %v4908_v25 = vld [vmem:[#allocation11 + $0xf0] sm:$0xf]  ;;  %v5439_v45 = vld [vmem:[#allocation11 + $0x24] sm:$0xf0] }
 0x183   :  { %2756 = vmatpush.bf16.msra.mxu0 %v4641_v46  ;;  %v2454_v46 = vpop.f32.mrf.mxu0  ;;  %v5922_v47 = vpop.f32.mrf.mxu2  ;;  %v4577_v50 = vor.u32 %v5379_v39, %v4574_v41  ;;  %v4813_v39 = vor.u32 %v5441_v29, %v4812_v28  ;;  %v5435_v62 = vld [vmem:[#allocation11 + $0x4] sm:$0xf0]  ;;  %v4838_v28 = vld [vmem:[#allocation11 + $0x68] sm:$0xf0] }
 0x184   :  { %2722 = vmatpush.bf16.msrb.mxu1 %v4177_v59  ;;  %v4558_v59 = vld [vmem:[#allocation8 + $0x638] sm:$0xf0]  ;;  %v2388_v5 = vadd.f32 %v5904_v16, %v2375_v61  ;;  %v4892_v46 = vld [vmem:[#allocation11 + $0xd0] sm:$0xf] }
 0x185   :  { %2734 = vmatpush.bf16.msra.mxu2 %v4321_v54  ;;  %v4828_v54 = vld [vmem:[#allocation11 + $0x50] sm:$0xf]  ;;  %v4670_v61 = vld [vmem:[#allocation8 + $0x718] sm:$0xf0] }
 0x186   :  { %2744 = vmatpush.bf16.msra.mxu3 %v4497_v56  ;;  %v4753_v56 = vor.u32 %v5423_v42, %v4750_v43  ;;  %v4829_v2 = vor.u32 %v5445_v57, %v4828_v54  ;;  %v2401_v23 = vadd.f32 %v5898_v13, %v2388_v5  ;;  %v4804_v43 = vld [vmem:[#allocation11 + $0x20] sm:$0xf]  ;;  %v4796_v57 = vld [vmem:[#allocation11 + $0x10] sm:$0xf] }
 0x187   :  { %2757 = vmatpush.bf16.msra.mxu0 %v4625_v60  ;;  %v4734_v60 = vld [vmem:[#allocation8 + $0x798] sm:$0xf0]  ;;  %v4876_v5 = vld [vmem:[#allocation11 + $0xb0] sm:$0xf] }
 0x188   :  { %2723 = vmatpush.bf16.msrb.mxu1 %v4161_v11  ;;  %v2441_v63 = vpop.f32.mrf.mxu3  ;;  %v5926_v0 = vpop.f32.mrf.mxu1  ;;  %v5465_v11 = vld [vmem:[#allocation11 + $0xf4] sm:$0xf0]  ;;  %v2414_v24 = vadd.f32 %v5907_v55, %v2401_v23 }
 0x189   :  { %2735 = vmatpush.bf16.msra.mxu2 %v4305_v3  ;;  %v4561_v3 = vor.u32 %v5375_v58, %v4558_v59  ;;  %v4909_v16 = vor.u32 %v5465_v11, %v4908_v25  ;;  %v5461_v55 = vld [vmem:[#allocation11 + $0xd4] sm:$0xf0]  ;;  %v4884_v59 = vld [vmem:[#allocation11 + $0xc0] sm:$0xf]  ;;  %v4789_v11 = vor.u32 %v5435_v62, %v4788_v4 }
 0x18a   :  { %2745 = vmatpush.bf16.msra.mxu3 %v4481_v7  ;;  %v2427_v13 = vadd.f32 %v5910_v40, %v2414_v24  ;;  %v4805_v40 = vor.u32 %v5439_v45, %v4804_v43  ;;  %v4893_v54 = vor.u32 %v5461_v55, %v4892_v46  ;;  %v5437_v58 = vld [vmem:[#allocation11 + $0x14] sm:$0xf0]  ;;  %v4956_v43 = vld [vmem:[#allocation11 + $0x150] sm:$0xf] }
 0x18b   :  { %2758 = vmatpush.bf16.msra.mxu0 %v4609_v15  ;;  %2724 = vmatmul.bf16.vlgmr.msrb.gmra.mxu1 %v5866_v14  ;;  %v5419_v14 = vld [vmem:[#allocation8 + $0x78c] sm:$0xf]  ;;  %v2480_v48 = vpop.f32.mrf.mxu2  ;;  %v5929_v18 = vpop.f32.mrf.mxu0  ;;  %v5477_v45 = vld [vmem:[#allocation11 + $0x154] sm:$0xf0] }
 0x18c   :  { %2768 = vmatpush.bf16.msra.mxu1 %v4785_v19  ;;  %v4737_v7 = vor.u32 %v5419_v14, %v4734_v60  ;;  %v5415_v15 = vld [vmem:[#allocation8 + $0x76c] sm:$0xf]  ;;  %v5473_v4 = vld [vmem:[#allocation11 + $0x134] sm:$0xf0] }
 0x18d   :  { %2736 = vmatpush.bf16.msra.mxu2 %v4289_v27  ;;  %v4721_v27 = vor.u32 %v5415_v15, %v4718_v10  ;;  %v5459_v14 = vld [vmem:[#allocation11 + $0xc4] sm:$0xf0]  ;;  %v4972_v15 = vld [vmem:[#allocation11 + $0x170] sm:$0xf]  ;;  %v5481_v10 = vld [vmem:[#allocation11 + $0x174] sm:$0xf0] }
 0x18e   :  { %2746 = vmatpush.bf16.msra.mxu3 %v4465_v32  ;;  %v4900_v32 = vld [vmem:[#allocation11 + $0xe0] sm:$0xf]  ;;  %v5403_v60 = vld [vmem:[#allocation8 + $0x70c] sm:$0xf]  ;;  %v4973_v23 = vor.u32 %v5481_v10, %v4972_v15  ;;  %v4894_v15 = vld [vmem:[#allocation11 + $0xd8] sm:$0xf0] }
 0x18f   :  { %2759 = vmatpush.bf16.msra.mxu0 %v4593_v35  ;;  %v5411_v35 = vld [vmem:[#allocation8 + $0x74c] sm:$0xf] }
 0x190   :  { %2737 = vmatmul.bf16.vlgmr.msra.gmra.mxu2 %v5870_v34  ;;  %2769 = vmatpush.bf16.msra.mxu1 %v4769_v37  ;;  %v4414_v34 = vld [vmem:[#allocation8 + $0x518] sm:$0xf0]  ;;  %v2467_v36 = vpop.f32.mrf.mxu1  ;;  %v2491_v37 = vpop.f32.mrf.mxu3  ;;  %v4705_v42 = vor.u32 %v5411_v35, %v4702_v22  ;;  %v5479_v35 = vld [vmem:[#allocation11 + $0x164] sm:$0xf0] }
 0x191   :  { %3179 = vmatpush.bf16.msrb.mxu2 %v4845_v33  ;;  %v4417_v19 = vor.u32 %v5339_v26, %v4414_v34  ;;  %v5463_v33 = vld [vmem:[#allocation11 + $0xe4] sm:$0xf0]  ;;  %v4797_v26 = vor.u32 %v5437_v58, %v4796_v57  ;;  %v4673_v34 = vor.u32 %v5403_v60, %v4670_v61  ;;  %v4860_v36 = vld [vmem:[#allocation11 + $0x90] sm:$0xf]  ;;  %v4948_v58 = vld [vmem:[#allocation11 + $0x140] sm:$0xf] }
 0x192   :  { %2747 = vmatpush.bf16.msra.mxu3 %v4449_v52  ;;  %v4901_v41 = vor.u32 %v5463_v33, %v4900_v32  ;;  %v5407_v52 = vld [vmem:[#allocation8 + $0x72c] sm:$0xf]  ;;  %v4964_v33 = vld [vmem:[#allocation11 + $0x160] sm:$0xf] }
 0x193   :  { %2760 = vmatpush.bf16.msra.mxu0 %v4577_v50  ;;  %v2440_v50 = vadd.f32 %v5918_v31, %v2427_v13  ;;  %v2506_v51 = vpop.f32.mrf.mxu0  ;;  %v5938_v53 = vpop.f32.mrf.mxu2  ;;  %v5444_v13 = vld [vmem:[#allocation11 + $0x54] sm:$0xf] }
 0x194   :  { %2770 = vmatpush.bf16.msra.mxu1 %v4753_v56  ;;  %v5442_v51 = vld [vmem:[#allocation11 + $0x44] sm:$0xf] }
 0x195   :  { %3180 = vmatpush.bf16.msrb.mxu2 %v4837_v49  ;;  %v4686_v49 = vld [vmem:[#allocation8 + $0x738] sm:$0xf0]  ;;  %v2453_v31 = vadd.f32 %v5914_v6, %v2440_v50  ;;  %v5451_v50 = vld [vmem:[#allocation11 + $0x84] sm:$0xf0] }
 0x196   :  { %2748 = vmatpush.bf16.msra.mxu3 %v4433_v1  ;;  %v4689_v56 = vor.u32 %v5407_v52, %v4686_v49  ;;  %v4852_v52 = vld [vmem:[#allocation11 + $0x80] sm:$0xf]  ;;  %v4957_v49 = vor.u32 %v5477_v45, %v4956_v43  ;;  %v5480_v43 = vld [vmem:[#allocation11 + $0x174] sm:$0xf]  ;;  %v4974_v45 = vld [vmem:[#allocation11 + $0x178] sm:$0xf0] }
 0x197   :  { %2761 = vmatpush.bf16.msra.mxu0 %v4561_v3  ;;  %v4885_v3 = vor.u32 %v5459_v14, %v4884_v59  ;;  %v5475_v59 = vld [vmem:[#allocation11 + $0x144] sm:$0xf0]  ;;  %v4853_v14 = vor.u32 %v5451_v50, %v4852_v52  ;;  %v5454_v52 = vld [vmem:[#allocation11 + $0xa4] sm:$0xf] }
 0x198   :  { %2771 = vmatpush.bf16.msra.mxu1 %v4737_v7  ;;  %v2517_v1 = vpop.f32.mrf.mxu1  ;;  %v5448_v7 = vld [vmem:[#allocation11 + $0x74] sm:$0xf]  ;;  %v4949_v61 = vor.u32 %v5475_v59, %v4948_v58 }
 0x199   :  { %3181 = vmatpush.bf16.msrb.mxu2 %v4829_v2  ;;  %v2466_v2 = vadd.f32 %v5926_v0, %v2453_v31  ;;  %v5476_v59 = vld [vmem:[#allocation11 + $0x154] sm:$0xf] }
 0x19a   :  { %2749 = vmatpush.bf16.msra.mxu3 %v4417_v19  ;;  %v4849_v19 = vor.u32 %v5448_v7, %v4846_v8 }
 0x19b   :  { %2762 = vmatpush.bf16.msra.mxu0 %v4545_v21  ;;  %v2532_v9 = vpop.f32.mrf.mxu2  ;;  %v2556_v25 = vpop.f32.mrf.mxu0  ;;  %v2781_v48 = vmax.f32 %v2466_v2, 0.0  ;;  %v5455_v21 = vld [vmem:[#allocation11 + $0xa4] sm:$0xf0]  ;;  %v4902_v2 = vld [vmem:[#allocation11 + $0xe8] sm:$0xf0] }
 0x19c   :  { %2772 = vmatpush.bf16.msra.mxu1 %v4721_v27  ;;  %v5446_v27 = vld [vmem:[#allocation11 + $0x64] sm:$0xf]  ;;  %v4806_v9 = vld [vmem:[#allocation11 + $0x28] sm:$0xf0] }
 0x19d   :  { %3182 = vmatpush.bf16.msrb.mxu2 %v4821_v20  ;;  %2750 = vmatmul.bf16.vlgmr.msra.gmra.mxu3 %v5875_v17  ;;  %v2479_v17 = vadd.f32 %v5922_v47, %v1078_v38  ;;  %v5457_v47 = vld [vmem:[#allocation11 + $0xb4] sm:$0xf0]  ;;  %v4868_v20 = vld [vmem:[#allocation11 + $0xa0] sm:$0xf]  ;;  %v5945_v22 = vpack.c.bf16 %v2781_v48, %v2781_v48  ;;  %v4841_v24 = vor.u32 %v5446_v27, %v4838_v28  ;;  %v4886_v27 = vld [vmem:[#allocation11 + $0xc8] sm:$0xf0] }
 0x19e   :  { %3192 = vmatpush.bf16.msrb.mxu3 %v4909_v16  ;;  %2763 = vmatmul.bf16.vlgmr.msra.gmra.mxu0 %v5878_v44  ;;  %v2493_v44 = vpop.f32.mrf.mxu3  ;;  %v4877_v0 = vor.u32 %v5457_v47, %v4876_v5  ;;  %v4869_v32 = vor.u32 %v5455_v21, %v4868_v20  ;;  %v5438_v5 = vld [vmem:[#allocation11 + $0x24] sm:$0xf]  ;;  %v5436_v21 = vld [vmem:[#allocation11 + $0x14] sm:$0xf]  ;;  %v4924_v28 = vld [vmem:[#allocation11 + $0x110] sm:$0xf] }
 0x19f   :  { %v2492_v63 = vadd.f32 %v2491_v37, %v2479_v17  ;;  %3205 = vmatpush.bf16.msrb.mxu0 %v4973_v23  ;;  %v4965_v37 = vor.u32 %v5479_v35, %v4964_v33  ;;  %v4798_v23 = vld [vmem:[#allocation11 + $0x18] sm:$0xf0]  ;;  %v4916_v33 = vld [vmem:[#allocation11 + $0x100] sm:$0xf]  ;;  %v5467_v35 = vld [vmem:[#allocation11 + $0x104] sm:$0xf0] }
 0x1a0   :  { %2773 = vmatpush.bf16.msra.mxu1 %v4705_v42 }
 0x1a1   :  { %3183 = vmatpush.bf16.msrb.mxu2 %v4813_v39  ;;  %v2505_v6 = vadd.f32 %v5929_v18, %v2492_v63  ;;  %v2519_v18 = vpop.f32.mrf.mxu1  ;;  %v5453_v39 = vld [vmem:[#allocation11 + $0x94] sm:$0xf0]  ;;  %v5440_v63 = vld [vmem:[#allocation11 + $0x34] sm:$0xf] }
 0x1a2   :  { %3193 = vmatpush.bf16.msrb.mxu3 %v4901_v41  ;;  %v4830_v41 = vld [vmem:[#allocation11 + $0x58] sm:$0xf0]  ;;  %v4861_v46 = vor.u32 %v5453_v39, %v4860_v36  ;;  %v5469_v18 = vld [vmem:[#allocation11 + $0x114] sm:$0xf0]  ;;  %v5434_v36 = vld [vmem:[#allocation11 + $0x4] sm:$0xf] }
 0x1a3   :  { %v2518_v16 = vadd.f32 %v2517_v1, %v2505_v6  ;;  %3206 = vmatpush.bf16.msrb.mxu0 %v4965_v37  ;;  %v4833_v55 = vor.u32 %v5444_v13, %v4830_v41  ;;  %v4814_v1 = vld [vmem:[#allocation11 + $0x38] sm:$0xf0]  ;;  %v5471_v6 = vld [vmem:[#allocation11 + $0x124] sm:$0xf0]  ;;  %v4790_v37 = vld [vmem:[#allocation11 + $0x8] sm:$0xf0]  ;;  %v4917_v13 = vor.u32 %v5467_v35, %v4916_v33 }
 0x1a4   :  { %2774 = vmatpush.bf16.msra.mxu1 %v4689_v56  ;;  %v4817_v62 = vor.u32 %v5440_v63, %v4814_v1  ;;  %v4878_v39 = vld [vmem:[#allocation11 + $0xb8] sm:$0xf0]  ;;  %v5474_v1 = vld [vmem:[#allocation11 + $0x144] sm:$0xf]  ;;  %v5495_v33 = vld [vmem:[#allocation11 + $0x1e4] sm:$0xf0] }
 0x1a5   :  { %3184 = vmatpush.bf16.msrb.mxu2 %v4805_v40  ;;  %v2531_v38 = vadd.f32 %v5938_v53, %v2518_v16  ;;  %v4822_v40 = vld [vmem:[#allocation11 + $0x48] sm:$0xf0]  ;;  %v5464_v53 = vld [vmem:[#allocation11 + $0xf4] sm:$0xf]  ;;  %v5458_v16 = vld [vmem:[#allocation11 + $0xc4] sm:$0xf] }
 0x1a6   :  { %3194 = vmatpush.bf16.msrb.mxu3 %v4893_v54  ;;  %v2543_v29 = vpop.f32.mrf.mxu3  ;;  %v4910_v54 = vld [vmem:[#allocation11 + $0xf8] sm:$0xf0]  ;;  %v4825_v60 = vor.u32 %v5442_v51, %v4822_v40  ;;  %v5478_v51 = vld [vmem:[#allocation11 + $0x164] sm:$0xf]  ;;  %v4966_v40 = vld [vmem:[#allocation11 + $0x168] sm:$0xf0] }
 0x1a7   :  { %v2544_v42 = vadd.f32 %v2543_v29, %v2531_v38  ;;  %3207 = vmatpush.bf16.msrb.mxu0 %v4957_v49  ;;  %v4913_v44 = vor.u32 %v5464_v53, %v4910_v54  ;;  %v4801_v29 = vor.u32 %v5436_v21, %v4798_v23  ;;  %v5456_v38 = vld [vmem:[#allocation11 + $0xb4] sm:$0xf]  ;;  %v4870_v49 = vld [vmem:[#allocation11 + $0xa8] sm:$0xf0]  ;;  %v4969_v54 = vor.u32 %v5478_v51, %v4966_v40 }
 0x1a8   :  { %2775 = vmatpush.bf16.msra.mxu1 %v4673_v34  ;;  %v4940_v34 = vld [vmem:[#allocation11 + $0x130] sm:$0xf]  ;;  %v4873_v53 = vor.u32 %v5454_v52, %v4870_v49 }
 0x1a9   :  { %3185 = vmatpush.bf16.msrb.mxu2 %v4797_v26  ;;  %v2557_v57 = vadd.f32 %v2556_v25, %v2544_v42  ;;  %v2569_v17 = vpop.f32.mrf.mxu1  ;;  %v5462_v26 = vld [vmem:[#allocation11 + $0xe4] sm:$0xf]  ;;  %v4941_v47 = vor.u32 %v5473_v4, %v4940_v34  ;;  %v4932_v25 = vld [vmem:[#allocation11 + $0x120] sm:$0xf]  ;;  %v4793_v42 = vor.u32 %v5434_v36, %v4790_v37  ;;  %v5472_v34 = vld [vmem:[#allocation11 + $0x134] sm:$0xf] }
 0x1aa   :  { %3195 = vmatpush.bf16.msrb.mxu3 %v4885_v3  ;;  %v4905_v8 = vor.u32 %v5462_v26, %v4902_v2  ;;  %v4933_v10 = vor.u32 %v5471_v6, %v4932_v25  ;;  %v4950_v26 = vld [vmem:[#allocation11 + $0x148] sm:$0xf0]  ;;  %v5004_v49 = vld [vmem:[#allocation11 + $0x1b0] sm:$0xf] }
 0x1ab   :  { %2776 = vmatmul.bf16.vlgmr.msra.gmra.mxu1 %v5883_v12  ;;  %v2558_v12 = vpop.f32.mrf.mxu0  ;;  %v2570_v31 = vadd.f32 %v2569_v17, %v2557_v57  ;;  %3208 = vmatpush.bf16.msrb.mxu0 %v4949_v61  ;;  %v4862_v57 = vld [vmem:[#allocation11 + $0x98] sm:$0xf0]  ;;  %v5450_v61 = vld [vmem:[#allocation11 + $0x84] sm:$0xf] }
 0x1ac   :  { %v4958_v17 = vld [vmem:[#allocation11 + $0x158] sm:$0xf0] }
 0x1ad   :  { %3186 = vmatpush.bf16.msrb.mxu2 %v4789_v11  ;;  %v2782_v3 = vmax.f32 %v2570_v31, 0.0  ;;  %v5460_v11 = vld [vmem:[#allocation11 + $0xd4] sm:$0xf]  ;;  %v4854_v31 = vld [vmem:[#allocation11 + $0x88] sm:$0xf0] }
 0x1ae   :  { %3196 = vmatpush.bf16.msrb.mxu3 %v4877_v0  ;;  %v2545_v56 = vpop.f32.mrf.mxu3  ;;  %v4897_v20 = vor.u32 %v5460_v11, %v4894_v15  ;;  %v4857_v2 = vor.u32 %v5450_v61, %v4854_v31  ;;  %v5468_v11 = vld [vmem:[#allocation11 + $0x114] sm:$0xf]  ;;  %v4926_v15 = vld [vmem:[#allocation11 + $0x118] sm:$0xf0]  ;;  %v5483_v61 = vld [vmem:[#allocation11 + $0x184] sm:$0xf0] }
 0x1af   :  { %v5949_v7 = vpack.c.bf16 %v2782_v3, %v2782_v3  ;;  %3209 = vmatpush.bf16.msrb.mxu0 %v4941_v47  ;;  %v5452_v56 = vld [vmem:[#allocation11 + $0x94] sm:$0xf]  ;;  %v4953_v3 = vor.u32 %v5474_v1, %v4950_v26  ;;  %v1079_v47 = vperm.slane %v5916_v30, 2  ;;  %v5038_v26 = vld [vmem:[#allocation11 + $0x1f8] sm:$0xf0] }
 0x1b0   :  { %3187 = vmatmul.bf16.vlgmr.msrb.gmra.mxu2 %v5945_v22  ;;  %v5496_v1 = vld [vmem:[#allocation11 + $0x1f4] sm:$0xf] }
 0x1b1   :  { %3231 = vmatpush.bf16.msra.mxu2 %v4849_v19  ;;  %v2571_v0 = vpop.f32.mrf.mxu1  ;;  %v4809_v19 = vor.u32 %v5438_v5, %v4806_v9  ;;  %v4934_v5 = vld [vmem:[#allocation11 + $0x128] sm:$0xf0] }
 0x1b2   :  { %3197 = vmatpush.bf16.msrb.mxu3 %v4869_v32  ;;  %v4925_v32 = vor.u32 %v5469_v18, %v4924_v28  ;;  %v5497_v28 = vld [vmem:[#allocation11 + $0x1f4] sm:$0xf0] }
 0x1b3   :  { %v5951_v48 = vpop.f32.mrf.mxu2  ;;  %3210 = vmatpush.bf16.msrb.mxu0 %v4933_v10  ;;  %v4929_v10 = vor.u32 %v5468_v11, %v4926_v15 }
 0x1b4   :  { %v2583_v6 = vadd.f32 %v5951_v48, %v1079_v47  ;;  %v5028_v48 = vld [vmem:[#allocation11 + $0x1e0] sm:$0xf]  ;;  %v5022_v47 = vld [vmem:[#allocation11 + $0x1d8] sm:$0xf0] }
 0x1b5   :  { %3232 = vmatpush.bf16.msra.mxu2 %v4841_v24  ;;  %v4889_v24 = vor.u32 %v5458_v16, %v4886_v27  ;;  %v5036_v27 = vld [vmem:[#allocation11 + $0x1f0] sm:$0xf] }
 0x1b6   :  { %3198 = vmatpush.bf16.msrb.mxu3 %v4861_v46  ;;  %v4881_v46 = vor.u32 %v5456_v38, %v4878_v39  ;;  %v5037_v18 = vor.u32 %v5497_v28, %v5036_v27  ;;  %v5020_v38 = vld [vmem:[#allocation11 + $0x1d0] sm:$0xf]  ;;  %v5493_v39 = vld [vmem:[#allocation11 + $0x1d4] sm:$0xf0] }
 0x1b7   :  { %3211 = vmatpush.bf16.msrb.mxu0 %v4925_v32 }
 0x1b8   :  { %3218 = vmatpush.bf16.msrb.mxu1 %v5037_v18  ;;  %v4990_v18 = vld [vmem:[#allocation11 + $0x198] sm:$0xf0] }
 0x1b9   :  { %3233 = vmatpush.bf16.msra.mxu2 %v4833_v55  ;;  %v4977_v55 = vor.u32 %v5480_v43, %v4974_v45  ;;  %v5491_v43 = vld [vmem:[#allocation11 + $0x1c4] sm:$0xf0] }
 0x1ba   :  { %3199 = vmatpush.bf16.msrb.mxu3 %v4853_v14  ;;  %v4865_v14 = vor.u32 %v5452_v56, %v4862_v57 }
 0x1bb   :  { %v2584_v41 = vpop.f32.mrf.mxu2  ;;  %v5954_v12 = vpop.f32.mrf.mxu0  ;;  %3212 = vmatpush.bf16.msrb.mxu0 %v4917_v13  ;;  %v5021_v13 = vor.u32 %v5493_v39, %v5020_v38 }
 0x1bd   :  { %3234 = vmatpush.bf16.msra.mxu2 %v4825_v60  ;;  %3200 = vmatmul.bf16.vlgmr.msrb.gmra.mxu3 %v5949_v7  ;;  %v4961_v60 = vor.u32 %v5476_v59, %v4958_v17  ;;  %v4988_v59 = vld [vmem:[#allocation11 + $0x190] sm:$0xf]  ;;  %v5485_v17 = vld [vmem:[#allocation11 + $0x194] sm:$0xf0] }
 0x1be   :  { %3244 = vmatpush.bf16.msra.mxu3 %v4913_v44 }
 0x1bf   :  { %3257 = vmatpush.bf16.msra.mxu0 %v4977_v55 }
 0x1c0   :  { %v2595_v50 = vpop.f32.mrf.mxu3 }
 0x1c1   :  { %3235 = vmatpush.bf16.msra.mxu2 %v4817_v62  ;;  %v5470_v62 = vld [vmem:[#allocation11 + $0x124] sm:$0xf]  ;;  %v2596_v0 = vadd.f32 %v2595_v50, %v2583_v6  ;;  %v5489_v50 = vld [vmem:[#allocation11 + $0x1b4] sm:$0xf0] }
 0x1c2   :  { %3245 = vmatpush.bf16.msra.mxu3 %v4905_v8  ;;  %v4937_v25 = vor.u32 %v5470_v62, %v4934_v5  ;;  %v5005_v40 = vor.u32 %v5489_v50, %v5004_v49  ;;  %v5492_v5 = vld [vmem:[#allocation11 + $0x1d4] sm:$0xf] }
 0x1c3   :  { %v2610_v58 = vpop.f32.mrf.mxu0  ;;  %3258 = vmatpush.bf16.msra.mxu0 %v4969_v54  ;;  %v5487_v54 = vld [vmem:[#allocation11 + $0x1a4] sm:$0xf0] }
 0x1c5   :  { %3236 = vmatpush.bf16.msra.mxu2 %v4809_v19  ;;  %v5466_v19 = vld [vmem:[#allocation11 + $0x104] sm:$0xf] }
 0x1c6   :  { %3246 = vmatpush.bf16.msra.mxu3 %v4897_v20  ;;  %v4918_v20 = vld [vmem:[#allocation11 + $0x108] sm:$0xf0] }
 0x1c7   :  { %3259 = vmatpush.bf16.msra.mxu0 %v4961_v60  ;;  %v4921_v21 = vor.u32 %v5466_v19, %v4918_v20  ;;  %v4980_v60 = vld [vmem:[#allocation11 + $0x180] sm:$0xf]  ;;  %v5486_v20 = vld [vmem:[#allocation11 + $0x1a4] sm:$0xf] }
 0x1c8   :  { %v2597_v44 = vpop.f32.mrf.mxu3  ;;  %v2621_v63 = vpop.f32.mrf.mxu1  ;;  %v4981_v31 = vor.u32 %v5483_v61, %v4980_v60 }
 0x1c9   :  { %3237 = vmatpush.bf16.msra.mxu2 %v4801_v29 }
 0x1ca   :  { %3247 = vmatpush.bf16.msra.mxu3 %v4889_v24  ;;  %v5029_v24 = vor.u32 %v5495_v33, %v5028_v48  ;;  %v5482_v33 = vld [vmem:[#allocation11 + $0x184] sm:$0xf] }
 0x1cb   :  { %3260 = vmatpush.bf16.msra.mxu0 %v4953_v3  ;;  %v5494_v3 = vld [vmem:[#allocation11 + $0x1e4] sm:$0xf] }
 0x1cc   :  { %3219 = vmatpush.bf16.msrb.mxu1 %v5029_v24 }
 0x1cd   :  { %3238 = vmatpush.bf16.msra.mxu2 %v4793_v42  ;;  %v5012_v42 = vld [vmem:[#allocation11 + $0x1c0] sm:$0xf] }
 0x1ce   :  { %3248 = vmatpush.bf16.msra.mxu3 %v4881_v46  ;;  %v5013_v46 = vor.u32 %v5491_v43, %v5012_v42 }
 0x1d0   :  { %3239 = vmatmul.bf16.vlgmr.msra.gmra.mxu2 %v5945_v22  ;;  %v4942_v22 = vld [vmem:[#allocation11 + $0x138] sm:$0xf0]  ;;  %v2623_v8 = vpop.f32.mrf.mxu1  ;;  %3220 = vmatpush.bf16.msrb.mxu1 %v5021_v13 }
 0x1d1   :  { %v4945_v4 = vor.u32 %v5472_v34, %v4942_v22  ;;  %v5030_v34 = vld [vmem:[#allocation11 + $0x1e8] sm:$0xf0]  ;;  %v5025_v8 = vor.u32 %v5492_v5, %v5022_v47  ;;  %v5500_v5 = vld [vmem:[#allocation13 + $0x10] sm:$0xff] }
 0x1d2   :  { %3249 = vmatpush.bf16.msra.mxu3 %v4873_v53  ;;  %v4996_v53 = vld [vmem:[#allocation11 + $0x1a0] sm:$0xf] }
 0x1d3   :  { %3261 = vmatpush.bf16.msra.mxu0 %v4945_v4  ;;  %v2634_v9 = vpop.f32.mrf.mxu2  ;;  %v4997_v57 = vor.u32 %v5487_v54, %v4996_v53  ;;  %v5033_v4 = vor.u32 %v5494_v3, %v5030_v34  ;;  %v5503_v3 = vld [vmem:[#allocation13 + $0x28] sm:$0xff] }
 0x1d4   :  { %3221 = vmatpush.bf16.msrb.mxu1 %v5013_v46 }
 0x1d6   :  { %3250 = vmatpush.bf16.msra.mxu3 %v4865_v14  ;;  %v4989_v14 = vor.u32 %v5485_v17, %v4988_v59 }
 0x1d7   :  { %3262 = vmatpush.bf16.msra.mxu0 %v4937_v25  ;;  %v5014_v25 = vld [vmem:[#allocation11 + $0x1c8] sm:$0xf0] }
 0x1d8   :  { %3222 = vmatpush.bf16.msrb.mxu1 %v5005_v40 }
 0x1da   :  { %3251 = vmatpush.bf16.msra.mxu3 %v4857_v2  ;;  %v5041_v2 = vor.u32 %v5496_v1, %v5038_v26  ;;  %v5513_v1 = vld [vmem:[#allocation13 + $0x78] sm:$0xff]  ;;  %v5504_v26 = vld [vmem:[#allocation13 + $0x30] sm:$0xff] }
 0x1db   :  { %3263 = vmatpush.bf16.msra.mxu0 %v4929_v10  ;;  %v2636_v23 = vpop.f32.mrf.mxu2  ;;  %v2660_v16 = vpop.f32.mrf.mxu0  ;;  %v5488_v10 = vld [vmem:[#allocation11 + $0x1b4] sm:$0xf] }
 0x1dc   :  { %3223 = vmatpush.bf16.msrb.mxu1 %v4997_v57  ;;  %v1080_v23 = vperm.slane %v5916_v30, 3 }
 0x1dd   :  { %3252 = vmatmul.bf16.vlgmr.msra.gmra.mxu3 %v5949_v7  ;;  %v2609_v7 = vadd.f32 %v5954_v12, %v2596_v0  ;;  %v5006_v0 = vld [vmem:[#allocation11 + $0x1b8] sm:$0xf0] }
 0x1de   :  { %v5009_v19 = vor.u32 %v5488_v10, %v5006_v0  ;;  %3432 = vmatpush.bf16.msrb.mxu3 %v5513_v1  ;;  %v5508_v10 = vld [vmem:[#allocation13 + $0x50] sm:$0xff]  ;;  %v5507_v0 = vld [vmem:[#allocation13 + $0x48] sm:$0xff] }
 0x1df   :  { %3264 = vmatpush.bf16.msra.mxu0 %v4921_v21  ;;  %v2622_v29 = vadd.f32 %v2621_v63, %v2609_v7  ;;  %v4998_v21 = vld [vmem:[#allocation11 + $0x1a8] sm:$0xf0]  ;;  %v5484_v7 = vld [vmem:[#allocation11 + $0x194] sm:$0xf] }
 0x1e0   :  { %v2647_v32 = vpop.f32.mrf.mxu3  ;;  %3224 = vmatpush.bf16.msrb.mxu1 %v4989_v14  ;;  %v5001_v28 = vor.u32 %v5486_v20, %v4998_v21 }
 0x1e1   :  { %v2635_v35 = vadd.f32 %v2634_v9, %v2622_v29  ;;  %v5490_v9 = vld [vmem:[#allocation11 + $0x1c4] sm:$0xf] }
 0x1e2   :  { %v5017_v15 = vor.u32 %v5490_v9, %v5014_v25  ;;  %v5499_v9 = vld [vmem:[#allocation13 + $0x8] sm:$0xff] }
 0x1e3   :  { %v2648_v36 = vadd.f32 %v2647_v32, %v2635_v35  ;;  %v2662_v37 = vpop.f32.mrf.mxu0  ;;  %v4993_v32 = vor.u32 %v5484_v7, %v4990_v18  ;;  %v4982_v35 = vld [vmem:[#allocation11 + $0x188] sm:$0xf0] }
 0x1e4   :  { %3225 = vmatpush.bf16.msrb.mxu1 %v4981_v31  ;;  %v4985_v24 = vor.u32 %v5482_v33, %v4982_v35  ;;  %v5511_v25 = vld [vmem:[#allocation13 + $0x68] sm:$0xff] }
 0x1e5   :  { %v2661_v41 = vadd.f32 %v2660_v16, %v2648_v36 }
 0x1e8   :  { %v2649_v12 = vpop.f32.mrf.mxu3  ;;  %v2673_v45 = vpop.f32.mrf.mxu1  ;;  %3270 = vmatpush.bf16.msra.mxu1 %v5041_v2  ;;  %v5512_v2 = vld [vmem:[#allocation13 + $0x70] sm:$0xff] }
 0x1e9   :  { %v2674_v55 = vadd.f32 %v2673_v45, %v2661_v41  ;;  %3433 = vmatpush.bf16.msrb.mxu3 %v5512_v2 }
 0x1eb   :  { %v2783_v52 = vmax.f32 %v2674_v55, 0.0 }
 0x1ec   :  { %3271 = vmatpush.bf16.msra.mxu1 %v5033_v4  ;;  %v5501_v4 = vld [vmem:[#allocation13 + $0x18] sm:$0xff] }
 0x1ed   :  { %v2787_v51 = vpack.c.bf16 %v2783_v52, %v2783_v52  ;;  %3434 = vmatpush.bf16.msrb.mxu3 %v5511_v25 }
 0x1ef   :  { %3213 = vmatmul.bf16.vlgmr.msrb.gmra.mxu0 %v2787_v51 }
 0x1f0   :  { %v2675_v56 = vpop.f32.mrf.mxu1  ;;  %3272 = vmatpush.bf16.msra.mxu1 %v5025_v8 }
 0x1f3   :  { %v2686_v58 = vpop.f32.mrf.mxu2 }
 0x1f4   :  { %3273 = vmatpush.bf16.msra.mxu1 %v5017_v15  ;;  %v2687_v29 = vadd.f32 %v2686_v58, %v1080_v23  ;;  %v5509_v15 = vld [vmem:[#allocation13 + $0x58] sm:$0xff] }
 0x1f8   :  { %3274 = vmatpush.bf16.msra.mxu1 %v5009_v19  ;;  %v5506_v19 = vld [vmem:[#allocation13 + $0x40] sm:$0xff] }
 0x1fb   :  { %v2688_v44 = vpop.f32.mrf.mxu2  ;;  %v2712_v63 = vpop.f32.mrf.mxu0 }
 0x1fc   :  { %3275 = vmatpush.bf16.msra.mxu1 %v5001_v28 }
 0x1ff   :  { %3265 = vmatmul.bf16.vlgmr.msra.gmra.mxu0 %v2787_v51  ;;  %v2853_v51 = vld [vmem:[%s5977_s6] sm:$0x3] }
 0x200   :  { %v2699_v22 = vpop.f32.mrf.mxu3  ;;  %3276 = vmatpush.bf16.msra.mxu1 %v4993_v32  ;;  %v2855_v40 = vperm.slane %v2853_v51, 0  ;;  %v2856_v17 = vperm.slane %v2853_v51, 1 }
 0x201   :  { %v2700_v48 = vadd.f32 %v2699_v22, %v2687_v29  ;;  %v5502_v22 = vld [vmem:[#allocation13 + $0x20] sm:$0xff] }
 0x203   :  { %v2714_v62 = vpop.f32.mrf.mxu0  ;;  %v2713_v38 = vadd.f32 %v2712_v63, %v2700_v48  ;;  %v5505_v63 = vld [vmem:[#allocation13 + $0x38] sm:$0xff] }
 0x204   :  { %3277 = vmatpush.bf16.msra.mxu1 %v4985_v24  ;;  %3419 = vmatpush.bf16.msrb.mxu2 %v5505_v63 }
 0x208   :  { %v2701_v6 = vpop.f32.mrf.mxu3  ;;  %v2725_v11 = vpop.f32.mrf.mxu1  ;;  %3420 = vmatpush.bf16.msrb.mxu2 %v5504_v26 }
 0x209   :  { %v2726_v39 = vadd.f32 %v2725_v11, %v2713_v38  ;;  %v5498_v6 = vld [vmem:[#allocation13] sm:$0xff] }
 0x20a   :  { %v5510_v11 = vld [vmem:[#allocation13 + $0x60] sm:$0xff] }
 0x20b   :  { %3435 = vmatpush.bf16.msrb.mxu3 %v5510_v11 }
 0x20c   :  { %3421 = vmatpush.bf16.msrb.mxu2 %v5503_v3 }
 0x20f   :  { %3436 = vmatpush.bf16.msrb.mxu3 %v5509_v15 }
 0x210   :  { %v2727_v16 = vpop.f32.mrf.mxu1  ;;  %3422 = vmatpush.bf16.msrb.mxu2 %v5502_v22 }
 0x213   :  { %v2738_v27 = vpop.f32.mrf.mxu2  ;;  %3437 = vmatpush.bf16.msrb.mxu3 %v5508_v10 }
 0x214   :  { %v2739_v30 = vadd.f32 %v2738_v27, %v2726_v39  ;;  %3423 = vmatpush.bf16.msrb.mxu2 %v5501_v4 }
 0x217   :  { %3438 = vmatpush.bf16.msrb.mxu3 %v5507_v0 }
 0x218   :  { %3424 = vmatpush.bf16.msrb.mxu2 %v5500_v5 }
 0x21b   :  { %v2740_v36 = vpop.f32.mrf.mxu2  ;;  %v2764_v37 = vpop.f32.mrf.mxu0  ;;  %3439 = vmatpush.bf16.msrb.mxu3 %v5506_v19 }
 0x21c   :  { %3425 = vmatpush.bf16.msrb.mxu2 %v5499_v9  ;;  %v5530_v36 = vld [vmem:[%s5979_s8] ss:$0 sm:$0xff] }
 0x220   :  { %v2751_v13 = vpop.f32.mrf.mxu3  ;;  %3426 = vmatpush.bf16.msrb.mxu2 %v5498_v6 }
 0x221   :  { %v2752_v41 = vadd.f32 %v2751_v13, %v2739_v30 }
 0x223   :  { %v2766_v42 = vpop.f32.mrf.mxu0  ;;  %v2765_v43 = vadd.f32 %v2764_v37, %v2752_v41 }
 0x228   :  { %v2753_v12 = vpop.f32.mrf.mxu3  ;;  %v2777_v45 = vpop.f32.mrf.mxu1 }
 0x229   :  { %v2778_v46 = vadd.f32 %v2777_v45, %v2765_v43 }
 0x22b   :  { %v2784_v55 = vmax.f32 %v2778_v46, 0.0 }
 0x22d   :  { %v2788_v52 = vpack.c.bf16 %v2784_v55, %v2784_v55 }
 0x22f   :  { %3226 = vmatmul.bf16.vlgmr.msrb.gmra.mxu1 %v2788_v52 }
 0x230   :  { %v2779_v49 = vpop.f32.mrf.mxu1 }
 0x233   :  { %v3188_v50 = vpop.f32.mrf.mxu2 }
 0x234   :  { %v3189_v54 = vadd.f32 %v3188_v50, %v2855_v40 }
 0x23b   :  { %v3190_v53 = vpop.f32.mrf.mxu2 }
 0x23f   :  { %3278 = vmatmul.bf16.vlgmr.msra.gmra.mxu1 %v2788_v52 }
 0x240   :  { %v3201_v56 = vpop.f32.mrf.mxu3 }
 0x241   :  { %v3202_v57 = vadd.f32 %v3201_v56, %v3189_v54 }
 0x248   :  { %v3203_v58 = vpop.f32.mrf.mxu3 }
 0x253   :  { %v3240_v59 = vpop.f32.mrf.mxu2 }
 0x254   :  { %v3241_v60 = vadd.f32 %v3240_v59, %v2856_v17 }
 0x25b   :  { %v3242_v14 = vpop.f32.mrf.mxu2 }
 0x260   :  { %v3253_v61 = vpop.f32.mrf.mxu3 }
 0x261   :  { %v3254_v31 = vadd.f32 %v3253_v61, %v3241_v60 }
 0x268   :  { %v3255_v44 = vpop.f32.mrf.mxu3 }
 0x26c   :  { %v3214_v34 = vpop.f32.mrf.mxu0 }
 0x26d   :  { %v3215_v20 = vadd.f32 %v3214_v34, %v3202_v57 }
 0x274   :  { %v3216_v62 = vpop.f32.mrf.mxu0 }
 0x27c   :  { %v3266_v47 = vpop.f32.mrf.mxu0 }
 0x27d   :  { %v3267_v7 = vadd.f32 %v3266_v47, %v3254_v31 }
 0x284   :  { %v3268_v8 = vpop.f32.mrf.mxu0 }
 0x2ac   :  { %v3227_v21 = vpop.f32.mrf.mxu1 }
 0x2ad   :  { %v3228_v23 = vadd.f32 %v3227_v21, %v3215_v20 }
 0x2af   :  { %v3283_v16 = vmax.f32 %v3228_v23, 0.0 }
 0x2b1   :  { %v3285_v27 = vpack.c.bf16 %v3283_v16, %v3283_v16 }
 0x2b3   :  { %3427 = vmatmul.bf16.vlgmr.msrb.gmra.mxu2 %v3285_v27 }
 0x2b4   :  { %v3229_v28 = vpop.f32.mrf.mxu1 }
 0x2bc   :  { %v3279_v18 = vpop.f32.mrf.mxu1 }
 0x2bd   :  { %v3280_v29 = vadd.f32 %v3279_v18, %v3267_v7 }
 0x2bf   :  { %v3284_v32 = vmax.f32 %v3280_v29, 0.0 }
 0x2c1   :  { %v3286_v48 = vpack.c.bf16 %v3284_v32, %v3284_v32 }
 0x2c3   :  { %3440 = vmatmul.bf16.vlgmr.msrb.gmra.mxu3 %v3286_v48 }
 0x2c4   :  { %v3281_v33 = vpop.f32.mrf.mxu1 }
 0x336   :  { %v3428_v35 = vpop.f32.mrf.mxu2 }
 0x337   :  { %v3429_v37 = vadd.f32 %v5530_v36, %v3428_v35 }
 0x33e   :  { %v3430_v24 = vpop.f32.mrf.mxu2 }
 0x346   :  { %v3441_v38 = vpop.f32.mrf.mxu3 }
 0x347   :  { %v3442_v39 = vadd.f32 %v3441_v38, %v3429_v37 }
 0x349   :  { %3445 = vst [vmem:[#allocation14] sm:$0xff] %v3442_v39 }
 0x34a   :  { %3456 = dma.vmem_to_hbm [thread:$0]  %s3452_s27, 128, %s3454_s29, [#allocation4]  }
 0x34e   :  { %v3443_v13 = vpop.f32.mrf.mxu3 }
 0x34f   :  { %5731 = dma.done.wait [#allocation4], 128  }
 0x350   :  { %5732 = vsyncadd [#allocation4], 4294967168 }
 0x351   :  { %3461 = vsyncpa [#allocation3], 1 }
 0x352   :  { %3462 = vsyncpa [#allocation6], 1 }
 0x353   :  { %3463 = vsyncpa [#allocation9], 1 }
 0x354   :  { %3464 = vsyncpa [#allocation12], 1 }
 0x355   :  { %3465 = vsyncpa [#allocation4], 1 }

</bundles_post_ra>
